<compile_context>
chip_gen: v7x
topology: tpu7x:2x2x1
jax: 0.10.0
libtpu: 0.0.40
codegen_flags: <defaults>
</compile_context>

<pallas_src>
import jax
import jax.numpy as jnp
from jax.experimental import pallas as pl
from jax.experimental.pallas import tpu as pltpu


# ----------------------------------------------------------------------------
# Fused bottleneck kernel factory.
# ----------------------------------------------------------------------------
def _make_bottleneck_kernel(Ho, Wo, Cin, Ppad, Cout, has_downsample):
    M = Ho * Wo                              # rows of every matmul in the block

    def kernel(x_ref, w1_ref, sb1_ref, w2_ref, sb2_ref, w3_ref, sb3_ref, *rest):
        if has_downsample:
            wd_ref, sbd_ref, o_ref, t1_ref = rest
        else:
            o_ref, t1_ref = rest

        # Zero the conv2 halo scratch every step: cheap (few tens of KB of vst)
        # and stays correct even when the batch grid axis is sharded across
        # TensorCores (no reliance on program_id == 0 having run on this core).
        t1_ref[...] = jnp.zeros_like(t1_ref)

        x = x_ref[...]                                   # [Ho, Wo, Cin] bf16
        x2d = x.reshape(M, Cin)

        # --- conv1 (1x1; stride already folded by the caller) + BN1 + ReLU -----
        a1 = jnp.dot(x2d, w1_ref[...], preferred_element_type=jnp.float32)
        s1 = sb1_ref[pl.ds(0, 1), :]
        b1 = sb1_ref[pl.ds(1, 1), :]
        t1 = jnp.maximum(a1 * s1 + b1, 0.0).astype(jnp.bfloat16)     # [M, Ppad]
        # Write into the interior of the zero-bordered halo buffer: the border
        # rows/cols supply conv2's zero padding with no masking work.
        t1_ref[pl.ds(1, Ho), pl.ds(1, Wo), :] = t1.reshape(Ho, Wo, Ppad)

        # --- conv2 (3x3, pad 1) as ONE K = 9*Ppad matmul (im2col from VMEM) ----
        taps = []
        for kh in range(3):                              # static python loop
            for kw in range(3):
                win = t1_ref[pl.ds(kh, Ho), pl.ds(kw, Wo), :]        # bf16 view load
                taps.append(win.reshape(M, Ppad))
        lhs = jnp.concatenate(taps, axis=-1)             # [M, 9*Ppad] bf16 (lane-aligned)
        a2 = jnp.dot(lhs, w2_ref[...], preferred_element_type=jnp.float32)
        s2 = sb2_ref[pl.ds(0, 1), :]
        b2 = sb2_ref[pl.ds(1, 1), :]
        t2 = jnp.maximum(a2 * s2 + b2, 0.0).astype(jnp.bfloat16)     # [M, Ppad]

        # --- conv3 (1x1) + BN3 ---------------------------------------------------
        a3 = jnp.dot(t2, w3_ref[...], preferred_element_type=jnp.float32)
        a3 = a3 * sb3_ref[pl.ds(0, 1), :] + sb3_ref[pl.ds(1, 1), :]  # [M, Cout]

        # --- residual (optionally through the 1x1-conv + BN downsample) + ReLU ---
        if has_downsample:
            r = jnp.dot(x2d, wd_ref[...], preferred_element_type=jnp.float32)
            r = r * sbd_ref[pl.ds(0, 1), :] + sbd_ref[pl.ds(1, 1), :]
        else:
            r = x2d.astype(jnp.float32)                  # Cin == Cout here

        out = jnp.maximum(a3 + r, 0.0)
        o_ref[...] = out.reshape(Ho, Wo, Cout).astype(o_ref.dtype)

    return kernel


# ----------------------------------------------------------------------------
# Wrapper: NHWC bf16 in/out (the block's activation layout).
# ----------------------------------------------------------------------------
def bottleneck_caffe_forward(x_nhwc, kp, *, stride=1):
    """Fused Bottleneck_CAFFE forward.

    x_nhwc: [N, H, W, Cin] bf16 NHWC activations.
    Returns [N, H//stride, W//stride, 4*planes] bf16 NHWC.
    """
    has_ds = "wd" in kp
    x = x_nhwc.astype(jnp.bfloat16)
    if stride > 1:
        # CAFFE bottleneck puts the stride on the 1x1 conv1 (and the 1x1
        # downsample conv); for kernel_size=1 that is exactly spatial subsampling.
        # TODO(synk): fold this subsample into the kernel with strided pl.ds loads
        # so stage-boundary blocks also avoid this extra (small) HBM pass.
        x = x[:, ::stride, ::stride, :]
    N, Ho, Wo, Cin = x.shape
    Ppad = kp["w1"].shape[1]
    Cout = kp["w3"].shape[1]
    if not has_ds:
        assert stride == 1 and Cin == Cout, "identity residual needs matching shapes"

    kernel = _make_bottleneck_kernel(Ho, Wo, Cin, Ppad, Cout, has_ds)

    def const_spec(a):
        nd = a.ndim
        return pl.BlockSpec(tuple(a.shape), lambda n, _nd=nd: (0,) * _nd)

    in_specs = [
        pl.BlockSpec((None, Ho, Wo, Cin), lambda n: (n, 0, 0, 0)),
        const_spec(kp["w1"]), const_spec(kp["sb1"]),
        const_spec(kp["w2"]), const_spec(kp["sb2"]),
        const_spec(kp["w3"]), const_spec(kp["sb3"]),
    ]
    args = [x, kp["w1"], kp["sb1"], kp["w2"], kp["sb2"], kp["w3"], kp["sb3"]]
    if has_ds:
        in_specs += [const_spec(kp["wd"]), const_spec(kp["sbd"])]
        args += [kp["wd"], kp["sbd"]]

    M = Ho * Wo
    flops = 2 * N * M * (Cin * Ppad + 9 * Ppad * Ppad + Ppad * Cout
                         + (Cin * Cout if has_ds else 0))
    bytes_accessed = int(
        N * M * Cin * 2 + N * M * Cout * 2
        + sum(int(kp[k].size) * jnp.dtype(kp[k].dtype).itemsize for k in kp))

    out = pl.pallas_call(
        kernel,
        out_shape=jax.ShapeDtypeStruct((N, Ho, Wo, Cout), jnp.bfloat16),
        grid=(N,),
        in_specs=in_specs,
        out_specs=pl.BlockSpec((None, Ho, Wo, Cout), lambda n: (n, 0, 0, 0)),
        scratch_shapes=[pltpu.VMEM((Ho + 2, Wo + 2, Ppad), jnp.bfloat16)],
        compiler_params=pltpu.CompilerParams(
            dimension_semantics=("parallel",),
            vmem_limit_bytes=32 * 1024 * 1024),
        cost_estimate=pl.CostEstimate(flops=flops, transcendentals=0,
                                      bytes_accessed=bytes_accessed),
    )(*args)
    return out


# ----------------------------------------------------------------------------
# Parameter construction / one-time preparation (outside the per-call trace).
# ----------------------------------------------------------------------------
def init_raw_params(key, inplanes, planes, *, with_downsample, w_scale=0.05):
    exp = 4
    keys = jax.random.split(key, 8)

    def bn_stats(k, c):
        k1, k2, k3, k4 = jax.random.split(k, 4)
        gamma = 1.0 + 0.1 * jax.random.normal(k1, (c,), jnp.float32)
        beta = 0.1 * jax.random.normal(k2, (c,), jnp.float32)
        mean = 0.1 * jax.random.normal(k3, (c,), jnp.float32)
        var = 1.0 + 0.1 * jax.random.uniform(k4, (c,), jnp.float32)
        return gamma, beta, mean, var

    p = {
        "conv1_w": w_scale * jax.random.normal(keys[0], (planes, inplanes, 1, 1), jnp.float32),
        "bn1": bn_stats(keys[1], planes),
        "conv2_w": w_scale * jax.random.normal(keys[2], (planes, planes, 3, 3), jnp.float32),
        "bn2": bn_stats(keys[3], planes),
        "conv3_w": w_scale * jax.random.normal(keys[4], (planes * exp, planes, 1, 1), jnp.float32),
        "bn3": bn_stats(keys[5], planes * exp),
        "downsample": None,
    }
    if with_downsample:
        # standard pose_resnet downsample: Conv2d(1x1, stride, bias=False) + BN
        p["downsample"] = (
            w_scale * jax.random.normal(keys[6], (planes * exp, inplanes, 1, 1), jnp.float32),
            bn_stats(keys[7], planes * exp),
        )
    return p


def _fold_bn_packed(bn, c_pad, eps=1e-5):
    """Fold BN to (scale, shift), pad channels to c_pad, pack as one [2, c_pad] f32."""
    gamma, beta, mean, var = bn
    scale = gamma / jnp.sqrt(var + eps)
    shift = beta - mean * scale
    sb = jnp.stack([scale, shift], axis=0).astype(jnp.float32)        # [2, C]
    c = sb.shape[1]
    if c_pad > c:
        sb = jnp.pad(sb, ((0, 0), (0, c_pad - c)))                    # zeros -> relu(0)=0
    return sb


def prepare_kernel_params(raw, eps=1e-5):
    """Precompute kernel-friendly weight layouts once (lane-padded planes dim,
    flattened conv2 weights, folded/packed BN scale+shift)."""
    P = raw["conv1_w"].shape[0]
    Cout = raw["conv3_w"].shape[0]
    Ppad = ((P + 127) // 128) * 128          # lane-dense intermediate channels

    w1 = jnp.transpose(raw["conv1_w"][:, :, 0, 0], (1, 0))            # [Cin, P]
    w1 = jnp.pad(w1, ((0, 0), (0, Ppad - P)))
    w2 = jnp.transpose(raw["conv2_w"], (2, 3, 1, 0))                  # [3, 3, Pin, Pout]
    w2 = jnp.pad(w2, ((0, 0), (0, 0), (0, Ppad - P), (0, Ppad - P)))
    w2 = w2.reshape(9 * Ppad, Ppad)                                   # (kh,kw,cin) major
    w3 = jnp.transpose(raw["conv3_w"][:, :, 0, 0], (1, 0))            # [P, Cout]
    w3 = jnp.pad(w3, ((0, Ppad - P), (0, 0)))

    kp = {
        "w1": w1.astype(jnp.bfloat16),
        "w2": w2.astype(jnp.bfloat16),
        "w3": w3.astype(jnp.bfloat16),
        "sb1": _fold_bn_packed(raw["bn1"], Ppad, eps),
        "sb2": _fold_bn_packed(raw["bn2"], Ppad, eps),
        "sb3": _fold_bn_packed(raw["bn3"], Cout, eps),
    }
    if raw["downsample"] is not None:
        wd, bnd = raw["downsample"]
        kp["wd"] = jnp.transpose(wd[:, :, 0, 0], (1, 0)).astype(jnp.bfloat16)  # [Cin, Cout]
        kp["sbd"] = _fold_bn_packed(bnd, Cout, eps)
    return kp


# ----------------------------------------------------------------------------
# Pure-JAX reference (f32, NCHW) for on-device correctness checking.
# ----------------------------------------------------------------------------
def bottleneck_caffe_ref(x, raw, *, stride=1, eps=1e-5):
    def conv(xx, w, s, pad):
        return jax.lax.conv_general_dilated(
            xx, w, window_strides=(s, s), padding=pad,
            dimension_numbers=("NCHW", "OIHW", "NCHW"))

    def bn(xx, p):
        gamma, beta, mean, var = p
        sc = gamma / jnp.sqrt(var + eps)
        sh = beta - mean * sc
        return xx * sc[None, :, None, None] + sh[None, :, None, None]

    out = jax.nn.relu(bn(conv(x, raw["conv1_w"], stride, "VALID"), raw["bn1"]))
    out = jax.nn.relu(bn(conv(out, raw["conv2_w"], 1, ((1, 1), (1, 1))), raw["bn2"]))
    out = bn(conv(out, raw["conv3_w"], 1, "VALID"), raw["bn3"])
    if raw["downsample"] is not None:
        wd, bnd = raw["downsample"]
        residual = bn(conv(x, wd, stride, "VALID"), bnd)
    else:
        residual = x
    return jax.nn.relu(out + residual)


if __name__ == "__main__":
    key = jax.random.PRNGKey(0)

    def run_case(case_key, N, inplanes, planes, H, W, stride, with_ds, name):
        k_x, k_p = jax.random.split(case_key)
        x = jax.random.normal(k_x, (N, inplanes, H, W), jnp.float32)
        raw = init_raw_params(k_p, inplanes, planes, with_downsample=with_ds)
        kp = prepare_kernel_params(raw)
        # NCHW f32 -> NHWC bf16 conversion happens ONCE at the network boundary
        # (test harness), not per bottleneck; the block interface is NHWC bf16.
        x_nhwc = jnp.transpose(x, (0, 2, 3, 1)).astype(jnp.bfloat16)
        fwd = jax.jit(lambda xx: bottleneck_caffe_forward(xx, kp, stride=stride))
        out_nhwc = jax.block_until_ready(fwd(x_nhwc))
        ref = jax.block_until_ready(bottleneck_caffe_ref(x, raw, stride=stride))
        out = jnp.transpose(out_nhwc.astype(jnp.float32), (0, 3, 1, 2))
        assert out.shape == (N, planes * 4, H // stride, W // stride), out.shape
        assert out.shape == ref.shape, (out.shape, ref.shape)
        err = float(jnp.max(jnp.abs(out - ref)) / (jnp.max(jnp.abs(ref)) + 1e-6))
        # bf16 activations/weights AND bf16 output -> slightly looser tolerance.
        assert err < 4e-2, f"{name}: rel-max err {err}"

    # ---- config 1: identity-residual block (stride=1, downsample=None) --------
    key, k1, k2 = jax.random.split(key, 3)
    run_case(k1, 2, 128, 32, 16, 16, 1, False, "identity-block")

    # ---- config 2: strided block with downsample (stage boundary) -------------
    run_case(k2, 2, 64, 32, 16, 16, 2, True, "downsample-block")

    print("KERNEL_OK")
</pallas_src>

<mosaic_0001>
module attributes {stable_mosaic.version = 11 : i64} {
  func.func @kernel(%arg0: i32, %arg1: memref<1x16x16x128xbf16, #tpu.memory_space<vmem>>, %arg2: memref<128x128xbf16, #tpu.memory_space<vmem>>, %arg3: memref<2x128xf32, #tpu.memory_space<vmem>>, %arg4: memref<1152x128xbf16, #tpu.memory_space<vmem>>, %arg5: memref<2x128xf32, #tpu.memory_space<vmem>>, %arg6: memref<128x128xbf16, #tpu.memory_space<vmem>>, %arg7: memref<2x128xf32, #tpu.memory_space<vmem>>, %arg8: memref<1x16x16x128xbf16, #tpu.memory_space<vmem>>, %arg9: memref<18x18x128xbf16, #tpu.memory_space<vmem>>) attributes {dimension_semantics = [#tpu.dimension_semantics<parallel>], iteration_bounds = array<i64: 2>, scalar_prefetch = 0 : i64, scratch_operands = 1 : i64, tpu.core_type = #tpu.core_type<tc>, window_params = [{transform_indices = @transform_0, window_bounds = array<i64: 1, 16, 16, 128>}, {pipeline_mode = #tpu.pipeline_mode<synchronous>, transform_indices = @transform_1, window_bounds = array<i64: 128, 128>}, {pipeline_mode = #tpu.pipeline_mode<synchronous>, transform_indices = @transform_2, window_bounds = array<i64: 2, 128>}, {pipeline_mode = #tpu.pipeline_mode<synchronous>, transform_indices = @transform_3, window_bounds = array<i64: 1152, 128>}, {pipeline_mode = #tpu.pipeline_mode<synchronous>, transform_indices = @transform_4, window_bounds = array<i64: 2, 128>}, {pipeline_mode = #tpu.pipeline_mode<synchronous>, transform_indices = @transform_5, window_bounds = array<i64: 128, 128>}, {pipeline_mode = #tpu.pipeline_mode<synchronous>, transform_indices = @transform_6, window_bounds = array<i64: 2, 128>}, {transform_indices = @transform_7, window_bounds = array<i64: 1, 16, 16, 128>}]} {
    %cst = arith.constant 0.000000e+00 : bf16
    %0 = vector.broadcast %cst : bf16 to vector<18x18x128xbf16>
    %c0 = arith.constant 0 : index
    %c0_0 = arith.constant 0 : index
    %c0_1 = arith.constant 0 : index
    %1 = vector.load %arg9[%c0, %c0_0, %c0_1] : memref<18x18x128xbf16, #tpu.memory_space<vmem>>, vector<18x18x128xbf16>
    tpu.vector_store %arg9[%c0, %c0_0, %c0_1], %0 {strides = array<i32>} : memref<18x18x128xbf16, #tpu.memory_space<vmem>>, vector<18x18x128xbf16>,
    %c0_2 = arith.constant 0 : index
    %c0_3 = arith.constant 0 : index
    %c0_4 = arith.constant 0 : index
    %c0_5 = arith.constant 0 : index
    %2 = vector.load %arg1[%c0_2, %c0_3, %c0_4, %c0_5] : memref<1x16x16x128xbf16, #tpu.memory_space<vmem>>, vector<1x16x16x128xbf16>
    %3 = vector.shape_cast %2 : vector<1x16x16x128xbf16> to vector<16x16x128xbf16>
    %4 = vector.shape_cast %3 : vector<16x16x128xbf16> to vector<256x128xbf16>
    %c0_6 = arith.constant 0 : index
    %c0_7 = arith.constant 0 : index
    %5 = vector.load %arg2[%c0_6, %c0_7] : memref<128x128xbf16, #tpu.memory_space<vmem>>, vector<128x128xbf16>
    %cst_8 = arith.constant dense<0.000000e+00> : vector<256x128xf32>
    %6 = tpu.matmul %4, %5, %cst_8 {dimension_numbers = #tpu.dot_dimension_numbers<[1], [0], [0], [1], [0, 0, 1, 1], [], []>} : vector<256x128xbf16>, vector<128x128xbf16>, vector<256x128xf32> -> vector<256x128xf32>
    %c0_9 = arith.constant 0 : index
    %c0_10 = arith.constant 0 : index
    %7 = vector.load %arg3[%c0_9, %c0_10] : memref<2x128xf32, #tpu.memory_space<vmem>>, vector<1x128xf32>
    %c1 = arith.constant 1 : index
    %c0_11 = arith.constant 0 : index
    %8 = vector.load %arg3[%c1, %c0_11] : memref<2x128xf32, #tpu.memory_space<vmem>>, vector<1x128xf32>
    %9 = vector.broadcast %7 : vector<1x128xf32> to vector<256x128xf32>
    %10 = arith.mulf %6, %9 : vector<256x128xf32>
    %11 = vector.broadcast %8 : vector<1x128xf32> to vector<256x128xf32>
    %12 = arith.addf %10, %11 : vector<256x128xf32>
    %cst_12 = arith.constant 0.000000e+00 : f32
    %13 = vector.broadcast %cst_12 : f32 to vector<256x128xf32>
    %14 = arith.maximumf %12, %13 : vector<256x128xf32>
    %15 = arith.truncf %14 : vector<256x128xf32> to vector<256x128xbf16>
    %16 = vector.shape_cast %15 : vector<256x128xbf16> to vector<16x16x128xbf16>
    %c1_13 = arith.constant 1 : index
    %c1_14 = arith.constant 1 : index
    %c0_15 = arith.constant 0 : index
    %17 = vector.load %arg9[%c1_13, %c1_14, %c0_15] : memref<18x18x128xbf16, #tpu.memory_space<vmem>>, vector<16x16x128xbf16>
    tpu.vector_store %arg9[%c1_13, %c1_14, %c0_15], %16 {strides = array<i32>} : memref<18x18x128xbf16, #tpu.memory_space<vmem>>, vector<16x16x128xbf16>,
    %c0_16 = arith.constant 0 : index
    %c0_17 = arith.constant 0 : index
    %c0_18 = arith.constant 0 : index
    %18 = vector.load %arg9[%c0_16, %c0_17, %c0_18] : memref<18x18x128xbf16, #tpu.memory_space<vmem>>, vector<16x16x128xbf16>
    %19 = vector.shape_cast %18 : vector<16x16x128xbf16> to vector<256x128xbf16>
    %c0_19 = arith.constant 0 : index
    %c1_20 = arith.constant 1 : index
    %c0_21 = arith.constant 0 : index
    %20 = vector.load %arg9[%c0_19, %c1_20, %c0_21] : memref<18x18x128xbf16, #tpu.memory_space<vmem>>, vector<16x16x128xbf16>
    %21 = vector.shape_cast %20 : vector<16x16x128xbf16> to vector<256x128xbf16>
    %c0_22 = arith.constant 0 : index
    %c2 = arith.constant 2 : index
    %c0_23 = arith.constant 0 : index
    %22 = vector.load %arg9[%c0_22, %c2, %c0_23] : memref<18x18x128xbf16, #tpu.memory_space<vmem>>, vector<16x16x128xbf16>
    %23 = vector.shape_cast %22 : vector<16x16x128xbf16> to vector<256x128xbf16>
    %c1_24 = arith.constant 1 : index
    %c0_25 = arith.constant 0 : index
    %c0_26 = arith.constant 0 : index
    %24 = vector.load %arg9[%c1_24, %c0_25, %c0_26] : memref<18x18x128xbf16, #tpu.memory_space<vmem>>, vector<16x16x128xbf16>
    %25 = vector.shape_cast %24 : vector<16x16x128xbf16> to vector<256x128xbf16>
    %c1_27 = arith.constant 1 : index
    %c1_28 = arith.constant 1 : index
    %c0_29 = arith.constant 0 : index
    %26 = vector.load %arg9[%c1_27, %c1_28, %c0_29] : memref<18x18x128xbf16, #tpu.memory_space<vmem>>, vector<16x16x128xbf16>
    %27 = vector.shape_cast %26 : vector<16x16x128xbf16> to vector<256x128xbf16>
    %c1_30 = arith.constant 1 : index
    %c2_31 = arith.constant 2 : index
    %c0_32 = arith.constant 0 : index
    %28 = vector.load %arg9[%c1_30, %c2_31, %c0_32] : memref<18x18x128xbf16, #tpu.memory_space<vmem>>, vector<16x16x128xbf16>
    %29 = vector.shape_cast %28 : vector<16x16x128xbf16> to vector<256x128xbf16>
    %c2_33 = arith.constant 2 : index
    %c0_34 = arith.constant 0 : index
    %c0_35 = arith.constant 0 : index
    %30 = vector.load %arg9[%c2_33, %c0_34, %c0_35] : memref<18x18x128xbf16, #tpu.memory_space<vmem>>, vector<16x16x128xbf16>
    %31 = vector.shape_cast %30 : vector<16x16x128xbf16> to vector<256x128xbf16>
    %c2_36 = arith.constant 2 : index
    %c1_37 = arith.constant 1 : index
    %c0_38 = arith.constant 0 : index
    %32 = vector.load %arg9[%c2_36, %c1_37, %c0_38] : memref<18x18x128xbf16, #tpu.memory_space<vmem>>, vector<16x16x128xbf16>
    %33 = vector.shape_cast %32 : vector<16x16x128xbf16> to vector<256x128xbf16>
    %c2_39 = arith.constant 2 : index
    %c2_40 = arith.constant 2 : index
    %c0_41 = arith.constant 0 : index
    %34 = vector.load %arg9[%c2_39, %c2_40, %c0_41] : memref<18x18x128xbf16, #tpu.memory_space<vmem>>, vector<16x16x128xbf16>
    %35 = vector.shape_cast %34 : vector<16x16x128xbf16> to vector<256x128xbf16>
    %36 = tpu.concatenate %19, %21, %23, %25, %27, %29, %31, %33, %35 in 1 : vector<256x128xbf16>, vector<256x128xbf16>, vector<256x128xbf16>, vector<256x128xbf16>, vector<256x128xbf16>, vector<256x128xbf16>, vector<256x128xbf16>, vector<256x128xbf16>, vector<256x128xbf16> -> vector<256x1152xbf16>
    %c0_42 = arith.constant 0 : index
    %c0_43 = arith.constant 0 : index
    %37 = vector.load %arg4[%c0_42, %c0_43] : memref<1152x128xbf16, #tpu.memory_space<vmem>>, vector<1152x128xbf16>
    %cst_44 = arith.constant dense<0.000000e+00> : vector<256x128xf32>
    %38 = tpu.matmul %36, %37, %cst_44 {dimension_numbers = #tpu.dot_dimension_numbers<[1], [0], [0], [1], [0, 0, 1, 1], [], []>} : vector<256x1152xbf16>, vector<1152x128xbf16>, vector<256x128xf32> -> vector<256x128xf32>
    %c0_45 = arith.constant 0 : index
    %c0_46 = arith.constant 0 : index
    %39 = vector.load %arg5[%c0_45, %c0_46] : memref<2x128xf32, #tpu.memory_space<vmem>>, vector<1x128xf32>
    %c1_47 = arith.constant 1 : index
    %c0_48 = arith.constant 0 : index
    %40 = vector.load %arg5[%c1_47, %c0_48] : memref<2x128xf32, #tpu.memory_space<vmem>>, vector<1x128xf32>
    %41 = vector.broadcast %39 : vector<1x128xf32> to vector<256x128xf32>
    %42 = arith.mulf %38, %41 : vector<256x128xf32>
    %43 = vector.broadcast %40 : vector<1x128xf32> to vector<256x128xf32>
    %44 = arith.addf %42, %43 : vector<256x128xf32>
    %cst_49 = arith.constant 0.000000e+00 : f32
    %45 = vector.broadcast %cst_49 : f32 to vector<256x128xf32>
    %46 = arith.maximumf %44, %45 : vector<256x128xf32>
    %47 = arith.truncf %46 : vector<256x128xf32> to vector<256x128xbf16>
    %c0_50 = arith.constant 0 : index
    %c0_51 = arith.constant 0 : index
    %48 = vector.load %arg6[%c0_50, %c0_51] : memref<128x128xbf16, #tpu.memory_space<vmem>>, vector<128x128xbf16>
    %cst_52 = arith.constant dense<0.000000e+00> : vector<256x128xf32>
    %49 = tpu.matmul %47, %48, %cst_52 {dimension_numbers = #tpu.dot_dimension_numbers<[1], [0], [0], [1], [0, 0, 1, 1], [], []>} : vector<256x128xbf16>, vector<128x128xbf16>, vector<256x128xf32> -> vector<256x128xf32>
    %c0_53 = arith.constant 0 : index
    %c0_54 = arith.constant 0 : index
    %50 = vector.load %arg7[%c0_53, %c0_54] : memref<2x128xf32, #tpu.memory_space<vmem>>, vector<1x128xf32>
    %51 = vector.broadcast %50 : vector<1x128xf32> to vector<256x128xf32>
    %52 = arith.mulf %49, %51 : vector<256x128xf32>
    %c1_55 = arith.constant 1 : index
    %c0_56 = arith.constant 0 : index
    %53 = vector.load %arg7[%c1_55, %c0_56] : memref<2x128xf32, #tpu.memory_space<vmem>>, vector<1x128xf32>
    %54 = vector.broadcast %53 : vector<1x128xf32> to vector<256x128xf32>
    %55 = arith.addf %52, %54 : vector<256x128xf32>
    %56 = arith.extf %4 : vector<256x128xbf16> to vector<256x128xf32>
    %57 = arith.addf %55, %56 : vector<256x128xf32>
    %cst_57 = arith.constant 0.000000e+00 : f32
    %58 = vector.broadcast %cst_57 : f32 to vector<256x128xf32>
    %59 = arith.maximumf %57, %58 : vector<256x128xf32>
    %60 = vector.shape_cast %59 : vector<256x128xf32> to vector<16x16x128xf32>
    %61 = arith.truncf %60 : vector<16x16x128xf32> to vector<16x16x128xbf16>
    %c0_58 = arith.constant 0 : index
    %c0_59 = arith.constant 0 : index
    %c0_60 = arith.constant 0 : index
    %c0_61 = arith.constant 0 : index
    %62 = vector.load %arg8[%c0_58, %c0_59, %c0_60, %c0_61] : memref<1x16x16x128xbf16, #tpu.memory_space<vmem>>, vector<1x16x16x128xbf16>
    %63 = vector.shape_cast %62 : vector<1x16x16x128xbf16> to vector<16x16x128xbf16>
    %64 = vector.shape_cast %61 : vector<16x16x128xbf16> to vector<1x16x16x128xbf16>
    tpu.vector_store %arg8[%c0_58, %c0_59, %c0_60, %c0_61], %64 {strides = array<i32>} : memref<1x16x16x128xbf16, #tpu.memory_space<vmem>>, vector<1x16x16x128xbf16>,
    return
  }
  func.func @transform_0(%arg0: i32) -> (i32, i32, i32, i32) {
    %c0_i32 = arith.constant 0 : i32
    %c0_i32_0 = arith.constant 0 : i32
    %c0_i32_1 = arith.constant 0 : i32
    %c0_i32_2 = arith.constant 0 : i32
    return %arg0, %c0_i32, %c0_i32_0, %c0_i32_1 : i32, i32, i32, i32
  }
  func.func @transform_1(%arg0: i32) -> (i32, i32) {
    %c0_i32 = arith.constant 0 : i32
    %c0_i32_0 = arith.constant 0 : i32
    %c0_i32_1 = arith.constant 0 : i32
    return %c0_i32, %c0_i32_0 : i32, i32
  }
  func.func @transform_2(%arg0: i32) -> (i32, i32) {
    %c0_i32 = arith.constant 0 : i32
    %c0_i32_0 = arith.constant 0 : i32
    %c0_i32_1 = arith.constant 0 : i32
    return %c0_i32, %c0_i32_0 : i32, i32
  }
  func.func @transform_3(%arg0: i32) -> (i32, i32) {
    %c0_i32 = arith.constant 0 : i32
    %c0_i32_0 = arith.constant 0 : i32
    %c0_i32_1 = arith.constant 0 : i32
    return %c0_i32, %c0_i32_0 : i32, i32
  }
  func.func @transform_4(%arg0: i32) -> (i32, i32) {
    %c0_i32 = arith.constant 0 : i32
    %c0_i32_0 = arith.constant 0 : i32
    %c0_i32_1 = arith.constant 0 : i32
    return %c0_i32, %c0_i32_0 : i32, i32
  }
  func.func @transform_5(%arg0: i32) -> (i32, i32) {
    %c0_i32 = arith.constant 0 : i32
    %c0_i32_0 = arith.constant 0 : i32
    %c0_i32_1 = arith.constant 0 : i32
    return %c0_i32, %c0_i32_0 : i32, i32
  }
  func.func @transform_6(%arg0: i32) -> (i32, i32) {
    %c0_i32 = arith.constant 0 : i32
    %c0_i32_0 = arith.constant 0 : i32
    %c0_i32_1 = arith.constant 0 : i32
    return %c0_i32, %c0_i32_0 : i32, i32
  }
  func.func @transform_7(%arg0: i32) -> (i32, i32, i32, i32) {
    %c0_i32 = arith.constant 0 : i32
    %c0_i32_0 = arith.constant 0 : i32
    %c0_i32_1 = arith.constant 0 : i32
    %c0_i32_2 = arith.constant 0 : i32
    return %arg0, %c0_i32, %c0_i32_0, %c0_i32_1 : i32, i32, i32, i32
  }
}

</mosaic_0001>

<bundles_post_ra>
// kernel: _lambda_.1
= control target key start
LH: loop header
LB: loop body
LE: loop exit
PB: predicated region body
PF: predicated region fallthrough
CT: control target
= control target key end

     0   :  { %12 = vsyncpa [#allocation4], 0  ;;  %s10082_s0 = inlined_call_operand.hbm [shape: bf16[2,16,16,128], index: 0, kind: input, shape index: {}]   ;;  %s10083_s1 = inlined_call_operand.hbm [shape: bf16[128,128], index: 1, kind: input, shape index: {}]   ;;  %s10084_s2 = inlined_call_operand.vmem [shape: f32[2,128], index: 2, kind: input, shape index: {}]   ;;  %s10085_s3 = inlined_call_operand.hbm [shape: bf16[1152,128], index: 3, kind: input, shape index: {}]   ;;  %s10086_s4 = inlined_call_operand.vmem [shape: f32[2,128], index: 4, kind: input, shape index: {}]   ;;  %s10087_s5 = inlined_call_operand.hbm [shape: bf16[128,128], index: 5, kind: input, shape index: {}]   ;;  %s10088_s6 = inlined_call_operand.vmem [shape: f32[2,128], index: 6, kind: input, shape index: {}]   ;;  %s10089_s7 = inlined_call_operand.hbm [shape: bf16[2,16,16,128], index: 7, kind: output, shape index: {}]  }
   0x1   :  { %14 = vsyncpa [#allocation4 + $0x1], 0 }
   0x2   :  { %15 = vsyncpa [#allocation7], 0 }
   0x3   :  { %16 = vsyncpa [#allocation10], 0 }
   0x4   :  { %17 = vsyncpa [#allocation5], 0 }
   0x5   :  { %19 = vsyncpa [#allocation5 + $0x1], 0  ;;  %s7797_s24 = smov 0   ;;  %s7799_s25 = smov 0  }
   0x6   :  { %s7801_s26 = smov 0   ;;  %s7803_s27 = smov 0  }
   0x7 LB: > { %s7818_s28 = sadd.s32 4294967295, %s7745_s27   ;;  %s6021_s29 = sadd.s32 4294967294, %s7745_s27   ;;  %s7745_s27 = sphi %s7803_s27, %s10258_s27   ;;  %s7741_s26 = sphi %s7801_s26, %s10257_s26   ;;  %s7737_s25 = sphi %s7799_s25, %s10256_s25   ;;  %s7733_s24 = sphi %s7797_s24, %s10255_s24  }
   0x8   : > { %p45_p0 = scmp.ne.s32.totalorder %s7737_s25, %s7733_s24  ;;  %p10090_p1 = scmp.eq.s32.totalorder %s7818_s28, 0 }
   0x9   : > { %p201_p3 = scmp.eq.s32.totalorder %s6021_s29, 1  ;;  %p6022_p5 = scmp.ge.s32.totalorder %s7745_s27, 1 }
   0xa   : > { %p7827_p4 = por %p10090_p1, %p45_p0  ;;  %p208_p7 = scmp.lt.s32.totalorder %s7745_s27, 3 }
   0xb   : > { %p7832_p6 = por %p201_p3, %p45_p0  ;;  %s7747_s10 = smov [#allocation6]  }
   0xc   : > { %s10110_s30 = scalar_select %p7827_p4, 1, 0 }
   0xd   : > { %s10111_s8 = scalar_select %p7832_p6, 1, 0 }
   0xe   : > { %p7837_p8 = pnand %p6022_p5, %p208_p7  ;;  %s220_s11 = sshll.u32 %s7747_s10, 4  ;;  %s7841_s11 = int_to_ptr.vmem [resolvable:$true] %s220_s11 }
   0xf   : > { %10112 = sst [smem:[#allocation16_spill]] %s10111_s8  ;;  %s7748_s13 = smov [#allocation8]  }
  0x10   : > { %s10113_s9 = scalar_select %p7837_p8, 1, 0 }
  0x11   : > { %p7264_p9 = pneg %p7837_p8  ;;  %s236_s14 = sshll.u32 %s7748_s13, 4  ;;  %s7852_s14 = int_to_ptr.vmem [resolvable:$true] %s236_s14 }
  0x12   : > { %s7749_s15 = smov [#allocation9]   ;;  %s7557_s19 = scalar_lea.hbm %s10083_s1, 1024 }
  0x13   : > { %p7848_p11 = pnand %p7264_p9, %p10090_p1  ;;  %s7854_s16 = sshll.u32 %s7749_s15, 4  ;;  %s253_s16 = int_to_ptr.vmem [resolvable:$true] %s7854_s16 }
  0x14   : > { %p7558_p12 = scmp.ne.s32.totalorder %s10083_s1, %s7557_s19  ;;  %p7564_p5 = scmp.lt.u32.totalorder %s7557_s19, %s10083_s1 }
  0x15   : > { %p7864_p13 = pneg %p7848_p11 }
  0x17   : > { %p7560_p0 = pnand %p7864_p13, %p7558_p12 }
  0x19   : > { %p7561_p3 = pneg %p7560_p0 }
  0x1b   : > { %p7566_p7 = pnand %p7564_p5, %p7561_p3 }
  0x1d   : > { %7569 = shalt.err (!%p7566_p7)
}
  0x1e   : > { %s7570_s10 = scalar_lea.vmem %s7841_s11, 1024  ;;  %p7578_p2 = scmp.lt.s32.totalorder %s7841_s11, %s7841_s11 }
  0x1f   : > { %p7571_p9 = scmp.ne.s32.totalorder %s7841_s11, %s7570_s10  ;;  %p7579_p6 = scmp.lt.s32.totalorder %s7570_s10, %s7570_s10 }
  0x21   : > { %p7573_p10 = pnand %p7571_p9, %p7864_p13  ;;  %p7580_p12 = por %p7579_p6, %p7578_p2 }
  0x23   : > { %p7574_p1 = pneg %p7573_p10 }
  0x25   : > { %p7581_p0 = pnand %p7580_p12, %p7574_p1 }
  0x27   : > { %7584 = shalt.err (!%p7581_p0)
}
  0x28   : > { %s7750_s13 = smov 64   ;;  %s7751_s15 = smov 4  }
  0x29   : > { %7267 = dma.hbm_to_vmem [thread:$0]  (!%p7848_p11), %s10083_s1, 1024, %s7841_s11, [#allocation7], %s7750_s13, %s7750_s13, %s7751_s15  }
  0x2a   : > { %s7585_s21 = scalar_lea.hbm %s10085_s3, 9216 }
  0x2b   : > { %p7586_p1 = scmp.ne.s32.totalorder %s10085_s3, %s7585_s21  ;;  %p7592_p10 = scmp.lt.u32.totalorder %s7585_s21, %s10085_s3 }
  0x2d   : > { %p7588_p2 = pnand %p7586_p1, %p7864_p13 }
  0x2f   : > { %p7589_p6 = pneg %p7588_p2 }
  0x31   : > { %p7594_p3 = pnand %p7592_p10, %p7589_p6 }
  0x33   : > { %7597 = shalt.err (!%p7594_p3)
}
  0x34   : > { %s7598_s11 = scalar_lea.vmem %s7852_s14, 9216  ;;  %p7606_p12 = scmp.lt.s32.totalorder %s7852_s14, %s7852_s14 }
  0x35   : > { %p7599_p5 = scmp.ne.s32.totalorder %s7852_s14, %s7598_s11  ;;  %p7607_p0 = scmp.lt.s32.totalorder %s7598_s11, %s7598_s11 }
  0x37   : > { %p7601_p7 = pnand %p7599_p5, %p7864_p13  ;;  %p7608_p1 = por %p7607_p0, %p7606_p12 }
  0x39   : > { %p7602_p9 = pneg %p7601_p7 }
  0x3b   : > { %p7609_p2 = pnand %p7608_p1, %p7602_p9 }
  0x3d   : > { %7612 = shalt.err (!%p7609_p2)
}
  0x3e   : > { %7270 = dma.hbm_to_vmem [thread:$0]  (!%p7848_p11), %s10085_s3, 9216, %s7852_s14, [#allocation7], %s7750_s13, %s7750_s13, %s7751_s15  }
  0x3f   : > { %s7613_s20 = scalar_lea.hbm %s10087_s5, 1024 }
  0x40   : > { %p7614_p6 = scmp.ne.s32.totalorder %s10087_s5, %s7613_s20  ;;  %p7620_p5 = scmp.lt.u32.totalorder %s7613_s20, %s10087_s5 }
  0x42   : > { %p7616_p10 = pnand %p7614_p6, %p7864_p13 }
  0x44   : > { %p7617_p3 = pneg %p7616_p10 }
  0x46   : > { %p7622_p7 = pnand %p7620_p5, %p7617_p3 }
  0x48   : > { %7625 = shalt.err (!%p7622_p7)
}
  0x49   : > { %s7626_s11 = scalar_lea.vmem %s253_s16, 1024  ;;  %p7634_p1 = scmp.lt.s32.totalorder %s253_s16, %s253_s16 }
  0x4a   : > { %p7627_p9 = scmp.ne.s32.totalorder %s253_s16, %s7626_s11  ;;  %p7635_p2 = scmp.lt.s32.totalorder %s7626_s11, %s7626_s11 }
  0x4c   : > { %p7629_p12 = pnand %p7627_p9, %p7864_p13  ;;  %p7636_p4 = por %p7635_p2, %p7634_p1 }
  0x4e   : > { %p7630_p0 = pneg %p7629_p12 }
  0x50   : > { %p7637_p8 = pnand %p7636_p4, %p7630_p0 }
  0x52   : > { %7640 = shalt.err (!%p7637_p8)
}
  0x53   : > { %7273 = dma.hbm_to_vmem [thread:$0]  (!%p7848_p11), %s10087_s5, 1024, %s253_s16, [#allocation10], %s7750_s13, %s7750_s13, %s7751_s15  }
  0x54   : > { %s7937_s22 = sadd.s32 1, %s7745_s27   ;;  %s32_s17 = sadd.s32 1, %s7741_s26 }
  0x55   : > { %s29_s12 = ssub.s32 %s7745_s27, %s7937_s22  ;;  %p39_p8 = scmp.ne.s32.totalorder %s7741_s26, %s7737_s25 }
  0x56   : > { %p30_p4 = scmp.eq.s32.totalorder %s29_s12, 0  ;;  %p40_p13 = scmp.eq.s32.totalorder %s7745_s27, 0 }
  0x57   : > { %p7285_p6 = scmp.lt.s32.totalorder %s7745_s27, 2  ;;  %p10116_p3 = scmp.eq.s32.totalorder %s7818_s28, 1 }
  0x58   : > { %s7947_s18 = scalar_select %p30_p4, %s7741_s26, %s32_s17  }
  0x59   : > { %p41_p10 = por %p40_p13, %p39_p8  ;;  %p7951_p5 = por %p10116_p3, %p39_p8 }
  0x5a   : > { %s269_s20 = sand.u32 1, %s7741_s26   ;;  %s6407_s21 = sshll.u32 %s7745_s27, 11 }
  0x5b   : > { %s6027_s16 = sshll.u32 %s269_s20, 7  ;;  %s7960_s10 = scalar_lea.hbm %s10082_s0, %s6407_s21 }
  0x5c   : > { %s273_s11 = scalar_lea.vmem [#allocation3], %s6027_s16  ;;  %p7962_p11 = pnand %p7285_p6, %p41_p10 }
  0x5d   : > { %s280_s14 = sshll.u32 %s273_s11, 4  ;;  %s7968_s12 = scalar_lea.sflag [#allocation4], %s269_s20  ;;  %s7966_s14 = int_to_ptr.vmem [resolvable:$true] %s280_s14 }
  0x5e   : > { %s7641_s17 = scalar_lea.hbm %s7960_s10, 2048  ;;  %p7643_p9 = pneg %p7962_p11 }
  0x5f   : > { %p7642_p7 = scmp.ne.s32.totalorder %s7960_s10, %s7641_s17  ;;  %s7646_s23 = scalar_lea.hbm %s10082_s0, 4096 }
  0x60   : > { %p7647_p1 = scmp.lt.u32.totalorder %s7960_s10, %s10082_s0  ;;  %p7648_p2 = scmp.lt.u32.totalorder %s7646_s23, %s7641_s17 }
  0x61   : > { %p7644_p12 = pnand %p7643_p9, %p7642_p7  ;;  %p7650_p8 = scmp.lt.u32.totalorder %s7641_s17, %s7960_s10 }
  0x62   : > { %p7649_p4 = por %p7648_p2, %p7647_p1 }
  0x63   : > { %p7645_p0 = pneg %p7644_p12 }
  0x64   : > { %p7651_p13 = por %p7650_p8, %p7649_p4 }
  0x66   : > { %p7652_p6 = pnand %p7651_p13, %p7645_p0 }
  0x68   : > { %7655 = shalt.err (!%p7652_p6)
}
  0x69   : > { %s7656_s20 = scalar_lea.vmem %s7966_s14, 2048  ;;  %s7752_s21 = smov [#allocation3]  }
  0x6a   : > { %p7657_p10 = scmp.ne.s32.totalorder %s7966_s14, %s7656_s20  ;;  %s7661_s16 = sshll.u32 %s7752_s21, 4  ;;  %s7662_s16 = int_to_ptr.vmem [resolvable:$false] %s7661_s16 }
  0x6b   : > { %s7663_s29 = scalar_lea.vmem %s7662_s16, 4096  ;;  %p7664_p12 = scmp.lt.s32.totalorder %s7966_s14, %s7662_s16 }
  0x6c   : > { %p7659_p3 = pnand %p7657_p10, %p7643_p9  ;;  %p7665_p1 = scmp.lt.s32.totalorder %s7663_s29, %s7656_s20 }
  0x6e   : > { %p7660_p7 = pneg %p7659_p3  ;;  %p7666_p2 = por %p7665_p1, %p7664_p12 }
  0x70   : > { %p7667_p4 = pnand %p7666_p2, %p7660_p7 }
  0x72   : > { %7670 = shalt.err (!%p7667_p4)
}
  0x73   : > { %7277 = dma.hbm_to_vmem [thread:$0]  (!%p7962_p11), %s7960_s10, 2048, %s7966_s14, %s7968_s12, %s7750_s13, %s7750_s13, %s7751_s15  }
  0x74   : > { %p10119_p9 = scmp.ne.s32.totalorder %s10113_s9, 0 }
  0x76   : > { %292 = sbr.rel (%p10119_p9) target bundleno = 1276 (0x4fc), region = 48 }
  0x7d   : > { %s8002_s17 = sand.u32 1, %s7737_s25   ;;  %p10120_p0 = scmp.ne.s32.totalorder %s10110_s30, 0 }
  0x7e   : > { %s6031_s23 = sshll.u32 %s8002_s17, 7  ;;  %s295_s11 = scalar_lea.sflag [#allocation4], %s8002_s17 }
  0x7f   : > { %s8008_s8 = scalar_lea.vmem [#allocation3], %s6031_s23 }
  0x80   : > { %7716 = dma.done.wait (%p10120_p0), %s295_s11, 2048  }
  0x81   : > { %7718 = vsyncadd (%p10120_p0), %s295_s11, 4294965248  ;;  %p10121_p11 = scmp.eq.s32.totalorder %s7818_s28, 0 }
  0x83   : > { %7720 = dma.done.wait (%p10121_p11), [#allocation7], 10240   ;;  %p10122_p8 = pmov %p10121_p11 }
  0x85   : > { %7722 = vsyncadd (%p10122_p8), [#allocation7], 4294957056  ;;  %p10123_p13 = pmov %p10122_p8 }
  0x86   : > { %p10124_p6 = pmov %p10122_p8 }
  0x87   : > { %7724 = dma.done.wait (%p10123_p13), [#allocation10], 1024  }
  0x88   : > { %7726 = vsyncadd (%p10124_p6), [#allocation10], 4294966272  ;;  %v7753_v0 = vmov 0   ;;  %v7330_v1 = vld [vmem:[#allocation6] sm:$0xff]   ;;  %v7331_v2 = vld [vmem:[#allocation6 + $0x8] sm:$0xff]   ;;  %vm1891_vm3 = vcmask 1042432  }
  0x89   : > { %348 = vst [vmem:[#allocation2 + $0x18] sm:$0xf] %v7753_v0  ;;  %342 = vst [vmem:[#allocation2] sm:$0xf] %v7753_v0  ;;  %7088 = vmatprep.subr.bf16.mxu0 %v7330_v1  ;;  %7232 = vmatprep.subr.bf16.mxu1 %v7330_v1  ;;  %v7332_v3 = vld [vmem:[#allocation6 + $0x10] sm:$0xff]   ;;  %v7333_v4 = vld [vmem:[#allocation6 + $0x18] sm:$0xff]  }
  0x8a   : > { %343 = vst [vmem:[#allocation2 + $0x4] sm:$0xf] %v7753_v0  ;;  %344 = vst [vmem:[#allocation2 + $0x8] sm:$0x1] %v7753_v0  ;;  %7089 = vmatpush3.bf16.msra.mxu0 %v7330_v1  ;;  %7240 = vmatpush3.bf16.msra.mxu1 %v7330_v1  ;;  %v396_v5 = vld [vmem:[%s8008_s8] sm:$0xff]   ;;  %v7335_v8 = vld [vmem:[#allocation6 + $0x28] sm:$0xff]  }
  0x8b   : > { %345 = vst [vmem:[#allocation2 + $0xc] sm:$0xf] %v7753_v0  ;;  %346 = vst [vmem:[#allocation2 + $0x10] sm:$0xf] %v7753_v0  ;;  %7090 = vmatprep.subr.bf16.mxu0 %v7331_v2  ;;  %7233 = vmatprep.subr.bf16.mxu1 %v7331_v2  ;;  %v7334_v6 = vld [vmem:[#allocation6 + $0x20] sm:$0xff]   ;;  %v7336_v9 = vld [vmem:[#allocation6 + $0x30] sm:$0xff]  }
  0x8c   : > { %347 = vst [vmem:[#allocation2 + $0x14] sm:$0x1] %v7753_v0  ;;  %349 = vst [vmem:[#allocation2 + $0x1c] sm:$0xf] %v7753_v0  ;;  %7104 = vmatprep.mubr.bf16.mxu0 %v396_v5  ;;  %v412_v7 = vld [vmem:[%s8008_s8 + $0x40] sm:$0xff]   ;;  %v7337_v10 = vld [vmem:[#allocation6 + $0x38] sm:$0xff]  }
  0x8d   : > { %350 = vst [vmem:[#allocation2 + $0x20] sm:$0x1] %v7753_v0  ;;  %351 = vst [vmem:[#allocation2 + $0x24] sm:$0xf] %v7753_v0  ;;  %7120 = vmatprep.mubr.bf16.mxu1 %v412_v7  ;;  %v398_v11 = vld [vmem:[%s8008_s8 + $0x8] sm:$0xff]   ;;  %v400_v12 = vld [vmem:[%s8008_s8 + $0x10] sm:$0xff]  }
  0x8e   : > { %352 = vst [vmem:[#allocation2 + $0x28] sm:$0xf] %v7753_v0  ;;  %353 = vst [vmem:[#allocation2 + $0x2c] sm:$0x1] %v7753_v0  ;;  %7091 = vmatpush3.bf16.msra.mxu0 %v7331_v2  ;;  %7241 = vmatpush3.bf16.msra.mxu1 %v7331_v2  ;;  %v414_v13 = vld [vmem:[%s8008_s8 + $0x48] sm:$0xff]   ;;  %v7356_v14 = vld [vmem:[#allocation8 + $0xc0] sm:$0xff]  }
  0x8f   : > { %354 = vst [vmem:[#allocation2 + $0x30] sm:$0xf] %v7753_v0  ;;  %355 = vst [vmem:[#allocation2 + $0x34] sm:$0xf] %v7753_v0  ;;  %7092 = vmatprep.subr.bf16.mxu0 %v7332_v3  ;;  %7234 = vmatprep.subr.bf16.mxu1 %v7332_v3  ;;  %v416_v15 = vld [vmem:[%s8008_s8 + $0x50] sm:$0xff]   ;;  %v7354_v16 = vld [vmem:[#allocation8 + $0x40] sm:$0xff]  }
  0x90   : > { %356 = vst [vmem:[#allocation2 + $0x38] sm:$0x1] %v7753_v0  ;;  %357 = vst [vmem:[#allocation2 + $0x3c] sm:$0xf] %v7753_v0  ;;  %v7355_v17 = vld [vmem:[#allocation8] sm:$0xff]   ;;  %v402_v19 = vld [vmem:[%s8008_s8 + $0x18] sm:$0xff]  }
  0x91   : > { %358 = vst [vmem:[#allocation2 + $0x40] sm:$0xf] %v7753_v0  ;;  %359 = vst [vmem:[#allocation2 + $0x44] sm:$0x1] %v7753_v0  ;;  %v7357_v18 = vld [vmem:[#allocation8 + $0x80] sm:$0xff]   ;;  %v418_v21 = vld [vmem:[%s8008_s8 + $0x58] sm:$0xff]  }
  0x92   : > { %360 = vst [vmem:[#allocation2 + $0x48] sm:$0xf] %v7753_v0  ;;  %361 = vst [vmem:[#allocation2 + $0x4c] sm:$0xf] %v7753_v0  ;;  %7093 = vmatpush3.bf16.msra.mxu0 %v7332_v3  ;;  %7242 = vmatpush3.bf16.msra.mxu1 %v7332_v3  ;;  %v404_v20 = vld [vmem:[%s8008_s8 + $0x20] sm:$0xff]   ;;  %v406_v23 = vld [vmem:[%s8008_s8 + $0x28] sm:$0xff]  }
  0x93   : > { %362 = vst [vmem:[#allocation2 + $0x50] sm:$0x1] %v7753_v0  ;;  %363 = vst [vmem:[#allocation2 + $0x54] sm:$0xf] %v7753_v0  ;;  %7094 = vmatprep.subr.bf16.mxu0 %v7333_v4  ;;  %7235 = vmatprep.subr.bf16.mxu1 %v7333_v4  ;;  %v420_v22 = vld [vmem:[%s8008_s8 + $0x60] sm:$0xff]   ;;  %v408_v24 = vld [vmem:[%s8008_s8 + $0x30] sm:$0xff]  }
  0x94   : > { %364 = vst [vmem:[#allocation2 + $0x58] sm:$0xf] %v7753_v0  ;;  %365 = vst [vmem:[#allocation2 + $0x5c] sm:$0x1] %v7753_v0  ;;  %v422_v25 = vld [vmem:[%s8008_s8 + $0x68] sm:$0xff]   ;;  %v424_v26 = vld [vmem:[%s8008_s8 + $0x70] sm:$0xff]  }
  0x95   : > { %366 = vst [vmem:[#allocation2 + $0x60] sm:$0xf] %v7753_v0  ;;  %367 = vst [vmem:[#allocation2 + $0x64] sm:$0xf] %v7753_v0  ;;  %v410_v27 = vld [vmem:[%s8008_s8 + $0x38] sm:$0xff]   ;;  %v7358_v29 = vld [vmem:[#allocation8 + $0x48] sm:$0xff]  }
  0x96   : > { %368 = vst [vmem:[#allocation2 + $0x68] sm:$0x1] %v7753_v0  ;;  %369 = vst [vmem:[#allocation2 + $0x6c] sm:$0xf] %v7753_v0  ;;  %7095 = vmatpush3.bf16.msra.mxu0 %v7333_v4  ;;  %7243 = vmatpush3.bf16.msra.mxu1 %v7333_v4  ;;  %v426_v28 = vld [vmem:[%s8008_s8 + $0x78] sm:$0xff]   ;;  %v7359_v30 = vld [vmem:[#allocation8 + $0x8] sm:$0xff]  }
  0x97   : > { %370 = vst [vmem:[#allocation2 + $0x70] sm:$0xf] %v7753_v0  ;;  %371 = vst [vmem:[#allocation2 + $0x74] sm:$0x1] %v7753_v0  ;;  %7096 = vmatprep.subr.bf16.mxu0 %v7334_v6  ;;  %7236 = vmatprep.subr.bf16.mxu1 %v7334_v6  ;;  %v7360_v31 = vld [vmem:[#allocation8 + $0xc8] sm:$0xff]   ;;  %v7362_v33 = vld [vmem:[#allocation8 + $0x50] sm:$0xff]  }
  0x98   : > { %372 = vst [vmem:[#allocation2 + $0x78] sm:$0xf] %v7753_v0  ;;  %373 = vst [vmem:[#allocation2 + $0x7c] sm:$0xf] %v7753_v0  ;;  %v7361_v32 = vld [vmem:[#allocation8 + $0x88] sm:$0xff]   ;;  %v7363_v34 = vld [vmem:[#allocation8 + $0x10] sm:$0xff]  }
  0x99   : > { %374 = vst [vmem:[#allocation2 + $0x80] sm:$0x1] %v7753_v0  ;;  %375 = vst [vmem:[#allocation2 + $0x84] sm:$0xf] %v7753_v0  ;;  %v7364_v35 = vld [vmem:[#allocation8 + $0xd0] sm:$0xff]   ;;  %v7366_v37 = vld [vmem:[#allocation8 + $0x58] sm:$0xff]  }
  0x9a   : > { %376 = vst [vmem:[#allocation2 + $0x88] sm:$0xf] %v7753_v0  ;;  %377 = vst [vmem:[#allocation2 + $0x8c] sm:$0x1] %v7753_v0  ;;  %7097 = vmatpush3.bf16.msra.mxu0 %v7334_v6  ;;  %7244 = vmatpush3.bf16.msra.mxu1 %v7334_v6  ;;  %v7365_v36 = vld [vmem:[#allocation8 + $0x90] sm:$0xff]   ;;  %v7367_v38 = vld [vmem:[#allocation8 + $0x18] sm:$0xff]  }
  0x9b   : > { %378 = vst [vmem:[#allocation2 + $0x90] sm:$0xf] %v7753_v0  ;;  %379 = vst [vmem:[#allocation2 + $0x94] sm:$0xf] %v7753_v0  ;;  %7098 = vmatprep.subr.bf16.mxu0 %v7335_v8  ;;  %7237 = vmatprep.subr.bf16.mxu1 %v7335_v8  ;;  %v7368_v39 = vld [vmem:[#allocation8 + $0xd8] sm:$0xff]   ;;  %v7370_v41 = vld [vmem:[#allocation8 + $0x60] sm:$0xff]  }
  0x9c   : > { %380 = vst [vmem:[#allocation2 + $0x98] sm:$0x1] %v7753_v0  ;;  %381 = vst [vmem:[#allocation2 + $0x9c] sm:$0xf] %v7753_v0  ;;  %v7369_v40 = vld [vmem:[#allocation8 + $0x98] sm:$0xff]   ;;  %v7371_v42 = vld [vmem:[#allocation8 + $0x20] sm:$0xff]  }
  0x9d   : > { %382 = vst [vmem:[#allocation2 + $0xa0] sm:$0xf] %v7753_v0  ;;  %383 = vst [vmem:[#allocation2 + $0xa4] sm:$0x1] %v7753_v0  ;;  %v7372_v43 = vld [vmem:[#allocation8 + $0xe0] sm:$0xff]   ;;  %v7374_v45 = vld [vmem:[#allocation8 + $0x68] sm:$0xff]  }
  0x9e   : > { %384 = vst [vmem:[#allocation2 + $0xa8] sm:$0xf] %v7753_v0  ;;  %385 = vst [vmem:[#allocation2 + $0xac] sm:$0xf] %v7753_v0  ;;  %7099 = vmatpush3.bf16.msra.mxu0 %v7335_v8  ;;  %7245 = vmatpush3.bf16.msra.mxu1 %v7335_v8  ;;  %v7373_v44 = vld [vmem:[#allocation8 + $0xa0] sm:$0xff]   ;;  %v7375_v46 = vld [vmem:[#allocation8 + $0x28] sm:$0xff]  }
  0x9f   : > { %386 = vst [vmem:[#allocation2 + $0xb0] sm:$0x1] %v7753_v0  ;;  %387 = vst [vmem:[#allocation2 + $0xb4] sm:$0xf] %v7753_v0  ;;  %7100 = vmatprep.subr.bf16.mxu0 %v7336_v9  ;;  %7238 = vmatprep.subr.bf16.mxu1 %v7336_v9  ;;  %v1392_v47 = vld [vmem:[#allocation2] sm:$0xf] }
  0xa0   : > { %388 = vst [vmem:[#allocation2 + $0xb8] sm:$0xf] %v7753_v0  ;;  %389 = vst [vmem:[#allocation2 + $0xbc] sm:$0x1] %v7753_v0  ;;  %v1393_v48 = vld [vmem:[#allocation2 + $0x4] sm:$0xf] }
  0xa1   : > { %390 = vst [vmem:[#allocation2 + $0xc0] sm:$0xf] %v7753_v0  ;;  %391 = vst [vmem:[#allocation2 + $0xc4] sm:$0xf] %v7753_v0  ;;  %v7376_v49 = vld [vmem:[#allocation8 + $0xe8] sm:$0xff]   ;;  %v1444_v50 = vshrl.u32 %v1392_v47, 16 }
  0xa2   : > { %392 = vst [vmem:[#allocation2 + $0xc8] sm:$0x1] %v7753_v0  ;;  %393 = vst [vmem:[#allocation2 + $0xcc] sm:$0xf] %v7753_v0  ;;  %7101 = vmatpush3.bf16.msra.mxu0 %v7336_v9  ;;  %7246 = vmatpush3.bf16.msra.mxu1 %v7336_v9  ;;  %v1447_v51 = vshll.u32 %v1392_v47, 16  ;;  %v1453_v52 = vshll.u32 %v1393_v48, 16 }
  0xa3   : > { %394 = vst [vmem:[#allocation2 + $0xd0] sm:$0xf] %v7753_v0  ;;  %395 = vst [vmem:[#allocation2 + $0xd4] sm:$0x1] %v7753_v0  ;;  %7102 = vmatprep.subr.bf16.mxu0 %v7337_v10  ;;  %7239 = vmatprep.subr.bf16.mxu1 %v7337_v10  ;;  %v7377_v53 = vld [vmem:[#allocation8 + $0xa8] sm:$0xff]   ;;  %v1457_v54 = vshrl.u32 %v1393_v48, 16 }
  0xa4   : > { %v7378_v55 = vld [vmem:[#allocation8 + $0x70] sm:$0xff]   ;;  %v1446_v56 = vrot.slane %v1444_v50, 4  ;;  %v1449_v57 = vrot.slane %v1447_v51, 5  ;;  %v1455_v58 = vrot.slane %v1453_v52, 5  ;;  %v7382_v3 = vld [vmem:[#allocation8 + $0x78] sm:$0xff]   ;;  %vm1892_vm4 = vcmask 1046532  }
  0xa5   : > { %v7379_v59 = vld [vmem:[#allocation8 + $0x30] sm:$0xff]   ;;  %v1459_v61 = vrot.slane %v1457_v54, 4  ;;  %vm1440_vm0 = vsmask.f32 3328  ;;  %vm1441_vm1 = vsmask.f32 7440  ;;  %vm8046_vm5 = vmor %vm1891_vm3, %vm1892_vm4 }
  0xa6   : > { %7103 = vmatpush3.bf16.msra.mxu0 %v7337_v10  ;;  %7247 = vmatpush3.bf16.msra.mxu1 %v7337_v10  ;;  %v1424_v60 = vld [vmem:[#allocation2 + $0x8] sm:$0x1]  ;;  %v1450_v63 = vor.u32 %v1449_v57, %v1446_v56  ;;  %v7383_v5 = vld [vmem:[#allocation8 + $0x38] sm:$0xff]   ;;  %vm8038_vm2 = vmor %vm1440_vm0, %vm1441_vm1  ;;  %vm1275_vm6 = vcmask 1043456   ;;  %vm1276_vm7 = vsmask.f32 7938 }
  0xa7   : > { %6704 = vmatprep.subr.bf16.mxu0 %v7356_v14  ;;  %6592 = vmatprep.subr.bf16.mxu1 %v7354_v16  ;;  %v7380_v62 = vld [vmem:[#allocation8 + $0xf0] sm:$0xff]   ;;  %v1463_v0 = vshll.u32 %v1424_v60, 16  ;;  %v1460_v2 = vor.u32 %v1459_v61, %v1455_v58  ;;  %v7384_v9 = vld [vmem:[#allocation8 + $0xf8] sm:$0xff]   ;;  %vm951_vm8 = vsmask.f32 256  ;;  %vm1282_vm10 = vcmask 1040384   ;;  %vm8106_vm11 = vmand %vm1275_vm6, %vm1276_vm7 }
  0xa8   : > { %v7381_v1 = vld [vmem:[#allocation8 + $0xb0] sm:$0xff]   ;;  %v1451_v4 = vrot.slane %v1450_v63, 4  ;;  %v7385_v14 = vld [vmem:[#allocation8 + $0xb8] sm:$0xff]   ;;  %vm952_vm9 = vsmask.f32 4368  ;;  %vm8121_vm13 = vmand %vm1282_vm10, %vm951_vm8  ;;  %s9951_s10 = scalar_lea.vmem [#allocation11], %s6031_s23 }
  0xa9   : > { %7105 = vmatmul.mubr.bf16.vlgmr.msra.gmra.mrb[0].mxu0 %v398_v11  ;;  %7121 = vmatmul.mubr.bf16.vlgmr.msra.gmra.mrb[0].mxu1 %v414_v13  ;;  %v1461_v7 = vrot.slane %v1460_v2, 4  ;;  %v1465_v8 = vrot.slane %v1463_v0, 5  ;;  %v1896_v11 = vrot.slane %v1393_v48, 5  ;;  %v1899_v13 = vrot.slane %v1424_v60, 5  ;;  %vm8115_vm12 = vmor %vm951_vm8, %vm952_vm9  ;;  %s6472_s23 = sshll.u32 %s7818_s28, 11  ;;  %s5906_s28 = scalar_lea.sflag [#allocation5], %s8002_s17 }
  0xaa   : > { %7108 = vmatprep.mubr.bf16.mxu0 %v400_v12  ;;  %7124 = vmatprep.mubr.bf16.mxu1 %v416_v15  ;;  %v1456_v10 = vsel %vm8038_vm2, %v1451_v4, %v1455_v58  ;;  %v1827_v15 = vld [vmem:[#allocation2] sm:$0xe]  ;;  %s10034_s20 = scalar_lea.hbm %s10089_s7, %s6472_s23  ;;  %s7754_s16 = smov [#allocation11]  }
  0xab   : > { %6593 = vmatpush3.bf16.msra.mxu1 %v7355_v17  ;;  %6705 = vmatpush3.bf16.msra.mxu0 %v7357_v18  ;;  %v1466_v12 = vsel %vm8038_vm2, %v1461_v7, %v1465_v8  ;;  %v6142_v17 = vcombine.low %v1392_v47, %v1393_v48  ;;  %v6094_v18 = vrot.slane %v1827_v15, 9  ;;  %s7675_s29 = sshll.u32 %s7754_s16, 4  ;;  %s7676_s29 = int_to_ptr.vmem [resolvable:$false] %s7675_s29 }
  0xac   : > { %6594 = vmatprep.subr.bf16.mxu1 %v7358_v29  ;;  %6706 = vmatprep.subr.bf16.mxu0 %v7360_v31  ;;  %v6158_v16 = vcombine.low %v1456_v10, %v1466_v12  ;;  %v7402_v29 = vld [vmem:[#allocation8 + $0x110] sm:$0xff]   ;;  %v7408_v31 = vld [vmem:[#allocation8 + $0x118] sm:$0xff]   ;;  %s7677_s11 = scalar_lea.vmem %s7676_s29, 4096 }
  0xaf   : > { %6595 = vmatpush3.bf16.msra.mxu1 %v7359_v30  ;;  %6707 = vmatpush3.bf16.msra.mxu0 %v7361_v32  ;;  %v7405_v30 = vld [vmem:[#allocation8 + $0x158] sm:$0xff]   ;;  %v8063_v32 = vld [vmem:[%s10084_s2] ss:$0 sm:$0xff] }
  0xb0   : > { %6596 = vmatprep.subr.bf16.mxu1 %v7362_v33  ;;  %6708 = vmatprep.subr.bf16.mxu0 %v7364_v35 }
  0xb1   : > { %7109 = vmatmul.mubr.bf16.gmra.mrb[4].mxu0 %v402_v19  ;;  %7125 = vmatmul.mubr.bf16.gmra.mrb[4].mxu1 %v418_v21  ;;  %v1898_v19 = vrot.slane %v1896_v11, 4  ;;  %v8052_v21 = vsel %vm8046_vm5, %v6094_v18, %v1896_v11 }
  0xb2   : > { %7112 = vmatprep.mubr.bf16.mxu0 %v404_v20  ;;  %7128 = vmatprep.mubr.bf16.mxu1 %v420_v22 }
  0xb3   : > { %6597 = vmatpush3.bf16.msra.mxu1 %v7363_v34  ;;  %6709 = vmatpush3.bf16.msra.mxu0 %v7365_v36  ;;  %v8056_v22 = vsel %vm8046_vm5, %v1898_v19, %v1899_v13  ;;  %v8068_v34 = vld [vmem:[%s10084_s2 + $0x1] ss:$0 sm:$0xff] }
  0xb4   : > { %6598 = vmatprep.subr.bf16.mxu1 %v7366_v37  ;;  %6710 = vmatprep.subr.bf16.mxu0 %v7368_v39 }
  0xb7   : > { %6599 = vmatpush3.bf16.msra.mxu1 %v7367_v38  ;;  %6711 = vmatpush3.bf16.msra.mxu0 %v7369_v40 }
  0xb8   : > { %6600 = vmatprep.subr.bf16.mxu1 %v7370_v41  ;;  %6712 = vmatprep.subr.bf16.mxu0 %v7372_v43 }
  0xb9   : > { %7113 = vmatmul.mubr.bf16.gmra.mrb[8].mxu0 %v406_v23  ;;  %7129 = vmatmul.mubr.bf16.gmra.mrb[8].mxu1 %v422_v25  ;;  %v6174_v23 = vcombine.low %v8052_v21, %v8056_v22  ;;  %v7390_v25 = vld [vmem:[#allocation8 + $0x100] sm:$0xff]  }
  0xba   : > { %7116 = vmatprep.mubr.bf16.mxu0 %v408_v24  ;;  %7132 = vmatprep.mubr.bf16.mxu1 %v424_v26  ;;  %v7388_v24 = vld [vmem:[#allocation8 + $0x140] sm:$0xff]   ;;  %v7393_v26 = vld [vmem:[#allocation8 + $0x148] sm:$0xff]  }
  0xbb   : > { %6601 = vmatpush3.bf16.msra.mxu1 %v7371_v42  ;;  %6713 = vmatpush3.bf16.msra.mxu0 %v7373_v44 }
  0xbc   : > { %6602 = vmatprep.subr.bf16.mxu1 %v7374_v45  ;;  %6714 = vmatprep.subr.bf16.mxu0 %v7376_v49 }
  0xbf   : > { %6603 = vmatpush3.bf16.msra.mxu1 %v7375_v46  ;;  %6715 = vmatpush3.bf16.msra.mxu0 %v7377_v53 }
  0xc0   : > { %6604 = vmatprep.subr.bf16.mxu1 %v7378_v55  ;;  %6716 = vmatprep.subr.bf16.mxu0 %v7380_v62 }
  0xc1   : > { %7117 = vmatmul.mubr.bf16.gmra.mrb[12].mxu0 %v410_v27  ;;  %7133 = vmatmul.mubr.bf16.gmra.mrb[12].mxu1 %v426_v28  ;;  %v7396_v27 = vld [vmem:[#allocation8 + $0x108] sm:$0xff]   ;;  %v7399_v28 = vld [vmem:[#allocation8 + $0x150] sm:$0xff]  }
  0xc2   : > { %4455 = vmatprep.mubr.bf16.mxu1 %v6158_v16 }
  0xc3   : > { %6605 = vmatpush3.bf16.msra.mxu1 %v7379_v59  ;;  %6717 = vmatpush3.bf16.msra.mxu0 %v7381_v1 }
  0xc4   : > { %6606 = vmatprep.subr.bf16.mxu1 %v7382_v3  ;;  %6718 = vmatprep.subr.bf16.mxu0 %v7384_v9 }
  0xc7   : > { %6607 = vmatpush3.bf16.msra.mxu1 %v7383_v5  ;;  %6719 = vmatpush3.bf16.msra.mxu0 %v7385_v14 }
  0xc8   : > { %6816 = vmatprep.subr.bf16.mxu1 %v7388_v24 }
  0xca   : > { %4456 = vmatmul.mubr.bf16.vlgmr.msra.gmra.mrb[16].mxu1 %v6142_v17 }
  0xcb   : > { %6817 = vmatpush3.bf16.msra.mxu1 %v7390_v25 }
  0xcc   : > { %6818 = vmatprep.subr.bf16.mxu1 %v7393_v26 }
  0xcf   : > { %6819 = vmatpush3.bf16.msra.mxu1 %v7396_v27 }
  0xd0   : > { %6820 = vmatprep.subr.bf16.mxu1 %v7399_v28  ;;  %v1287_v28 = vld [vmem:[#allocation2 + $0x18] sm:$0xf] }
  0xd3   : > { %6821 = vmatpush3.bf16.msra.mxu1 %v7402_v29 }
  0xd4   : > { %6822 = vmatprep.subr.bf16.mxu1 %v7405_v30 }
  0xd7   : > { %6823 = vmatpush3.bf16.msra.mxu1 %v7408_v31 }
 0x17c   : > { %v7106_v33 = vpop.f32.mrb[0].mxu0  ;;  %v7122_v37 = vpop.f32.mrb[0].mxu1 }
 0x17d   : > { %v757_v35 = vmul.f32 %v7106_v33, %v8063_v32  ;;  %v622_v36 = vpop.f32.mrb[1].mxu0  ;;  %v773_v40 = vmul.f32 %v7122_v37, %v8063_v32  ;;  %v686_v41 = vpop.f32.mrb[1].mxu1 }
 0x17e   : > { %v755_v38 = vmul.f32 %v8063_v32, %v622_v36  ;;  %v7107_v39 = vpop.f32.mrb[2].mxu0  ;;  %v771_v45 = vmul.f32 %v8063_v32, %v686_v41  ;;  %v7123_v46 = vpop.f32.mrb[2].mxu1 }
 0x17f   : > { %v793_v42 = vadd.f32 %v8068_v34, %v757_v35  ;;  %v758_v43 = vmul.f32 %v7107_v39, %v8063_v32  ;;  %v625_v44 = vpop.f32.mrb[3].mxu0  ;;  %v809_v49 = vadd.f32 %v8068_v34, %v773_v40  ;;  %v774_v50 = vmul.f32 %v7123_v46, %v8063_v32  ;;  %v689_v51 = vpop.f32.mrb[3].mxu1 }
 0x180   : > { %v791_v47 = vadd.f32 %v8068_v34, %v755_v38  ;;  %v756_v48 = vmul.f32 %v8063_v32, %v625_v44  ;;  %v8082_v54 = vadd.f32 %v8068_v34, %v771_v45  ;;  %v772_v55 = vmul.f32 %v8063_v32, %v689_v51  ;;  %v1278_v38 = vld [vmem:[#allocation2 + $0xc] sm:$0xf]  ;;  %v1291_v45 = vld [vmem:[#allocation2 + $0x20] sm:$0x1]  ;;  %v1284_v51 = vld [vmem:[#allocation2 + $0x14] sm:$0x1] }
 0x181   : > { %v825_v52 = vmax.f32 %v793_v42, 0.0  ;;  %v794_v53 = vadd.f32 %v8068_v34, %v758_v43  ;;  %v841_v58 = vmax.f32 %v809_v49, 0.0  ;;  %v8088_v62 = vadd.f32 %v8068_v34, %v774_v50 }
 0x182   : > { %v823_v56 = vmax.f32 %v791_v47, 0.0  ;;  %v792_v57 = vadd.f32 %v8068_v34, %v756_v48  ;;  %v8093_v3 = vadd.f32 %v8068_v34, %v772_v55 }
 0x183   : > { %v6410_v59 = vpack.c.bf16 %v825_v52, %v825_v52  ;;  %v826_v60 = vmax.f32 %v794_v53, 0.0  ;;  %v8090_v2 = vpack.c.bf16 %v841_v58, %v841_v58 }
 0x184   : > { %v6408_v63 = vpack.c.bf16 %v823_v56, %v823_v56  ;;  %v824_v0 = vmax.f32 %v792_v57, 0.0  ;;  %v7110_v1 = vpop.f32.mrb[4].mxu0  ;;  %v8096_v10 = vpop.f32.mrb[4].mxu1 }
 0x185   : > { %v972_v4 = vshrl.u32 %v6410_v59, 16  ;;  %v975_v5 = vshll.u32 %v6410_v59, 16  ;;  %v6411_v7 = vpack.c.bf16 %v826_v60, %v826_v60  ;;  %v761_v8 = vmul.f32 %v7110_v1, %v8063_v32  ;;  %v638_v9 = vpop.f32.mrb[5].mxu0  ;;  %v8099_v16 = vpop.f32.mrb[5].mxu1 }
 0x186   : > { %v955_v11 = vshrl.u32 %v6408_v63, 16  ;;  %v958_v12 = vshll.u32 %v6408_v63, 16  ;;  %v6409_v13 = vpack.c.bf16 %v824_v0, %v824_v0  ;;  %v759_v14 = vmul.f32 %v8063_v32, %v638_v9  ;;  %v7111_v15 = vpop.f32.mrb[6].mxu0  ;;  %v8102_v26 = vpop.f32.mrb[6].mxu1 }
 0x187   : > { %v974_v17 = vrot.slane %v972_v4, 7  ;;  %v980_v18 = vshrl.u32 %v6411_v7, 16  ;;  %v983_v19 = vshll.u32 %v6411_v7, 16  ;;  %v797_v24 = vadd.f32 %v8068_v34, %v761_v8  ;;  %v641_v25 = vpop.f32.mrb[7].mxu0  ;;  %v8111_v35 = vpop.f32.mrb[7].mxu1 }
 0x188   : > { %v957_v29 = vrot.slane %v955_v11, 7  ;;  %v963_v30 = vshrl.u32 %v6409_v13, 16  ;;  %v966_v31 = vshll.u32 %v6409_v13, 16  ;;  %v795_v33 = vadd.f32 %v8068_v34, %v759_v14 }
 0x189   : > { %v977_v36 = vor.u32 %v975_v5, %v974_v17  ;;  %v978_v37 = vrot.slane %v974_v17, 4  ;;  %v982_v40 = vrot.slane %v980_v18, 7  ;;  %v829_v41 = vmax.f32 %v797_v24, 0.0 }
 0x18a   : > { %v960_v42 = vor.u32 %v958_v12, %v957_v29  ;;  %v961_v43 = vrot.slane %v957_v29, 4  ;;  %v965_v46 = vrot.slane %v963_v30, 7  ;;  %v827_v47 = vmax.f32 %v795_v33, 0.0  ;;  %v1301_v29 = vld [vmem:[#allocation2 + $0x30] sm:$0xf] }
 0x18b   : > { %v1288_v48 = vsel %vm8106_vm11, %v977_v36, %v1287_v28  ;;  %v985_v49 = vor.u32 %v983_v19, %v982_v40  ;;  %v987_v50 = vrot.slane %v982_v40, 4  ;;  %v6414_v52 = vpack.c.bf16 %v829_v41, %v829_v41  ;;  %v7411_v28 = vld [vmem:[#allocation8 + $0x1c0] sm:$0xff]   ;;  %v1294_v41 = vld [vmem:[#allocation2 + $0x24] sm:$0xf] }
 0x18c   : > { %1289 = vst [vmem:[#allocation2 + $0x18] sm:$0xf] %v1288_v48  ;;  %v1279_v53 = vsel %vm8106_vm11, %v960_v42, %v1278_v38  ;;  %v968_v55 = vor.u32 %v966_v31, %v965_v46  ;;  %v970_v56 = vrot.slane %v965_v46, 4  ;;  %v6412_v57 = vpack.c.bf16 %v827_v47, %v827_v47  ;;  %v7114_v58 = vpop.f32.mrb[8].mxu0  ;;  %v8133_v4 = vpop.f32.mrb[8].mxu1  ;;  %v7416_v38 = vld [vmem:[#allocation8 + $0x120] sm:$0xff]   ;;  %6928 = vmatprep.subr.bf16.mxu0 %v7411_v28 }
 0x18d   : > { %1280 = vst [vmem:[#allocation2 + $0xc] sm:$0xf] %v1279_v53  ;;  %v986_v59 = vsel %vm8115_vm12, %v978_v37, %v985_v49  ;;  %v1292_v60 = vsel %vm8121_vm13, %v987_v50, %v1291_v45  ;;  %v1006_v63 = vshrl.u32 %v6414_v52, 16  ;;  %v1009_v0 = vshll.u32 %v6414_v52, 16  ;;  %v654_v1 = vpop.f32.mrb[9].mxu0  ;;  %v8139_v12 = vpop.f32.mrb[9].mxu1 }
 0x18e   : > { %1290 = vst [vmem:[#allocation2 + $0x1c] sm:$0xf] %v986_v59  ;;  %1293 = vst [vmem:[#allocation2 + $0x20] sm:$0x1] %v1292_v60  ;;  %v969_v5 = vsel %vm8115_vm12, %v961_v43, %v968_v55  ;;  %v1285_v7 = vsel %vm8121_vm13, %v970_v56, %v1284_v51  ;;  %v989_v8 = vshrl.u32 %v6412_v57, 16  ;;  %v992_v9 = vshll.u32 %v6412_v57, 16 }
 0x18f   : > { %v7115_v11 = vpop.f32.mrb[10].mxu0  ;;  %1281 = vst [vmem:[#allocation2 + $0x10] sm:$0xf] %v969_v5  ;;  %1286 = vst [vmem:[#allocation2 + $0x14] sm:$0x1] %v1285_v7  ;;  %v8141_v13 = vrot.slane %v1006_v63, 7  ;;  %v762_v14 = vmul.f32 %v7111_v15, %v8063_v32  ;;  %v760_v17 = vmul.f32 %v8063_v32, %v641_v25  ;;  %v765_v18 = vmul.f32 %v7114_v58, %v8063_v32 }
 0x190   : > { %v657_v19 = vpop.f32.mrb[11].mxu0  ;;  %v8146_v24 = vpop.f32.mrb[10].mxu1  ;;  %v8148_v30 = vrot.slane %v989_v8, 7  ;;  %v763_v31 = vmul.f32 %v8063_v32, %v654_v1  ;;  %v766_v33 = vmul.f32 %v7115_v11, %v8063_v32  ;;  %v7413_v15 = vld [vmem:[#allocation8 + $0x160] sm:$0xff]  }
 0x191   : > { %v764_v36 = vmul.f32 %v8063_v32, %v657_v19  ;;  %v8153_v37 = vpop.f32.mrb[11].mxu1  ;;  %v1011_v25 = vor.u32 %v1009_v0, %v8141_v13  ;;  %v1012_v40 = vrot.slane %v8141_v13, 4  ;;  %v798_v42 = vadd.f32 %v8068_v34, %v762_v14  ;;  %6824 = vmatprep.subr.bf16.mxu1 %v7413_v15 }
 0x192   : > { %v796_v43 = vadd.f32 %v8068_v34, %v760_v17  ;;  %v994_v45 = vor.u32 %v992_v9, %v8148_v30  ;;  %v995_v46 = vrot.slane %v8148_v30, 4  ;;  %v801_v47 = vadd.f32 %v8068_v34, %v765_v18  ;;  %6825 = vmatpush3.bf16.msra.mxu1 %v7416_v38  ;;  %v1305_v18 = vld [vmem:[#allocation2 + $0x38] sm:$0x1]  ;;  %v1298_v38 = vld [vmem:[#allocation2 + $0x2c] sm:$0x1] }
 0x193   : > { %v799_v48 = vadd.f32 %v8068_v34, %v763_v31  ;;  %v1302_v49 = vsel %vm8106_vm11, %v1011_v25, %v1301_v29  ;;  %v830_v50 = vmax.f32 %v798_v42, 0.0  ;;  %v802_v52 = vadd.f32 %v8068_v34, %v766_v33 }
 0x194   : > { %v828_v51 = vmax.f32 %v796_v43, 0.0  ;;  %1303 = vst [vmem:[#allocation2 + $0x30] sm:$0xf] %v1302_v49  ;;  %v1295_v53 = vsel %vm8106_vm11, %v994_v45, %v1294_v41  ;;  %v833_v55 = vmax.f32 %v801_v47, 0.0  ;;  %v800_v57 = vadd.f32 %v8068_v34, %v764_v36  ;;  %v8169_v58 = vld [vmem:[#allocation2 + $0xc] sm:$0xf] }
 0x195   : > { %v831_v56 = vmax.f32 %v799_v48, 0.0  ;;  %1296 = vst [vmem:[#allocation2 + $0x24] sm:$0xf] %v1295_v53  ;;  %v6415_v59 = vpack.c.bf16 %v830_v50, %v830_v50  ;;  %v834_v63 = vmax.f32 %v802_v52, 0.0  ;;  %v2055_v0 = vshrl.u32 %v8169_v58, 16  ;;  %v8173_v31 = vpop.f32.mrb[12].mxu0 }
 0x196   : > { %v6413_v60 = vpack.c.bf16 %v828_v51, %v828_v51  ;;  %v6418_v1 = vpack.c.bf16 %v833_v55, %v833_v55  ;;  %v832_v7 = vmax.f32 %v800_v57, 0.0  ;;  %v2058_v8 = vshll.u32 %v8169_v58, 16  ;;  %v8175_v33 = vpop.f32.mrb[12].mxu1  ;;  %v8177_v42 = vpop.f32.mrb[13].mxu0  ;;  %v1315_v45 = vld [vmem:[#allocation2 + $0x48] sm:$0xf] }
 0x197   : > { %v6416_v5 = vpack.c.bf16 %v831_v56, %v831_v56  ;;  %v1014_v9 = vshrl.u32 %v6415_v59, 16  ;;  %v1017_v11 = vshll.u32 %v6415_v59, 16  ;;  %v6419_v25 = vpack.c.bf16 %v834_v63, %v834_v63  ;;  %v1308_v55 = vld [vmem:[#allocation2 + $0x3c] sm:$0xf]  ;;  %v8183_v56 = vpop.f32.mrb[14].mxu0 }
 0x198   : > { %v997_v14 = vshrl.u32 %v6413_v60, 16  ;;  %v1000_v17 = vshll.u32 %v6413_v60, 16  ;;  %v1040_v19 = vshrl.u32 %v6418_v1, 16  ;;  %v1043_v28 = vshll.u32 %v6418_v1, 16  ;;  %v2007_v63 = vld [vmem:[#allocation2 + $0x10] sm:$0xf] }
 0x199   : > { %v1023_v29 = vshrl.u32 %v6416_v5, 16  ;;  %v1026_v30 = vshll.u32 %v6416_v5, 16  ;;  %v1016_v36 = vrot.slane %v1014_v9, 7  ;;  %v6417_v41 = vpack.c.bf16 %v832_v7, %v832_v7  ;;  %v8188_v1 = vpop.f32.mrb[15].mxu0 }
 0x19a   : > { %v999_v15 = vrot.slane %v997_v14, 7  ;;  %v8179_v43 = vrot.slane %v1040_v19, 7  ;;  %v2057_v48 = vrot.slane %v2055_v0, 4  ;;  %v2060_v49 = vrot.slane %v2058_v8, 5 }
 0x19b   : > { %v8181_v47 = vrot.slane %v1023_v29, 7  ;;  %v1019_v50 = vor.u32 %v1017_v11, %v1016_v36  ;;  %v1021_v51 = vrot.slane %v1016_v36, 4  ;;  %v2008_v11 = vld [vmem:[#allocation2 + $0x18] sm:$0xf]  ;;  %v1048_v14 = vshrl.u32 %v6419_v25, 16  ;;  %v8205_v36 = vpop.f32.mrb[13].mxu1 }
 0x19c   : > { %v1002_v52 = vor.u32 %v1000_v17, %v999_v15  ;;  %v1004_v53 = vrot.slane %v999_v15, 4  ;;  %v1045_v57 = vor.u32 %v1043_v28, %v8179_v43  ;;  %v1046_v59 = vrot.slane %v8179_v43, 4 }
 0x19d   : > { %v1028_v60 = vor.u32 %v1026_v30, %v8181_v47  ;;  %v1020_v0 = vsel %vm8115_vm12, %v1012_v40, %v1019_v50  ;;  %v1306_v7 = vsel %vm8121_vm13, %v1021_v51, %v1305_v18  ;;  %v1051_v17 = vshll.u32 %v6419_v25, 16  ;;  %v1319_v18 = vld [vmem:[#allocation2 + $0x50] sm:$0x1]  ;;  %v7412_v30 = vld [vmem:[#allocation8 + $0x180] sm:$0xff]   ;;  %v8208_v51 = vld [vmem:[#allocation2 + $0xc] sm:$0xf] }
 0x19e   : > { %v1003_v8 = vsel %vm8115_vm12, %v995_v46, %v1002_v52  ;;  %v1299_v9 = vsel %vm8121_vm13, %v1004_v53, %v1298_v38  ;;  %1304 = vst [vmem:[#allocation2 + $0x34] sm:$0xf] %v1020_v0  ;;  %1307 = vst [vmem:[#allocation2 + $0x38] sm:$0x1] %v1306_v7  ;;  %v1316_v13 = vsel %vm8106_vm11, %v1045_v57, %v1315_v45  ;;  %v1031_v46 = vshrl.u32 %v6417_v41, 16  ;;  %v8210_v52 = vpop.f32.mrb[14].mxu1 }
 0x19f   : > { %1297 = vst [vmem:[#allocation2 + $0x28] sm:$0xf] %v1003_v8  ;;  %1300 = vst [vmem:[#allocation2 + $0x2c] sm:$0x1] %v1299_v9  ;;  %v1309_v40 = vsel %vm8106_vm11, %v1028_v60, %v1308_v55  ;;  %v1034_v19 = vshll.u32 %v6417_v41, 16  ;;  %v2061_v28 = vor.u32 %v2060_v49, %v2057_v48  ;;  %v2064_v29 = vshll.u32 %v2007_v63, 16 }
 0x1a0   : > { %1317 = vst [vmem:[#allocation2 + $0x48] sm:$0xf] %v1316_v13  ;;  %1310 = vst [vmem:[#allocation2 + $0x3c] sm:$0xf] %v1309_v40  ;;  %v1050_v15 = vrot.slane %v1048_v14, 7  ;;  %v2068_v43 = vshrl.u32 %v2007_v63, 16  ;;  %v6190_v45 = vcombine.low %v8169_v58, %v2007_v63 }
 0x1a1   : > { %v1312_v38 = vld [vmem:[#allocation2 + $0x44] sm:$0x1]  ;;  %v2079_v50 = vshrl.u32 %v2008_v11, 16  ;;  %v1029_v25 = vrot.slane %v8181_v47, 4  ;;  %v1033_v53 = vrot.slane %v1031_v46, 7  ;;  %v8213_v55 = vrot.slane %v2064_v29, 5 }
 0x1a2   : > { %v8215_v41 = vld [vmem:[#allocation2 + $0x1c] sm:$0xf]  ;;  %v2082_v48 = vshll.u32 %v2008_v11, 16  ;;  %v1053_v49 = vor.u32 %v1051_v17, %v1050_v15  ;;  %v1055_v57 = vrot.slane %v1050_v15, 4  ;;  %v8217_v60 = vrot.slane %v2061_v28, 4  ;;  %4616 = vmatprep.mubr.bf16.mxu0 %v6190_v45 }
 0x1a3   : > { %v2070_v0 = vrot.slane %v2068_v43, 4  ;;  %v8219_v58 = vld [vmem:[#allocation2 + $0x10] sm:$0xf]  ;;  %v1036_v63 = vor.u32 %v1034_v19, %v1033_v53  ;;  %v1038_v7 = vrot.slane %v1033_v53, 4  ;;  %4617 = vmatmul.mubr.bf16.vlgmr.msra.gmra.mrb[16].mxu0 %v6174_v23  ;;  %v8224_v47 = vrot.slane %v2079_v50, 4 }
 0x1a4   : > { %v8226_v8 = vrot.slane %v2082_v48, 5  ;;  %v1425_v9 = vld [vmem:[#allocation2 + $0x14] sm:$0x1]  ;;  %v1054_v13 = vsel %vm8115_vm12, %v1046_v59, %v1053_v49  ;;  %v1320_v40 = vsel %vm8121_vm13, %v1055_v57, %v1319_v18  ;;  %v6191_v17 = vcombine.low %v2008_v11, %v8215_v41  ;;  %6929 = vmatpush3.bf16.msra.mxu0 %v7412_v30  ;;  %v1828_v46 = vld [vmem:[#allocation2 + $0xc] sm:$0xe] }
 0x1a5   : > { %v2071_v14 = vor.u32 %v2070_v0, %v8213_v55  ;;  %1318 = vst [vmem:[#allocation2 + $0x4c] sm:$0xf] %v1054_v13  ;;  %1321 = vst [vmem:[#allocation2 + $0x50] sm:$0x1] %v1320_v40  ;;  %v1037_v21 = vsel %vm8115_vm12, %v1029_v25, %v1036_v63  ;;  %v1313_v22 = vsel %vm8121_vm13, %v1038_v7, %v1312_v38  ;;  %v1468_v23 = vshrl.u32 %v8208_v51, 16  ;;  %v8250_v63 = vpop.f32.mrb[15].mxu1 }
 0x1a6   : > { %v1471_v59 = vshll.u32 %v8208_v51, 16  ;;  %1311 = vst [vmem:[#allocation2 + $0x40] sm:$0xf] %v1037_v21  ;;  %1314 = vst [vmem:[#allocation2 + $0x44] sm:$0x1] %v1313_v22  ;;  %4624 = vmatprep.mubr.bf16.mxu0 %v6191_v17  ;;  %v1477_v11 = vshll.u32 %v8219_v58, 16  ;;  %v769_v0 = vmul.f32 %v8173_v31, %v8063_v32  ;;  %v767_v40 = vmul.f32 %v8063_v32, %v8177_v42 }
 0x1a7   : > { %v1481_v19 = vshrl.u32 %v8219_v58, 16  ;;  %v1487_v28 = vshll.u32 %v1425_v9, 16  ;;  %v8243_v29 = vrot.slane %v2071_v14, 4  ;;  %v1470_v30 = vrot.slane %v1468_v23, 4  ;;  %v8246_v43 = vld [vmem:[#allocation2 + $0x18] sm:$0xf] }
 0x1a8   : > { %v1473_v15 = vrot.slane %v1471_v59, 5  ;;  %v1903_v38 = vrot.slane %v8219_v58, 5  ;;  %v1479_v45 = vrot.slane %v1477_v11, 5  ;;  %v6095_v53 = vrot.slane %v1828_v46, 9  ;;  %v8256_v14 = vld [vmem:[#allocation2 + $0x1c] sm:$0xf] }
 0x1a9   : > { %v1483_v50 = vrot.slane %v1481_v19, 4  ;;  %v1489_v25 = vrot.slane %v1487_v28, 5  ;;  %v1906_v57 = vrot.slane %v1425_v9, 5  ;;  %v1492_v17 = vshrl.u32 %v8246_v43, 16  ;;  %v7419_v21 = vld [vmem:[#allocation8 + $0x1c8] sm:$0xff]  }
 0x1aa   : > { %v1474_v48 = vor.u32 %v1473_v15, %v1470_v30  ;;  %v1905_v49 = vrot.slane %v1903_v38, 4  ;;  %v1904_v13 = vsel %vm8046_vm5, %v6095_v53, %v1903_v38  ;;  %v805_v31 = vadd.f32 %v8068_v34, %v769_v0  ;;  %v8262_v23 = vld [vmem:[#allocation2 + $0x20] sm:$0x1]  ;;  %6930 = vmatprep.subr.bf16.mxu0 %v7419_v21 }
 0x1ab   : > { %v1484_v7 = vor.u32 %v1483_v50, %v1479_v45  ;;  %v1495_v59 = vshll.u32 %v8246_v43, 16  ;;  %v803_v19 = vadd.f32 %v8068_v34, %v767_v40  ;;  %v1494_v42 = vrot.slane %v1492_v17, 4  ;;  %v2010_v50 = vld [vmem:[#allocation2 + $0x24] sm:$0xf] }
 0x1ac   : > { %v1475_v22 = vrot.slane %v1474_v48, 4  ;;  %v1907_v9 = vsel %vm8046_vm5, %v1905_v49, %v1906_v57  ;;  %v837_v30 = vmax.f32 %v805_v31, 0.0  ;;  %v1501_v38 = vshll.u32 %v8256_v14, 16  ;;  %v7420_v53 = vld [vmem:[#allocation8 + $0x188] sm:$0xff]  }
 0x1ad   : > { %v1485_v46 = vrot.slane %v1484_v7, 4  ;;  %v6175_v11 = vcombine.low %v1904_v13, %v1907_v9  ;;  %v1497_v15 = vrot.slane %v1495_v59, 5  ;;  %v835_v49 = vmax.f32 %v803_v19, 0.0  ;;  %v7421_v7 = vld [vmem:[#allocation8 + $0x168] sm:$0xff]   ;;  %6931 = vmatpush3.bf16.msra.mxu0 %v7420_v53 }
 0x1ae   : > { %v1480_v28 = vsel %vm8038_vm2, %v1475_v22, %v1479_v45  ;;  %v1505_v57 = vshrl.u32 %v8256_v14, 16  ;;  %v1511_v0 = vshll.u32 %v8262_v23, 16  ;;  %v6422_v40 = vpack.c.bf16 %v837_v30, %v837_v30  ;;  %v7424_v21 = vld [vmem:[#allocation8 + $0x128] sm:$0xff]   ;;  %6826 = vmatprep.subr.bf16.mxu1 %v7421_v7 }
 0x1af   : > { %v1490_v48 = vsel %vm8038_vm2, %v1485_v46, %v1489_v25  ;;  %4625 = vmatmul.mubr.bf16.gmra.mrb[20].mxu0 %v6175_v11  ;;  %v1498_v17 = vor.u32 %v1497_v15, %v1494_v42  ;;  %v1503_v45 = vrot.slane %v1501_v38, 5  ;;  %v6143_v22 = vcombine.low %v8208_v51, %v8219_v58  ;;  %6827 = vmatpush3.bf16.msra.mxu1 %v7424_v21  ;;  %v8275_v38 = vld [vmem:[#allocation2 + $0x28] sm:$0xf] }
 0x1b0   : > { %v6159_v13 = vcombine.low %v1480_v28, %v1490_v48  ;;  %v6420_v9 = vpack.c.bf16 %v835_v49, %v835_v49  ;;  %v1507_v31 = vrot.slane %v1505_v57, 4  ;;  %v2103_v59 = vshrl.u32 %v2010_v50, 16  ;;  %v1829_v49 = vld [vmem:[#allocation2 + $0x18] sm:$0xe]  ;;  %v1329_v57 = vld [vmem:[#allocation2 + $0x60] sm:$0xf] }
 0x1b1   : > { %v1074_v25 = vshrl.u32 %v6422_v40, 16  ;;  %v1077_v46 = vshll.u32 %v6422_v40, 16  ;;  %v1499_v11 = vrot.slane %v1498_v17, 4  ;;  %v2106_v19 = vshll.u32 %v2010_v50, 16 }
 0x1b2   : > { %4463 = vmatprep.mubr.bf16.mxu1 %v6159_v13  ;;  %v1057_v28 = vshrl.u32 %v6420_v9, 16  ;;  %v1060_v30 = vshll.u32 %v6420_v9, 16  ;;  %v1508_v42 = vor.u32 %v1507_v31, %v1503_v45  ;;  %v1513_v15 = vrot.slane %v1511_v0, 5  ;;  %v7427_v31 = vld [vmem:[#allocation8 + $0x1d0] sm:$0xff]  }
 0x1b3   : > { %4464 = vmatmul.mubr.bf16.gmra.mrb[20].mxu1 %v6143_v22  ;;  %v8277_v53 = vrot.slane %v1074_v25, 7  ;;  %v1504_v51 = vsel %vm8038_vm2, %v1499_v11, %v1503_v45  ;;  %v8281_v58 = vrot.slane %v2103_v59, 4  ;;  %v8283_v48 = vrot.slane %v2106_v19, 5  ;;  %v1322_v22 = vld [vmem:[#allocation2 + $0x54] sm:$0xf]  ;;  %v7428_v59 = vld [vmem:[#allocation8 + $0x190] sm:$0xff]   ;;  %6932 = vmatprep.subr.bf16.mxu0 %v7427_v31 }
 0x1b4   : > { %v8285_v7 = vrot.slane %v1057_v28, 7  ;;  %v1509_v13 = vrot.slane %v1508_v42, 4  ;;  %v6192_v40 = vcombine.low %v2010_v50, %v8275_v38  ;;  %v770_v0 = vmul.f32 %v8183_v56, %v8063_v32  ;;  %6933 = vmatpush3.bf16.msra.mxu0 %v7428_v59  ;;  %v1333_v45 = vld [vmem:[#allocation2 + $0x68] sm:$0x1] }
 0x1b5   : > { %v1079_v17 = vor.u32 %v1077_v46, %v8277_v53  ;;  %v1080_v21 = vrot.slane %v8277_v53, 4  ;;  %v768_v9 = vmul.f32 %v8063_v32, %v8188_v1  ;;  %v6096_v11 = vrot.slane %v1829_v49, 9  ;;  %v8299_v46 = vld [vmem:[#allocation2 + $0x30] sm:$0xf]  ;;  %v8305_v1 = vld [vmem:[#allocation2 + $0x34] sm:$0xf] }
 0x1b6   : > { %v1062_v25 = vor.u32 %v1060_v30, %v8285_v7  ;;  %v1514_v50 = vsel %vm8038_vm2, %v1509_v13, %v1513_v15  ;;  %4632 = vmatprep.mubr.bf16.mxu0 %v6192_v40  ;;  %v806_v56 = vadd.f32 %v8068_v34, %v770_v0  ;;  %v1910_v32 = vrot.slane %v8256_v14, 5  ;;  %10135 = vst [vmem:[#allocation17_spill] sm:$0xff] %v8305_v1  ;;  %v7429_v30 = vld [vmem:[#allocation8 + $0x170] sm:$0xff]  }
 0x1b7   : > { %v1330_v19 = vsel %vm8106_vm11, %v1079_v17, %v1329_v57  ;;  %v6160_v28 = vcombine.low %v1504_v51, %v1514_v50  ;;  %v804_v42 = vadd.f32 %v8068_v34, %v768_v9  ;;  %v6144_v40 = vcombine.low %v8246_v43, %v8256_v14  ;;  %v8312_v57 = vld [vmem:[#allocation2 + $0x24] sm:$0xf]  ;;  %v7432_v34 = vld [vmem:[#allocation8 + $0x130] sm:$0xff]   ;;  %6828 = vmatprep.subr.bf16.mxu1 %v7429_v30 }
 0x1b8   : > { %1331 = vst [vmem:[#allocation2 + $0x60] sm:$0xf] %v1330_v19  ;;  %v1323_v49 = vsel %vm8106_vm11, %v1062_v25, %v1322_v22  ;;  %v838_v13 = vmax.f32 %v806_v56, 0.0  ;;  %v1912_v0 = vrot.slane %v1910_v32, 4  ;;  %v1913_v17 = vrot.slane %v8262_v23, 5  ;;  %6829 = vmatpush3.bf16.msra.mxu1 %v7432_v34 }
 0x1b9   : > { %1324 = vst [vmem:[#allocation2 + $0x54] sm:$0xf] %v1323_v49  ;;  %4471 = vmatprep.mubr.bf16.mxu1 %v6160_v28  ;;  %v836_v51 = vmax.f32 %v804_v42, 0.0  ;;  %v2127_v9 = vshrl.u32 %v8299_v46, 16  ;;  %v1911_v22 = vsel %vm8046_vm5, %v6096_v11, %v1910_v32  ;;  %v2130_v43 = vshll.u32 %v8299_v46, 16 }
 0x1ba   : > { %v6423_v31 = vpack.c.bf16 %v838_v13, %v838_v13  ;;  %v1914_v25 = vsel %vm8046_vm5, %v1912_v0, %v1913_v17  ;;  %v6193_v50 = vcombine.low %v8299_v46, %v8305_v1  ;;  %v8324_v23 = vld [vmem:[#allocation2 + $0x28] sm:$0xf]  ;;  %v1427_v56 = vld [vmem:[#allocation2 + $0x2c] sm:$0x1]  ;;  %v1516_v19 = vshrl.u32 %v8312_v57, 16 }
 0x1bb   : > { %4472 = vmatmul.mubr.bf16.gmra.mrb[24].mxu1 %v6144_v40  ;;  %v6421_v59 = vpack.c.bf16 %v836_v51, %v836_v51  ;;  %v6176_v42 = vcombine.low %v1911_v22, %v1914_v25  ;;  %v8327_v32 = vrot.slane %v2127_v9, 4  ;;  %v1830_v30 = vld [vmem:[#allocation2 + $0x24] sm:$0xe]  ;;  %v1519_v51 = vshll.u32 %v8312_v57, 16 }
 0x1bc   : > { %v1082_v28 = vshrl.u32 %v6423_v31, 16  ;;  %v1085_v11 = vshll.u32 %v6423_v31, 16  ;;  %v1518_v40 = vrot.slane %v1516_v19, 4  ;;  %v1525_v46 = vshll.u32 %v8324_v23, 16 }
 0x1bd   : > { %v1065_v49 = vshrl.u32 %v6421_v59, 16  ;;  %v1068_v13 = vshll.u32 %v6421_v59, 16  ;;  %4633 = vmatmul.mubr.bf16.gmra.mrb[24].mxu0 %v6176_v42  ;;  %v1529_v17 = vshrl.u32 %v8324_v23, 16  ;;  %v1535_v14 = vshll.u32 %v1427_v56, 16  ;;  %v1326_v59 = vld [vmem:[#allocation2 + $0x5c] sm:$0x1] }
 0x1be   : > { %v1084_v0 = vrot.slane %v1082_v28, 7  ;;  %4640 = vmatprep.mubr.bf16.mxu0 %v6193_v50  ;;  %v1521_v31 = vrot.slane %v1519_v51, 5  ;;  %v6097_v22 = vrot.slane %v1830_v30, 9  ;;  %v1917_v9 = vrot.slane %v8324_v23, 5 }
 0x1bf   : > { %v1067_v34 = vrot.slane %v1065_v49, 7  ;;  %v1527_v19 = vrot.slane %v1525_v46, 5  ;;  %v1531_v5 = vrot.slane %v1529_v17, 4  ;;  %v1537_v15 = vrot.slane %v1535_v14, 5  ;;  %v8341_v49 = vld [vmem:[#allocation2 + $0x30] sm:$0xf] }
 0x1c0   : > { %v1087_v25 = vor.u32 %v1085_v11, %v1084_v0  ;;  %v1089_v18 = vrot.slane %v1084_v0, 4  ;;  %v1522_v42 = vor.u32 %v1521_v31, %v1518_v40  ;;  %v1918_v11 = vsel %vm8046_vm5, %v6097_v22, %v1917_v9  ;;  %v7436_v0 = vld [vmem:[#allocation8 + $0x198] sm:$0xff]  }
 0x1c1   : > { %v1070_v61 = vor.u32 %v1068_v13, %v1067_v34  ;;  %v1072_v28 = vrot.slane %v1067_v34, 4  ;;  %v1532_v30 = vor.u32 %v1531_v5, %v1527_v19  ;;  %v10136_v13 = vrot.slane %v8285_v7, 4  ;;  %v1343_v7 = vld [vmem:[#allocation2 + $0x78] sm:$0xf] }
 0x1c2   : > { %v1088_v1 = vsel %vm8115_vm12, %v1080_v21, %v1087_v25  ;;  %v1334_v50 = vsel %vm8121_vm13, %v1089_v18, %v1333_v45  ;;  %v1523_v21 = vrot.slane %v1522_v42, 4  ;;  %v1919_v40 = vrot.slane %v1917_v9, 4  ;;  %v8367_v9 = vld [vmem:[#allocation2 + $0x38] sm:$0x1]  ;;  %v2014_v42 = vld [vmem:[#allocation2 + $0x3c] sm:$0xf] }
 0x1c3   : > { %1332 = vst [vmem:[#allocation2 + $0x64] sm:$0xf] %v1088_v1  ;;  %1335 = vst [vmem:[#allocation2 + $0x68] sm:$0x1] %v1334_v50  ;;  %v1071_v14 = vsel %vm8115_vm12, %v10136_v13, %v1070_v61  ;;  %v1327_v53 = vsel %vm8121_vm13, %v1072_v28, %v1326_v59  ;;  %v1533_v5 = vrot.slane %v1532_v30, 4  ;;  %v1920_v18 = vrot.slane %v1427_v56, 5 }
 0x1c4   : > { %1325 = vst [vmem:[#allocation2 + $0x58] sm:$0xf] %v1071_v14  ;;  %1328 = vst [vmem:[#allocation2 + $0x5c] sm:$0x1] %v1327_v53  ;;  %v1108_v45 = vshrl.u32 %v8090_v2, 16  ;;  %v1111_v51 = vshll.u32 %v8090_v2, 16  ;;  %v1528_v61 = vsel %vm8038_vm2, %v1523_v21, %v1527_v19  ;;  %v6145_v13 = vcombine.low %v8312_v57, %v8324_v23 }
 0x1c5   : > { %v7435_v1 = vld [vmem:[#allocation8 + $0x1d8] sm:$0xff]   ;;  %v8351_v46 = vrot.slane %v2130_v43, 5  ;;  %v10137_v17 = vmax.f32 %v8082_v54, 0.0  ;;  %v1540_v31 = vshrl.u32 %v8341_v49, 16  ;;  %v1538_v56 = vsel %vm8038_vm2, %v1533_v5, %v1537_v15  ;;  %v7438_v15 = vld [vmem:[#allocation8 + $0x1e0] sm:$0xff]  }
 0x1c6   : > { %v1921_v2 = vsel %vm8046_vm5, %v1919_v40, %v1920_v18  ;;  %v8363_v22 = vrot.slane %v1108_v45, 7  ;;  %v8365_v43 = vld [vmem:[#allocation2 + $0x34] sm:$0xf]  ;;  %v1543_v25 = vshll.u32 %v8341_v49, 16  ;;  %6934 = vmatprep.subr.bf16.mxu0 %v7435_v1  ;;  %v6161_v54 = vcombine.low %v1528_v61, %v1538_v56  ;;  %v7442_v40 = vld [vmem:[#allocation8 + $0x1a0] sm:$0xff]  }
 0x1c7   : > { %v6424_v34 = vpack.c.bf16 %v10137_v17, %v10137_v17  ;;  %v6177_v59 = vcombine.low %v1918_v11, %v1921_v2  ;;  %6935 = vmatpush3.bf16.msra.mxu0 %v7436_v0  ;;  %v7437_v50 = vld [vmem:[#allocation8 + $0x178] sm:$0xff]   ;;  %v1542_v14 = vrot.slane %v1540_v31, 4  ;;  %v1549_v11 = vshll.u32 %v8365_v43, 16  ;;  %v1336_v1 = vld [vmem:[#allocation2 + $0x6c] sm:$0xf] }
 0x1c8   : > { %v1113_v30 = vor.u32 %v1111_v51, %v8363_v22  ;;  %v1545_v53 = vrot.slane %v1543_v25, 5  ;;  %v7441_v21 = vld [vmem:[#allocation8 + $0x138] sm:$0xff]   ;;  %4479 = vmatprep.mubr.bf16.mxu1 %v6161_v54  ;;  %v1553_v18 = vshrl.u32 %v8365_v43, 16  ;;  %v1559_v45 = vshll.u32 %v8367_v9, 16  ;;  %6830 = vmatprep.subr.bf16.mxu1 %v7437_v50  ;;  %v8382_v2 = vld [vmem:[#allocation2 + $0x40] sm:$0xf] }
 0x1c9   : > { %v1091_v19 = vshrl.u32 %v6424_v34, 16  ;;  %v1094_v28 = vshll.u32 %v6424_v34, 16  ;;  %4641 = vmatmul.mubr.bf16.gmra.mrb[28].mxu0 %v6177_v59  ;;  %4480 = vmatmul.mubr.bf16.gmra.mrb[28].mxu1 %v6145_v13  ;;  %v2151_v23 = vshrl.u32 %v2014_v42, 16  ;;  %v2154_v0 = vshll.u32 %v2014_v42, 16  ;;  %v1831_v61 = vld [vmem:[#allocation2 + $0x30] sm:$0xe] }
 0x1ca   : > { %v1344_v51 = vsel %vm8106_vm11, %v1113_v30, %v1343_v7  ;;  %v1546_v57 = vor.u32 %v1545_v53, %v1542_v14  ;;  %v1114_v17 = vrot.slane %v8363_v22, 4  ;;  %v1551_v31 = vrot.slane %v1549_v11, 5  ;;  %6936 = vmatprep.subr.bf16.mxu0 %v7438_v15  ;;  %6831 = vmatpush3.bf16.msra.mxu1 %v7441_v21  ;;  %v2016_v13 = vld [vmem:[#allocation2 + $0x48] sm:$0xf]  ;;  %v8407_v15 = vld [vmem:[#allocation2 + $0x40] sm:$0xf] }
 0x1cb   : > { %v8373_v5 = vrot.slane %v1091_v19, 7  ;;  %1345 = vst [vmem:[#allocation2 + $0x78] sm:$0xf] %v1344_v51  ;;  %v1555_v56 = vrot.slane %v1553_v18, 4  ;;  %v1561_v54 = vrot.slane %v1559_v45, 5  ;;  %v8385_v59 = vrot.slane %v2151_v23, 4  ;;  %6937 = vmatpush3.bf16.msra.mxu0 %v7442_v40 }
 0x1cc   : > { %v1547_v25 = vrot.slane %v1546_v57, 4  ;;  %v8389_v30 = vrot.slane %v2154_v0, 5  ;;  %v10138_v14 = vmax.f32 %v8088_v62, 0.0  ;;  %v840_v21 = vmax.f32 %v8093_v3, 0.0  ;;  %v7443_v51 = vld [vmem:[#allocation8 + $0x1e8] sm:$0xff]   ;;  %v7445_v57 = vld [vmem:[#allocation8 + $0x1f0] sm:$0xff]  }
 0x1cd   : > { %v1096_v34 = vor.u32 %v1094_v28, %v8373_v5  ;;  %v1556_v50 = vor.u32 %v1555_v56, %v1551_v31  ;;  %v6194_v28 = vcombine.low %v2014_v42, %v8382_v2  ;;  %v6098_v11 = vrot.slane %v1831_v61, 9  ;;  %v1347_v61 = vld [vmem:[#allocation2 + $0x80] sm:$0x1]  ;;  %6938 = vmatprep.subr.bf16.mxu0 %v7443_v51  ;;  %v7448_v7 = vld [vmem:[#allocation8 + $0x1f8] sm:$0xff]   ;;  %v7451_v22 = vld [vmem:[#allocation8 + $0x200] sm:$0xff]  }
 0x1ce   : > { %v6427_v53 = vpack.c.bf16 %v10138_v14, %v10138_v14  ;;  %v1552_v40 = vsel %vm8038_vm2, %v1547_v25, %v1551_v31  ;;  %v1924_v45 = vrot.slane %v8365_v43, 5  ;;  %v1927_v42 = vrot.slane %v8367_v9, 5  ;;  %7136 = vmatprep.subr.bf16.mxu1 %v7451_v22 }
 0x1cf   : > { %v1337_v19 = vsel %vm8106_vm11, %v1096_v34, %v1336_v1  ;;  %v1557_v18 = vrot.slane %v1556_v50, 4  ;;  %4648 = vmatprep.mubr.bf16.mxu0 %v6194_v28  ;;  %v7444_v1 = vld [vmem:[#allocation8 + $0x1a8] sm:$0xff]   ;;  %v6425_v62 = vpack.c.bf16 %v840_v21, %v840_v21  ;;  %v2175_v34 = vshrl.u32 %v2016_v13, 16 }
 0x1d0   : > { %1338 = vst [vmem:[#allocation2 + $0x6c] sm:$0xf] %v1337_v19  ;;  %v1116_v23 = vshrl.u32 %v6427_v53, 16  ;;  %v1119_v0 = vshll.u32 %v6427_v53, 16  ;;  %v1925_v31 = vsel %vm8046_vm5, %v6098_v11, %v1924_v45  ;;  %v1926_v56 = vrot.slane %v1924_v45, 4  ;;  %6939 = vmatpush3.bf16.msra.mxu0 %v7444_v1 }
 0x1d1   : > { %v1562_v3 = vsel %vm8038_vm2, %v1557_v18, %v1561_v54  ;;  %v2178_v25 = vshll.u32 %v2016_v13, 16  ;;  %v8405_v19 = vld [vmem:[#allocation2 + $0x3c] sm:$0xf]  ;;  %v1099_v28 = vshrl.u32 %v6425_v62, 16  ;;  %v1102_v14 = vshll.u32 %v6425_v62, 16  ;;  %6940 = vmatprep.subr.bf16.mxu0 %v7445_v57 }
 0x1d2   : > { %v6162_v9 = vcombine.low %v1552_v40, %v1562_v3  ;;  %v1118_v50 = vrot.slane %v1116_v23, 7  ;;  %v1340_v53 = vld [vmem:[#allocation2 + $0x74] sm:$0x1]  ;;  %v1928_v54 = vsel %vm8046_vm5, %v1926_v56, %v1927_v42  ;;  %v6146_v21 = vcombine.low %v8341_v49, %v8365_v43  ;;  %v1832_v45 = vld [vmem:[#allocation2 + $0x3c] sm:$0xe]  ;;  %v7447_v40 = vld [vmem:[#allocation8 + $0x1b0] sm:$0xff]  }
 0x1d3   : > { %v8413_v11 = vrot.slane %v2175_v34, 4  ;;  %v8415_v18 = vrot.slane %v2178_v25, 5  ;;  %v1101_v62 = vrot.slane %v1099_v28, 7  ;;  %v6178_v3 = vcombine.low %v1925_v31, %v1928_v54  ;;  %v8417_v1 = vld [vmem:[#allocation2 + $0x4c] sm:$0xf]  ;;  %v7449_v54 = vld [vmem:[#allocation8 + $0x1b8] sm:$0xff]  }
 0x1d4   : > { %4487 = vmatprep.mubr.bf16.mxu1 %v6162_v9  ;;  %v1121_v51 = vor.u32 %v1119_v0, %v1118_v50  ;;  %v1123_v23 = vrot.slane %v1118_v50, 4  ;;  %10139 = vst [vmem:[#allocation18_spill] sm:$0xff] %v8417_v1  ;;  %v6195_v42 = vcombine.low %v2016_v13, %v8417_v1  ;;  %v1429_v56 = vld [vmem:[#allocation2 + $0x44] sm:$0x1]  ;;  %v1564_v49 = vshrl.u32 %v8405_v19, 16  ;;  %6941 = vmatpush3.bf16.msra.mxu0 %v7447_v40 }
 0x1d5   : > { %4488 = vmatmul.mubr.bf16.gmra.mrb[32].mxu1 %v6146_v21  ;;  %v1567_v43 = vshll.u32 %v8405_v19, 16  ;;  %v1573_v34 = vshll.u32 %v8407_v15, 16  ;;  %v1104_v31 = vor.u32 %v1102_v14, %v1101_v62  ;;  %v1106_v25 = vrot.slane %v1101_v62, 4  ;;  %4649 = vmatmul.mubr.bf16.gmra.mrb[32].mxu0 %v6178_v3 }
 0x1d6   : > { %v1122_v57 = vsel %vm8115_vm12, %v1114_v17, %v1121_v51  ;;  %v1348_v0 = vsel %vm8121_vm13, %v1123_v23, %v1347_v61  ;;  %4656 = vmatprep.mubr.bf16.mxu0 %v6195_v42  ;;  %v1566_v13 = vrot.slane %v1564_v49, 4  ;;  %v1577_v28 = vshrl.u32 %v8407_v15, 16  ;;  %6942 = vmatprep.subr.bf16.mxu0 %v7448_v7  ;;  %v8437_v42 = vld [vmem:[#allocation2 + $0x48] sm:$0xf]  ;;  %v8442_v49 = vld [vmem:[%s10084_s2] ss:$0 sm:$0xff] }
 0x1d7   : > { %1346 = vst [vmem:[#allocation2 + $0x7c] sm:$0xf] %v1122_v57  ;;  %1349 = vst [vmem:[#allocation2 + $0x80] sm:$0x1] %v1348_v0  ;;  %v1569_v9 = vrot.slane %v1567_v43, 5  ;;  %v1575_v50 = vrot.slane %v1573_v34, 5  ;;  %v1341_v61 = vsel %vm8121_vm13, %v1106_v25, %v1340_v53  ;;  %v777_v53 = vmul.f32 %v8442_v49, %v8096_v10 }
 0x1d8   : > { %v10140_v21 = vrot.slane %v8373_v5, 4  ;;  %v1583_v14 = vshll.u32 %v1429_v56, 16  ;;  %v6099_v51 = vrot.slane %v1832_v45, 9  ;;  %1342 = vst [vmem:[#allocation2 + $0x74] sm:$0x1] %v1341_v61  ;;  %v1579_v62 = vrot.slane %v1577_v28, 4  ;;  %6943 = vmatpush3.bf16.msra.mxu0 %v7449_v54 }
 0x1d9   : > { %v1570_v23 = vor.u32 %v1569_v9, %v1566_v13  ;;  %v1931_v3 = vrot.slane %v8407_v15, 5  ;;  %v1934_v40 = vrot.slane %v1429_v56, 5  ;;  %v6147_v7 = vcombine.low %v8405_v19, %v8407_v15  ;;  %v8450_v43 = vld [vmem:[#allocation2 + $0x4c] sm:$0xf]  ;;  %v8467_v28 = vld [vmem:[#allocation2 + $0x50] sm:$0x1] }
 0x1da   : > { %v1105_v17 = vsel %vm8115_vm12, %v10140_v21, %v1104_v31  ;;  %v1585_v5 = vrot.slane %v1583_v14, 5  ;;  %v775_v45 = vmul.f32 %v8442_v49, %v8099_v16  ;;  %v1580_v34 = vor.u32 %v1579_v62, %v1575_v50  ;;  %v8457_v31 = vld [vmem:[%s10084_s2 + $0x1] ss:$0 sm:$0xff]  ;;  %v2018_v14 = vld [vmem:[#allocation2 + $0x54] sm:$0xf] }
 0x1db   : > { %1339 = vst [vmem:[#allocation2 + $0x70] sm:$0xf] %v1105_v17  ;;  %v1571_v56 = vrot.slane %v1570_v23, 4  ;;  %v1932_v57 = vsel %vm8046_vm5, %v6099_v51, %v1931_v3  ;;  %v1933_v0 = vrot.slane %v1931_v3, 4  ;;  %v813_v10 = vadd.f32 %v8457_v31, %v777_v53 }
 0x1dc   : > { %v811_v15 = vadd.f32 %v8457_v31, %v775_v45  ;;  %v1588_v16 = vshrl.u32 %v8437_v42, 16  ;;  %v1591_v19 = vshll.u32 %v8437_v42, 16  ;;  %v1581_v13 = vrot.slane %v1580_v34, 4 }
 0x1dd   : > { %v1576_v25 = vsel %vm8038_vm2, %v1571_v56, %v1575_v50  ;;  %v1935_v9 = vsel %vm8046_vm5, %v1933_v0, %v1934_v40  ;;  %v1597_v54 = vshll.u32 %v8450_v43, 16  ;;  %v845_v21 = vmax.f32 %v813_v10, 0.0 }
 0x1de   : > { %v6179_v22 = vcombine.low %v1932_v57, %v1935_v9  ;;  %v843_v17 = vmax.f32 %v811_v15, 0.0  ;;  %v1590_v61 = vrot.slane %v1588_v16, 4  ;;  %v1586_v51 = vsel %vm8038_vm2, %v1581_v13, %v1585_v5 }
 0x1df   : > { %v1593_v23 = vrot.slane %v1591_v19, 5  ;;  %v1599_v62 = vrot.slane %v1597_v54, 5  ;;  %v1601_v50 = vshrl.u32 %v8450_v43, 16  ;;  %v6163_v3 = vcombine.low %v1576_v25, %v1586_v51  ;;  %v8475_v54 = vld [vmem:[#allocation2 + $0x58] sm:$0xf] }
 0x1e0   : > { %4657 = vmatmul.mubr.bf16.gmra.mrb[36].mxu0 %v6179_v22  ;;  %v6430_v53 = vpack.c.bf16 %v845_v21, %v845_v21  ;;  %v6428_v40 = vpack.c.bf16 %v843_v17, %v843_v17  ;;  %v1607_v45 = vshll.u32 %v8467_v28, 16  ;;  %v2199_v57 = vshrl.u32 %v2018_v14, 16  ;;  %10141 = vst [vmem:[#allocation19_spill] sm:$0xff] %v8475_v54  ;;  %v1833_v51 = vld [vmem:[#allocation2 + $0x48] sm:$0xe] }
 0x1e1   : > { %v1594_v56 = vor.u32 %v1593_v23, %v1590_v61  ;;  %v1603_v34 = vrot.slane %v1601_v50, 4  ;;  %v2202_v0 = vshll.u32 %v2018_v14, 16  ;;  %4495 = vmatprep.mubr.bf16.mxu1 %v6163_v3  ;;  %v1357_v23 = vld [vmem:[#allocation2 + $0x90] sm:$0xf]  ;;  %v1350_v50 = vld [vmem:[#allocation2 + $0x84] sm:$0xf] }
 0x1e2   : > { %v1142_v10 = vshrl.u32 %v6430_v53, 16  ;;  %v1145_v15 = vshll.u32 %v6430_v53, 16  ;;  %v1125_v16 = vshrl.u32 %v6428_v40, 16  ;;  %v1128_v9 = vshll.u32 %v6428_v40, 16  ;;  %4496 = vmatmul.mubr.bf16.gmra.mrb[36].mxu1 %v6147_v7 }
 0x1e3   : > { %v1595_v19 = vrot.slane %v1594_v56, 4  ;;  %v1604_v13 = vor.u32 %v1603_v34, %v1599_v62  ;;  %v1609_v25 = vrot.slane %v1607_v45, 5  ;;  %v8481_v17 = vrot.slane %v2199_v57, 4 }
 0x1e4   : > { %v8477_v22 = vrot.slane %v1142_v10, 7  ;;  %v8479_v21 = vrot.slane %v1125_v16, 7  ;;  %v8483_v61 = vrot.slane %v2202_v0, 5  ;;  %v6196_v53 = vcombine.low %v2018_v14, %v8475_v54  ;;  %v8499_v16 = vld [vmem:[#allocation2 + $0x60] sm:$0xf] }
 0x1e5   : > { %10142 = vst [vmem:[#allocation20_spill] sm:$0xff] %v8481_v17  ;;  %v1600_v3 = vsel %vm8038_vm2, %v1595_v19, %v1599_v62  ;;  %v1605_v7 = vrot.slane %v1604_v13, 4  ;;  %v778_v40 = vmul.f32 %v8442_v49, %v8102_v26  ;;  %v776_v14 = vmul.f32 %v8442_v49, %v8111_v35  ;;  %v8506_v13 = vld [vmem:[#allocation2 + $0x64] sm:$0xf]  ;;  %v1354_v54 = vld [vmem:[#allocation2 + $0x8c] sm:$0x1] }
 0x1e6   : > { %10143 = vst [vmem:[#allocation21_spill] sm:$0xff] %v8483_v61  ;;  %v1147_v45 = vor.u32 %v1145_v15, %v8477_v22  ;;  %v1130_v34 = vor.u32 %v1128_v9, %v8479_v21  ;;  %4664 = vmatprep.mubr.bf16.mxu0 %v6196_v53  ;;  %v6100_v10 = vrot.slane %v1833_v51, 9  ;;  %v1938_v19 = vrot.slane %v8450_v43, 5  ;;  %10144 = vst [vmem:[#allocation22_spill] sm:$0xff] %v8506_v13  ;;  %v8512_v53 = vld [vmem:[#allocation2 + $0x54] sm:$0xf] }
 0x1e7   : > { %v1610_v0 = vsel %vm8038_vm2, %v1605_v7, %v1609_v25  ;;  %v814_v62 = vadd.f32 %v8457_v31, %v778_v40  ;;  %v812_v7 = vadd.f32 %v8457_v31, %v776_v14  ;;  %v1941_v35 = vrot.slane %v8467_v28, 5  ;;  %v1431_v14 = vld [vmem:[#allocation2 + $0x5c] sm:$0x1] }
 0x1e8   : > { %v1358_v26 = vsel %vm8106_vm11, %v1147_v45, %v1357_v23  ;;  %v1351_v15 = vsel %vm8106_vm11, %v1130_v34, %v1350_v50  ;;  %v6164_v9 = vcombine.low %v1600_v3, %v1610_v0  ;;  %v6148_v51 = vcombine.low %v8437_v42, %v8450_v43  ;;  %v1361_v0 = vld [vmem:[#allocation2 + $0x98] sm:$0x1] }
 0x1e9   : > { %1359 = vst [vmem:[#allocation2 + $0x90] sm:$0xf] %v1358_v26  ;;  %1352 = vst [vmem:[#allocation2 + $0x84] sm:$0xf] %v1351_v15  ;;  %v846_v25 = vmax.f32 %v814_v62, 0.0  ;;  %v1131_v23 = vrot.slane %v8479_v21, 4  ;;  %v1939_v50 = vsel %vm8046_vm5, %v6100_v10, %v1938_v19  ;;  %v6197_v21 = vcombine.low %v8499_v16, %v8506_v13 }
 0x1ea   : > { %4503 = vmatprep.mubr.bf16.mxu1 %v6164_v9  ;;  %v1940_v3 = vrot.slane %v1938_v19, 4  ;;  %v2223_v40 = vshrl.u32 %v8499_v16, 16  ;;  %v844_v34 = vmax.f32 %v812_v7, 0.0  ;;  %v8520_v62 = vld [vmem:[#allocation2 + $0x58] sm:$0xf]  ;;  %v1612_v10 = vshrl.u32 %v8512_v53, 16 }
 0x1eb   : > { %v6431_v45 = vpack.c.bf16 %v846_v25, %v846_v25  ;;  %4504 = vmatmul.mubr.bf16.gmra.mrb[40].mxu1 %v6148_v51  ;;  %v1834_v25 = vld [vmem:[#allocation2 + $0x54] sm:$0xe]  ;;  %v1615_v51 = vshll.u32 %v8512_v53, 16  ;;  %v1621_v28 = vshll.u32 %v8520_v62, 16  ;;  %v1631_v5 = vshll.u32 %v1431_v14, 16 }
 0x1ec   : > { %v1942_v42 = vsel %vm8046_vm5, %v1940_v3, %v1941_v35  ;;  %v8524_v43 = vrot.slane %v2223_v40, 4  ;;  %v6429_v9 = vpack.c.bf16 %v844_v34, %v844_v34  ;;  %v1614_v7 = vrot.slane %v1612_v10, 4 }
 0x1ed   : > { %v1150_v26 = vshrl.u32 %v6431_v45, 16  ;;  %v1153_v15 = vshll.u32 %v6431_v45, 16  ;;  %v6180_v19 = vcombine.low %v1939_v50, %v1942_v42  ;;  %v1625_v35 = vshrl.u32 %v8520_v62, 16 }
 0x1ee   : > { %10145 = vst [vmem:[#allocation23_spill] sm:$0xff] %v8524_v43  ;;  %v1133_v40 = vshrl.u32 %v6429_v9, 16  ;;  %v1136_v57 = vshll.u32 %v6429_v9, 16  ;;  %v1617_v56 = vrot.slane %v1615_v51, 5  ;;  %v1623_v13 = vrot.slane %v1621_v28, 5 }
 0x1ef   : > { %v1152_v3 = vrot.slane %v1150_v26, 7  ;;  %4665 = vmatmul.mubr.bf16.gmra.mrb[40].mxu0 %v6180_v19  ;;  %v1627_v45 = vrot.slane %v1625_v35, 4  ;;  %v6101_v34 = vrot.slane %v1834_v25, 9  ;;  %v1633_v43 = vrot.slane %v1631_v5, 5  ;;  %v8541_v51 = vld [vmem:[#allocation2 + $0x60] sm:$0xf] }
 0x1f0   : > { %4672 = vmatprep.mubr.bf16.mxu0 %v6197_v21  ;;  %v1135_v10 = vrot.slane %v1133_v40, 7  ;;  %v1618_v61 = vor.u32 %v1617_v56, %v1614_v7  ;;  %v1945_v1 = vrot.slane %v8520_v62, 5  ;;  %v1948_v26 = vrot.slane %v1431_v14, 5  ;;  %v2022_v35 = vld [vmem:[#allocation2 + $0x6c] sm:$0xf] }
 0x1f1   : > { %v1155_v50 = vor.u32 %v1153_v15, %v1152_v3  ;;  %v1157_v42 = vrot.slane %v1152_v3, 4  ;;  %v1628_v17 = vor.u32 %v1627_v45, %v1623_v13  ;;  %v10146_v9 = vrot.slane %v8477_v22, 4 }
 0x1f2   : > { %v1138_v21 = vor.u32 %v1136_v57, %v1135_v10  ;;  %v1140_v25 = vrot.slane %v1135_v10, 4  ;;  %v1619_v15 = vrot.slane %v1618_v61, 4  ;;  %v1946_v56 = vsel %vm8046_vm5, %v6101_v34, %v1945_v1  ;;  %v8551_v61 = vld [vmem:[#allocation2 + $0x64] sm:$0xf] }
 0x1f3   : > { %v1156_v19 = vsel %vm8115_vm12, %v10146_v9, %v1155_v50  ;;  %v1362_v28 = vsel %vm8121_vm13, %v1157_v42, %v1361_v0  ;;  %v1629_v5 = vrot.slane %v1628_v17, 4  ;;  %v1947_v7 = vrot.slane %v1945_v1, 4 }
 0x1f4   : > { %1360 = vst [vmem:[#allocation2 + $0x94] sm:$0xf] %v1156_v19  ;;  %1363 = vst [vmem:[#allocation2 + $0x98] sm:$0x1] %v1362_v28  ;;  %v1139_v22 = vsel %vm8115_vm12, %v1131_v23, %v1138_v21  ;;  %v1355_v14 = vsel %vm8121_vm13, %v1140_v25, %v1354_v54  ;;  %v781_v57 = vmul.f32 %v8442_v49, %v8133_v4  ;;  %v8561_v4 = vld [vmem:[#allocation2 + $0x68] sm:$0x1] }
 0x1f5   : > { %v6149_v0 = vcombine.low %v8512_v53, %v8520_v62  ;;  %1353 = vst [vmem:[#allocation2 + $0x88] sm:$0xf] %v1139_v22  ;;  %1356 = vst [vmem:[#allocation2 + $0x8c] sm:$0x1] %v1355_v14  ;;  %v1624_v1 = vsel %vm8038_vm2, %v1619_v15, %v1623_v13  ;;  %v1634_v17 = vsel %vm8038_vm2, %v1629_v5, %v1633_v43  ;;  %v1636_v40 = vshrl.u32 %v8541_v51, 16 }
 0x1f6   : > { %v1949_v23 = vsel %vm8046_vm5, %v1947_v7, %v1948_v26  ;;  %v779_v54 = vmul.f32 %v8442_v49, %v8139_v12  ;;  %v6165_v53 = vcombine.low %v1624_v1, %v1634_v17  ;;  %v817_v3 = vadd.f32 %v8457_v31, %v781_v57  ;;  %v8570_v21 = vld [vmem:[#allocation2 + $0x70] sm:$0xf]  ;;  %v1835_v17 = vld [vmem:[#allocation2 + $0x60] sm:$0xe] }
 0x1f7   : > { %v6181_v62 = vcombine.low %v1946_v56, %v1949_v23  ;;  %v1639_v45 = vshll.u32 %v8541_v51, 16  ;;  %v1645_v43 = vshll.u32 %v8551_v61, 16  ;;  %v1649_v34 = vshrl.u32 %v8551_v61, 16 }
 0x1f8   : > { %v815_v13 = vadd.f32 %v8457_v31, %v779_v54  ;;  %4511 = vmatprep.mubr.bf16.mxu1 %v6165_v53  ;;  %v849_v12 = vmax.f32 %v817_v3, 0.0  ;;  %v1638_v50 = vrot.slane %v1636_v40, 4  ;;  %v1655_v42 = vshll.u32 %v8561_v4, 16 }
 0x1f9   : > { %4673 = vmatmul.mubr.bf16.gmra.mrb[44].mxu0 %v6181_v62  ;;  %v2247_v10 = vshrl.u32 %v2022_v35, 16  ;;  %4512 = vmatmul.mubr.bf16.gmra.mrb[44].mxu1 %v6149_v0  ;;  %v1641_v9 = vrot.slane %v1639_v45, 5  ;;  %v1647_v19 = vrot.slane %v1645_v43, 5  ;;  %v1651_v28 = vrot.slane %v1649_v34, 4 }
 0x1fa   : > { %v847_v26 = vmax.f32 %v815_v13, 0.0  ;;  %v10147_v25 = vshll.u32 %v8499_v16, 16  ;;  %v6434_v5 = vpack.c.bf16 %v849_v12, %v849_v12  ;;  %v1657_v56 = vrot.slane %v1655_v42, 5  ;;  %v1371_v12 = vld [vmem:[#allocation2 + $0xa8] sm:$0xf] }
 0x1fb   : > { %v8576_v7 = vrot.slane %v2247_v10, 4  ;;  %v1642_v14 = vor.u32 %v1641_v9, %v1638_v50  ;;  %v1652_v57 = vor.u32 %v1651_v28, %v1647_v19  ;;  %v2250_v1 = vshll.u32 %v2022_v35, 16  ;;  %v1364_v9 = vld [vmem:[#allocation2 + $0x9c] sm:$0xf] }
 0x1fc   : > { %v8574_v15 = vrot.slane %v10147_v25, 5  ;;  %v6432_v22 = vpack.c.bf16 %v847_v26, %v847_v26  ;;  %v1176_v0 = vshrl.u32 %v6434_v5, 16  ;;  %v1179_v23 = vshll.u32 %v6434_v5, 16  ;;  %v8597_v25 = vld [vmem:[#allocation2 + $0x78] sm:$0xf] }
 0x1fd   : > { %v6198_v53 = vcombine.low %v2022_v35, %v8570_v21  ;;  %v1643_v16 = vrot.slane %v1642_v14, 4  ;;  %v1653_v40 = vrot.slane %v1652_v57, 4  ;;  %v782_v45 = vmul.f32 %v8442_v49, %v8146_v24 }
 0x1fe   : > { %v1159_v62 = vshrl.u32 %v6432_v22, 16  ;;  %v1162_v3 = vshll.u32 %v6432_v22, 16  ;;  %v8580_v13 = vrot.slane %v1176_v0, 7  ;;  %v780_v43 = vmul.f32 %v8442_v49, %v8153_v37  ;;  %v8607_v0 = vld [vmem:[#allocation2 + $0x7c] sm:$0xf] }
 0x1ff   : > { %4680 = vmatprep.mubr.bf16.mxu0 %v6198_v53  ;;  %v6102_v34 = vrot.slane %v1835_v17, 9  ;;  %v1648_v35 = vsel %vm8038_vm2, %v1643_v16, %v1647_v19  ;;  %v1658_v42 = vsel %vm8038_vm2, %v1653_v40, %v1657_v56  ;;  %v1952_v10 = vrot.slane %v8551_v61, 5  ;;  %10148 = vst [vmem:[#allocation24_spill] sm:$0xff] %v8607_v0  ;;  %v8614_v16 = vld [vmem:[#allocation2 + $0x6c] sm:$0xf] }
 0x200   : > { %v8586_v50 = vrot.slane %v1159_v62, 7  ;;  %v1181_v26 = vor.u32 %v1179_v23, %v8580_v13  ;;  %v6166_v28 = vcombine.low %v1648_v35, %v1658_v42  ;;  %v8594_v24 = vrot.slane %v2250_v1, 5 }
 0x201   : > { %v818_v37 = vadd.f32 %v8457_v31, %v782_v45  ;;  %v1182_v5 = vrot.slane %v8580_v13, 4  ;;  %v816_v19 = vadd.f32 %v8457_v31, %v780_v43  ;;  %v1953_v56 = vsel %vm8046_vm5, %v6102_v34, %v1952_v10  ;;  %v8620_v43 = vld [vmem:[#allocation2 + $0x70] sm:$0xf] }
 0x202   : > { %v1164_v22 = vor.u32 %v1162_v3, %v8586_v50  ;;  %v1372_v14 = vsel %vm8106_vm11, %v1181_v26, %v1371_v12  ;;  %4519 = vmatprep.mubr.bf16.mxu1 %v6166_v28  ;;  %v1954_v1 = vrot.slane %v1952_v10, 4  ;;  %v1955_v17 = vrot.slane %v8561_v4, 5 }
 0x203   : > { %v850_v57 = vmax.f32 %v818_v37, 0.0  ;;  %1373 = vst [vmem:[#allocation2 + $0xa8] sm:$0xf] %v1372_v14  ;;  %v848_v53 = vmax.f32 %v816_v19, 0.0  ;;  %v6150_v62 = vcombine.low %v8541_v51, %v8551_v61  ;;  %v2271_v3 = vshrl.u32 %v8597_v25, 16 }
 0x204   : > { %v1365_v23 = vsel %vm8106_vm11, %v1164_v22, %v1364_v9  ;;  %v1165_v40 = vrot.slane %v8586_v50, 4  ;;  %v1956_v4 = vsel %vm8046_vm5, %v1954_v1, %v1955_v17  ;;  %v1433_v61 = vld [vmem:[#allocation2 + $0x74] sm:$0x1]  ;;  %v6199_v50 = vcombine.low %v8597_v25, %v8607_v0  ;;  %v1836_v9 = vld [vmem:[#allocation2 + $0x6c] sm:$0xe] }
 0x205   : > { %1366 = vst [vmem:[#allocation2 + $0x9c] sm:$0xf] %v1365_v23  ;;  %v6435_v13 = vpack.c.bf16 %v850_v57, %v850_v57  ;;  %v6433_v34 = vpack.c.bf16 %v848_v53, %v848_v53  ;;  %v6182_v12 = vcombine.low %v1953_v56, %v1956_v4  ;;  %4520 = vmatmul.mubr.bf16.gmra.mrb[48].mxu1 %v6150_v62  ;;  %v8622_v35 = vrot.slane %v2271_v3, 4  ;;  %v1375_v17 = vld [vmem:[#allocation2 + $0xb0] sm:$0x1] }
 0x206   : > { %v1660_v26 = vshrl.u32 %v8614_v16, 16  ;;  %v1663_v22 = vshll.u32 %v8614_v16, 16  ;;  %v1669_v19 = vshll.u32 %v8620_v43, 16  ;;  %v1673_v57 = vshrl.u32 %v8620_v43, 16  ;;  %v1368_v51 = vld [vmem:[#allocation2 + $0xa4] sm:$0x1] }
 0x207   : > { %v1184_v42 = vshrl.u32 %v6435_v13, 16  ;;  %v1187_v10 = vshll.u32 %v6435_v13, 16  ;;  %v1167_v28 = vshrl.u32 %v6433_v34, 16  ;;  %v1170_v37 = vshll.u32 %v6433_v34, 16  ;;  %4681 = vmatmul.mubr.bf16.gmra.mrb[48].mxu0 %v6182_v12 }
 0x208   : > { %4688 = vmatprep.mubr.bf16.mxu0 %v6199_v50  ;;  %v1662_v14 = vrot.slane %v1660_v26, 4  ;;  %v1679_v1 = vshll.u32 %v1433_v61, 16  ;;  %v1665_v53 = vrot.slane %v1663_v22, 5  ;;  %v1671_v62 = vrot.slane %v1669_v19, 5  ;;  %v8636_v19 = vld [vmem:[#allocation2 + $0x78] sm:$0xf] }
 0x209   : > { %v1186_v56 = vrot.slane %v1184_v42, 7  ;;  %v1169_v23 = vrot.slane %v1167_v28, 7  ;;  %v6103_v3 = vrot.slane %v1836_v9, 9  ;;  %v1675_v34 = vrot.slane %v1673_v57, 4 }
 0x20a   : > { %v1681_v12 = vrot.slane %v1679_v1, 5  ;;  %v1666_v0 = vor.u32 %v1665_v53, %v1662_v14  ;;  %v1959_v42 = vrot.slane %v8620_v43, 5  ;;  %v1962_v22 = vrot.slane %v1433_v61, 5 }
 0x20b   : > { %v1189_v13 = vor.u32 %v1187_v10, %v1186_v56  ;;  %v1191_v4 = vrot.slane %v1186_v56, 4  ;;  %v1172_v54 = vor.u32 %v1170_v37, %v1169_v23  ;;  %v1174_v45 = vrot.slane %v1169_v23, 4  ;;  %v8661_v23 = vld [vmem:[#allocation2 + $0x80] sm:$0x1] }
 0x20c   : > { %v1676_v28 = vor.u32 %v1675_v34, %v1671_v62  ;;  %v1667_v37 = vrot.slane %v1666_v0, 4  ;;  %v1960_v56 = vsel %vm8046_vm5, %v6103_v3, %v1959_v42  ;;  %v1961_v61 = vrot.slane %v1959_v42, 4  ;;  %v8666_v42 = vld [vmem:[#allocation2 + $0x88] sm:$0xf] }
 0x20d   : > { %v1190_v50 = vsel %vm8115_vm12, %v1182_v5, %v1189_v13  ;;  %v1376_v26 = vsel %vm8121_vm13, %v1191_v4, %v1375_v17  ;;  %v1173_v10 = vsel %vm8115_vm12, %v1165_v40, %v1172_v54  ;;  %v1369_v9 = vsel %vm8121_vm13, %v1174_v45, %v1368_v51  ;;  %v8644_v5 = vld [vmem:[#allocation2 + $0x7c] sm:$0xf] }
 0x20e   : > { %1374 = vst [vmem:[#allocation2 + $0xac] sm:$0xf] %v1190_v50  ;;  %1377 = vst [vmem:[#allocation2 + $0xb0] sm:$0x1] %v1376_v26  ;;  %v1677_v14 = vrot.slane %v1676_v28, 4  ;;  %v785_v57 = vmul.f32 %v8442_v49, %v8175_v33  ;;  %v6151_v1 = vcombine.low %v8614_v16, %v8620_v43  ;;  %v1672_v54 = vsel %vm8038_vm2, %v1667_v37, %v1671_v62 }
 0x20f   : > { %1367 = vst [vmem:[#allocation2 + $0xa0] sm:$0xf] %v1173_v10  ;;  %1370 = vst [vmem:[#allocation2 + $0xa4] sm:$0x1] %v1369_v9  ;;  %v783_v0 = vmul.f32 %v8442_v49, %v8205_v36  ;;  %v1684_v40 = vshrl.u32 %v8636_v19, 16  ;;  %v1687_v45 = vshll.u32 %v8636_v19, 16  ;;  %v1963_v17 = vsel %vm8046_vm5, %v1961_v61, %v1962_v22 }
 0x210   : > { %v1682_v51 = vsel %vm8038_vm2, %v1677_v14, %v1681_v12  ;;  %v821_v33 = vadd.f32 %v8457_v31, %v785_v57  ;;  %v1693_v16 = vshll.u32 %v8644_v5, 16  ;;  %v2026_v43 = vld [vmem:[#allocation2 + $0x84] sm:$0xf]  ;;  %v6183_v62 = vcombine.low %v1960_v56, %v1963_v17  ;;  %v1837_v17 = vld [vmem:[#allocation2 + $0x78] sm:$0xe] }
 0x211   : > { %v6167_v53 = vcombine.low %v1672_v54, %v1682_v51  ;;  %v819_v36 = vadd.f32 %v8457_v31, %v783_v0  ;;  %v1686_v3 = vrot.slane %v1684_v40, 4  ;;  %v1689_v4 = vrot.slane %v1687_v45, 5  ;;  %v8732_v0 = vld [vmem:[#allocation2 + $0x90] sm:$0xf] }
 0x212   : > { %v853_v13 = vmax.f32 %v821_v33, 0.0  ;;  %v1695_v34 = vrot.slane %v1693_v16, 5  ;;  %v1697_v12 = vshrl.u32 %v8644_v5, 16  ;;  %v10149_v50 = vshll.u32 %v8597_v25, 16  ;;  %4689 = vmatmul.mubr.bf16.gmra.mrb[52].mxu0 %v6183_v62 }
 0x213   : > { %4527 = vmatprep.mubr.bf16.mxu1 %v6167_v53  ;;  %v851_v28 = vmax.f32 %v819_v36, 0.0  ;;  %v1703_v22 = vshll.u32 %v8661_v23, 16  ;;  %v2295_v10 = vshrl.u32 %v2026_v43, 16  ;;  %v1690_v37 = vor.u32 %v1689_v4, %v1686_v3  ;;  %v1385_v4 = vld [vmem:[#allocation2 + $0xc0] sm:$0xf] }
 0x214   : > { %v8670_v26 = vrot.slane %v10149_v50, 5  ;;  %v6438_v9 = vpack.c.bf16 %v853_v13, %v853_v13  ;;  %4528 = vmatmul.mubr.bf16.gmra.mrb[52].mxu1 %v6151_v1  ;;  %v1699_v56 = vrot.slane %v1697_v12, 4  ;;  %v2298_v14 = vshll.u32 %v2026_v43, 16 }
 0x215   : > { %v6436_v61 = vpack.c.bf16 %v851_v28, %v851_v28  ;;  %v1705_v57 = vrot.slane %v1703_v22, 5  ;;  %v8673_v54 = vrot.slane %v2295_v10, 4  ;;  %v1691_v45 = vrot.slane %v1690_v37, 4  ;;  %v1378_v22 = vld [vmem:[#allocation2 + $0xb4] sm:$0xf] }
 0x216   : > { %v1210_v25 = vshrl.u32 %v6438_v9, 16  ;;  %v1213_v40 = vshll.u32 %v6438_v9, 16  ;;  %v1700_v51 = vor.u32 %v1699_v56, %v1695_v34  ;;  %v6200_v53 = vcombine.low %v2026_v43, %v8666_v42 }
 0x217   : > { %v1193_v33 = vshrl.u32 %v6436_v61, 16  ;;  %v1196_v16 = vshll.u32 %v6436_v61, 16  ;;  %v786_v1 = vmul.f32 %v8442_v49, %v8210_v52  ;;  %v1696_v36 = vsel %vm8038_vm2, %v1691_v45, %v1695_v34  ;;  %v8697_v61 = vld [vmem:[#allocation2 + $0x90] sm:$0xf] }
 0x218   : > { %v8679_v62 = vrot.slane %v1210_v25, 7  ;;  %v1701_v3 = vrot.slane %v1700_v51, 4  ;;  %v784_v13 = vmul.f32 %v8442_v49, %v8250_v63  ;;  %4696 = vmatprep.mubr.bf16.mxu0 %v6200_v53  ;;  %v6104_v28 = vrot.slane %v1837_v17, 9 }
 0x219   : > { %v8685_v12 = vrot.slane %v1193_v33, 7  ;;  %v822_v50 = vadd.f32 %v8457_v31, %v786_v1  ;;  %v1966_v43 = vrot.slane %v8644_v5, 5  ;;  %v8692_v34 = vrot.slane %v2298_v14, 5  ;;  %v8703_v14 = vld [vmem:[#allocation2 + $0x94] sm:$0xf] }
 0x21a   : > { %v1215_v52 = vor.u32 %v1213_v40, %v8679_v62  ;;  %v1706_v10 = vsel %vm8038_vm2, %v1701_v3, %v1705_v57  ;;  %v820_v9 = vadd.f32 %v8457_v31, %v784_v13  ;;  %v1216_v63 = vrot.slane %v8679_v62, 4  ;;  %10150 = vst [vmem:[#allocation25_spill] sm:$0xff] %v8703_v14  ;;  %v8715_v3 = vld [vmem:[#allocation2 + $0x88] sm:$0xf] }
 0x21b   : > { %v1198_v49 = vor.u32 %v1196_v16, %v8685_v12  ;;  %v6168_v37 = vcombine.low %v1696_v36, %v1706_v10  ;;  %v854_v56 = vmax.f32 %v822_v50, 0.0  ;;  %v1967_v45 = vsel %vm8046_vm5, %v6104_v28, %v1966_v43  ;;  %v8710_v16 = vld [vmem:[#allocation2 + $0x84] sm:$0xf] }
 0x21c   : > { %v1386_v25 = vsel %vm8106_vm11, %v1215_v52, %v1385_v4  ;;  %v852_v40 = vmax.f32 %v820_v9, 0.0  ;;  %v1968_v57 = vrot.slane %v1966_v43, 4  ;;  %v1969_v17 = vrot.slane %v8661_v23, 5  ;;  %v1389_v52 = vld [vmem:[#allocation2 + $0xc8] sm:$0x1] }
 0x21d   : > { %1387 = vst [vmem:[#allocation2 + $0xc0] sm:$0xf] %v1386_v25  ;;  %v1379_v31 = vsel %vm8106_vm11, %v1198_v49, %v1378_v22  ;;  %4535 = vmatprep.mubr.bf16.mxu1 %v6168_v37  ;;  %v6439_v51 = vpack.c.bf16 %v854_v56, %v854_v56  ;;  %v6152_v33 = vcombine.low %v8636_v19, %v8644_v5  ;;  %v1199_v53 = vrot.slane %v8685_v12, 4  ;;  %v1435_v5 = vld [vmem:[#allocation2 + $0x8c] sm:$0x1] }
 0x21e   : > { %1380 = vst [vmem:[#allocation2 + $0xb4] sm:$0xf] %v1379_v31  ;;  %v6437_v1 = vpack.c.bf16 %v852_v40, %v852_v40  ;;  %v2319_v62 = vshrl.u32 %v8697_v61, 16  ;;  %v2322_v36 = vshll.u32 %v8697_v61, 16  ;;  %v1970_v23 = vsel %vm8046_vm5, %v1968_v57, %v1969_v17  ;;  %v1382_v37 = vld [vmem:[#allocation2 + $0xbc] sm:$0x1] }
 0x21f   : > { %v1218_v27 = vshrl.u32 %v6439_v51, 16  ;;  %v1221_v13 = vshll.u32 %v6439_v51, 16  ;;  %4536 = vmatmul.mubr.bf16.gmra.mrb[56].mxu1 %v6152_v33  ;;  %v6184_v12 = vcombine.low %v1967_v45, %v1970_v23  ;;  %v6201_v28 = vcombine.low %v8697_v61, %v8703_v14  ;;  %v1838_v17 = vld [vmem:[#allocation2 + $0x84] sm:$0xe] }
 0x220   : > { %v1201_v4 = vshrl.u32 %v6437_v1, 16  ;;  %v1204_v50 = vshll.u32 %v6437_v1, 16  ;;  %v8722_v22 = vrot.slane %v2319_v62, 4  ;;  %v1708_v10 = vshrl.u32 %v8710_v16, 16 }
 0x221   : > { %v1220_v43 = vrot.slane %v1218_v27, 7  ;;  %v1711_v9 = vshll.u32 %v8710_v16, 16  ;;  %4697 = vmatmul.mubr.bf16.gmra.mrb[56].mxu0 %v6184_v12  ;;  %v1717_v56 = vshll.u32 %v8715_v3, 16  ;;  %v1721_v25 = vshrl.u32 %v8715_v3, 16 }
 0x222   : > { %v1203_v49 = vrot.slane %v1201_v4, 7  ;;  %v1727_v40 = vshll.u32 %v1435_v5, 16  ;;  %4704 = vmatprep.mubr.bf16.mxu0 %v6201_v28  ;;  %v1710_v31 = vrot.slane %v1708_v10, 4  ;;  %v6105_v10 = vrot.slane %v1838_v17, 9 }
 0x223   : > { %v1223_v45 = vor.u32 %v1221_v13, %v1220_v43  ;;  %v1225_v57 = vrot.slane %v1220_v43, 4  ;;  %v1713_v51 = vrot.slane %v1711_v9, 5  ;;  %v1719_v62 = vrot.slane %v1717_v56, 5  ;;  %v8734_v13 = vld [vmem:[#allocation2 + $0x94] sm:$0xf] }
 0x224   : > { %v1206_v33 = vor.u32 %v1204_v50, %v1203_v49  ;;  %v1208_v1 = vrot.slane %v1203_v49, 4  ;;  %v1723_v27 = vrot.slane %v1721_v25, 4  ;;  %v1729_v19 = vrot.slane %v1727_v40, 5  ;;  %v1436_v25 = vld [vmem:[#allocation2 + $0x98] sm:$0x1] }
 0x225   : > { %v1224_v23 = vsel %vm8115_vm12, %v1216_v63, %v1223_v45  ;;  %v1390_v4 = vsel %vm8121_vm13, %v1225_v57, %v1389_v52  ;;  %v1714_v12 = vor.u32 %v1713_v51, %v1710_v31  ;;  %v1973_v52 = vrot.slane %v8715_v3, 5  ;;  %v2030_v57 = vld [vmem:[#allocation2 + $0x9c] sm:$0xf] }
 0x226   : > { %1388 = vst [vmem:[#allocation2 + $0xc4] sm:$0xf] %v1224_v23  ;;  %1391 = vst [vmem:[#allocation2 + $0xc8] sm:$0x1] %v1390_v4  ;;  %v1207_v50 = vsel %vm8115_vm12, %v1199_v53, %v1206_v33  ;;  %v1383_v28 = vsel %vm8121_vm13, %v1208_v1, %v1382_v37  ;;  %v1724_v43 = vor.u32 %v1723_v27, %v1719_v62  ;;  %v1976_v9 = vrot.slane %v1435_v5, 5 }
 0x227   : > { %1381 = vst [vmem:[#allocation2 + $0xb8] sm:$0xf] %v1207_v50  ;;  %1384 = vst [vmem:[#allocation2 + $0xbc] sm:$0x1] %v1383_v28  ;;  %v1715_v63 = vrot.slane %v1714_v12, 4  ;;  %v6153_v49 = vcombine.low %v8710_v16, %v8715_v3  ;;  %v1732_v40 = vshrl.u32 %v8732_v0, 16  ;;  %v1974_v37 = vsel %vm8046_vm5, %v6105_v10, %v1973_v52 }
 0x228   : > { %v1725_v56 = vrot.slane %v1724_v43, 4  ;;  %v1735_v39 = vshll.u32 %v8732_v0, 16  ;;  %v1741_v44 = vshll.u32 %v8734_v13, 16  ;;  %v1975_v45 = vrot.slane %v1973_v52, 4  ;;  %v1839_v23 = vld [vmem:[#allocation2 + $0x90] sm:$0xe] }
 0x229   : > { %v1720_v53 = vsel %vm8038_vm2, %v1715_v63, %v1719_v62  ;;  %v1745_v5 = vshrl.u32 %v8734_v13, 16  ;;  %v1734_v3 = vrot.slane %v1732_v40, 4  ;;  %v1751_v27 = vshll.u32 %v1436_v25, 16  ;;  %v8755_v62 = vld [vmem:[#allocation2 + $0xa0] sm:$0xf] }
 0x22a   : > { %v1730_v16 = vsel %vm8038_vm2, %v1725_v56, %v1729_v19  ;;  %v1737_v31 = vrot.slane %v1735_v39, 5  ;;  %v1743_v51 = vrot.slane %v1741_v44, 5  ;;  %v1977_v33 = vsel %vm8046_vm5, %v1975_v45, %v1976_v9  ;;  %10151 = vst [vmem:[#allocation26_spill] sm:$0xff] %v8755_v62  ;;  %v2032_v52 = vld [vmem:[#allocation2 + $0xa8] sm:$0xf] }
 0x22b   : > { %v6169_v17 = vcombine.low %v1720_v53, %v1730_v16  ;;  %v1747_v1 = vrot.slane %v1745_v5, 4  ;;  %v6185_v4 = vcombine.low %v1974_v37, %v1977_v33  ;;  %v2343_v50 = vshrl.u32 %v2030_v57, 16  ;;  %v8765_v44 = vld [vmem:[#allocation2 + $0xac] sm:$0xf]  ;;  %v8770_v45 = vld [vmem:[#allocation2 + $0x9c] sm:$0xf] }
 0x22c   : > { %v1738_v12 = vor.u32 %v1737_v31, %v1734_v3  ;;  %v2346_v28 = vshll.u32 %v2030_v57, 16  ;;  %v8759_v43 = vrot.slane %v2322_v36, 5  ;;  %v1753_v10 = vrot.slane %v1751_v27, 5  ;;  %10154 = vst [vmem:[#allocation29_spill] sm:$0xff] %v8765_v44  ;;  %v8776_v3 = vld [vmem:[#allocation2 + $0xa0] sm:$0xf] }
 0x22d   : > { %4543 = vmatprep.mubr.bf16.mxu1 %v6169_v17  ;;  %v1748_v19 = vor.u32 %v1747_v1, %v1743_v51  ;;  %v6202_v63 = vcombine.low %v2030_v57, %v8755_v62  ;;  %4705 = vmatmul.mubr.bf16.gmra.mrb[60].mxu0 %v6185_v4  ;;  %v8762_v56 = vrot.slane %v2343_v50, 4  ;;  %v6106_v39 = vrot.slane %v1839_v23, 9  ;;  %v1840_v31 = vld [vmem:[#allocation2 + $0x9c] sm:$0xe]  ;;  %v1437_v27 = vld [vmem:[#allocation2 + $0xa4] sm:$0x1] }
 0x22e   : > { %10152 = vst [vmem:[#allocation27_spill] sm:$0xff] %v8759_v43  ;;  %4544 = vmatmul.mubr.bf16.gmra.mrb[60].mxu1 %v6153_v49  ;;  %v1739_v9 = vrot.slane %v1738_v12, 4  ;;  %v8767_v61 = vrot.slane %v2346_v28, 5  ;;  %v1980_v36 = vrot.slane %v8734_v13, 5  ;;  %v1983_v37 = vrot.slane %v1436_v25, 5  ;;  %v8783_v23 = vpop.f32.mrb[16].mxu1 }
 0x22f   : > { %10153 = vst [vmem:[#allocation28_spill] sm:$0xff] %v8762_v56  ;;  %v1749_v53 = vrot.slane %v1748_v19, 4  ;;  %4712 = vmatprep.mubr.bf16.mxu0 %v6202_v63  ;;  %v6154_v5 = vcombine.low %v8732_v0, %v8734_v13  ;;  %v2367_v57 = vshrl.u32 %v2032_v52, 16  ;;  %v2370_v16 = vshll.u32 %v2032_v52, 16  ;;  %v8801_v40 = vld [vmem:[#allocation2 + $0xb0] sm:$0x1] }
 0x230   : > { %10155 = vst [vmem:[#allocation30_spill] sm:$0xff] %v8767_v61  ;;  %v1744_v49 = vsel %vm8038_vm2, %v1739_v9, %v1743_v51  ;;  %v1981_v33 = vsel %vm8046_vm5, %v6106_v39, %v1980_v36  ;;  %v1982_v25 = vrot.slane %v1980_v36, 4  ;;  %v6203_v0 = vcombine.low %v2032_v52, %v8765_v44  ;;  %v2036_v43 = vld [vmem:[#allocation2 + $0xc0] sm:$0xf] }
 0x231   : > { %v1754_v17 = vsel %vm8038_vm2, %v1749_v53, %v1753_v10  ;;  %v8785_v4 = vrot.slane %v2367_v57, 4  ;;  %v1756_v13 = vshrl.u32 %v8770_v45, 16  ;;  %v1759_v50 = vshll.u32 %v8770_v45, 16  ;;  %v8794_v10 = vld [vmem:[#allocation2 + $0xa8] sm:$0xf] }
 0x232   : > { %v6170_v51 = vcombine.low %v1744_v49, %v1754_v17  ;;  %v1984_v12 = vsel %vm8046_vm5, %v1982_v25, %v1983_v37  ;;  %v1765_v28 = vshll.u32 %v8776_v3, 16  ;;  %v1769_v19 = vshrl.u32 %v8776_v3, 16  ;;  %v8797_v17 = vld [vmem:[#allocation2 + $0xac] sm:$0xf] }
 0x233   : > { %10156 = vst [vmem:[#allocation31_spill] sm:$0xff] %v8785_v4  ;;  %v6186_v63 = vcombine.low %v1981_v33, %v1984_v12  ;;  %v1758_v9 = vrot.slane %v1756_v13, 4  ;;  %v1775_v39 = vshll.u32 %v1437_v27, 16  ;;  %v6107_v53 = vrot.slane %v1840_v31, 9 }
 0x234   : > { %4551 = vmatprep.mubr.bf16.mxu1 %v6170_v51  ;;  %v1761_v36 = vrot.slane %v1759_v50, 5  ;;  %v1767_v52 = vrot.slane %v1765_v28, 5  ;;  %v1771_v49 = vrot.slane %v1769_v19, 4  ;;  %v1987_v57 = vrot.slane %v8776_v3, 5  ;;  %v2034_v50 = vld [vmem:[#allocation2 + $0xb4] sm:$0xf] }
 0x235   : > { %4713 = vmatmul.mubr.bf16.gmra.mrb[64].mxu0 %v6186_v63  ;;  %v8799_v37 = vrot.slane %v2370_v16, 5  ;;  %v1777_v25 = vrot.slane %v1775_v39, 5  ;;  %v1990_v1 = vrot.slane %v1437_v27, 5  ;;  %v1780_v33 = vshrl.u32 %v8794_v10, 16  ;;  %v8806_v28 = vpop.f32.mrb[17].mxu1 }
 0x236   : > { %4552 = vmatmul.mubr.bf16.gmra.mrb[64].mxu1 %v6154_v5  ;;  %4720 = vmatprep.mubr.bf16.mxu0 %v6203_v0  ;;  %v1762_v51 = vor.u32 %v1761_v36, %v1758_v9  ;;  %v1772_v31 = vor.u32 %v1771_v49, %v1767_v52  ;;  %v1988_v13 = vsel %vm8046_vm5, %v6107_v53, %v1987_v57  ;;  %v1989_v12 = vrot.slane %v1987_v57, 4  ;;  %v8811_v63 = vpop.f32.mrb[18].mxu1 }
 0x237   : > { %10157 = vst [vmem:[#allocation32_spill] sm:$0xff] %v8799_v37  ;;  %v1782_v19 = vrot.slane %v1780_v33, 4  ;;  %v1783_v5 = vshll.u32 %v8794_v10, 16  ;;  %v1789_v16 = vshll.u32 %v8797_v17, 16  ;;  %v1793_v27 = vshrl.u32 %v8797_v17, 16  ;;  %v8816_v36 = vpop.f32.mrb[19].mxu1 }
 0x238   : > { %v1763_v39 = vrot.slane %v1762_v51, 4  ;;  %v1773_v0 = vrot.slane %v1772_v31, 4  ;;  %v1991_v9 = vsel %vm8046_vm5, %v1989_v12, %v1990_v1  ;;  %v1799_v53 = vshll.u32 %v8801_v40, 16  ;;  %v1841_v37 = vld [vmem:[#allocation2 + $0xa8] sm:$0xe] }
 0x239   : > { %v6187_v49 = vcombine.low %v1988_v13, %v1991_v9  ;;  %v1785_v57 = vrot.slane %v1783_v5, 5  ;;  %v1791_v33 = vrot.slane %v1789_v16, 5  ;;  %v1795_v44 = vrot.slane %v1793_v27, 4  ;;  %v8822_v31 = vld [vmem:[#allocation2 + $0xb8] sm:$0xf] }
 0x23a   : > { %v1768_v4 = vsel %vm8038_vm2, %v1763_v39, %v1767_v52  ;;  %v1778_v62 = vsel %vm8038_vm2, %v1773_v0, %v1777_v25  ;;  %v1801_v51 = vrot.slane %v1799_v53, 5  ;;  %10158 = vst [vmem:[#allocation33_spill] sm:$0xff] %v8822_v31  ;;  %v2391_v61 = vshrl.u32 %v2034_v50, 16  ;;  %v8844_v9 = vld [vmem:[#allocation2 + $0xb8] sm:$0xf] }
 0x23b   : > { %v6171_v1 = vcombine.low %v1768_v4, %v1778_v62  ;;  %v1786_v12 = vor.u32 %v1785_v57, %v1782_v19  ;;  %v1796_v56 = vor.u32 %v1795_v44, %v1791_v33  ;;  %v2394_v14 = vshll.u32 %v2034_v50, 16  ;;  %v8831_v4 = vld [vmem:[#allocation2 + $0xb4] sm:$0xf] }
 0x23c   : > { %v6155_v13 = vcombine.low %v8770_v45, %v8776_v3  ;;  %v8826_v5 = vrot.slane %v2391_v61, 4  ;;  %v6204_v16 = vcombine.low %v2034_v50, %v8822_v31  ;;  %v6108_v52 = vrot.slane %v1841_v37, 9  ;;  %v8836_v45 = vld [vmem:[#allocation2 + $0xc4] sm:$0xf] }
 0x23d   : > { %4559 = vmatprep.mubr.bf16.mxu1 %v6171_v1  ;;  %4721 = vmatmul.mubr.bf16.gmra.mrb[68].mxu0 %v6187_v49  ;;  %v1787_v25 = vrot.slane %v1786_v12, 4  ;;  %v1797_v27 = vrot.slane %v1796_v56, 4  ;;  %v1994_v62 = vrot.slane %v8797_v17, 5  ;;  %v8833_v44 = vrot.slane %v2394_v14, 5  ;;  %10161 = vst [vmem:[#allocation36_spill] sm:$0xff] %v8836_v45 }
 0x23e   : > { %10159 = vst [vmem:[#allocation34_spill] sm:$0xff] %v8826_v5  ;;  %4560 = vmatmul.mubr.bf16.gmra.mrb[68].mxu1 %v6155_v13  ;;  %4728 = vmatprep.mubr.bf16.mxu0 %v6204_v16  ;;  %v1997_v61 = vrot.slane %v8801_v40, 5  ;;  %v2415_v3 = vshrl.u32 %v2036_v43, 16  ;;  %v2418_v37 = vshll.u32 %v2036_v43, 16  ;;  %v1439_v14 = vld [vmem:[#allocation2 + $0xbc] sm:$0x1]  ;;  %v6156_v40 = vcombine.low %v8794_v10, %v8797_v17 }
 0x23f   : > { %10160 = vst [vmem:[#allocation35_spill] sm:$0xff] %v8833_v44  ;;  %v1792_v50 = vsel %vm8038_vm2, %v1787_v25, %v1791_v33  ;;  %v1802_v56 = vsel %vm8038_vm2, %v1797_v27, %v1801_v51  ;;  %v1995_v19 = vsel %vm8046_vm5, %v6108_v52, %v1994_v62  ;;  %v1996_v0 = vrot.slane %v1994_v62, 4  ;;  %v1842_v1 = vld [vmem:[#allocation2 + $0xb4] sm:$0xe]  ;;  %v8859_v25 = vld [vmem:[#allocation2 + $0x18] sm:$0xf] }
 0x240   : > { %v6172_v53 = vcombine.low %v1792_v50, %v1802_v56  ;;  %v8848_v49 = vrot.slane %v2415_v3, 4  ;;  %v8850_v57 = vrot.slane %v2418_v37, 5  ;;  %v1804_v12 = vshrl.u32 %v8831_v4, 16  ;;  %v8862_v37 = vld [vmem:[#allocation2 + $0x1c] sm:$0xf] }
 0x241   : > { %v1998_v33 = vsel %vm8046_vm5, %v1996_v0, %v1997_v61  ;;  %v1807_v13 = vshll.u32 %v8831_v4, 16  ;;  %v1813_v52 = vshll.u32 %v8844_v9, 16  ;;  %v1817_v10 = vshrl.u32 %v8844_v9, 16  ;;  %v8879_v31 = vld [vmem:[#allocation2 + $0x24] sm:$0xf] }
 0x242   : > { %10162 = vst [vmem:[#allocation37_spill] sm:$0xff] %v8848_v49  ;;  %10163 = vst [vmem:[#allocation38_spill] sm:$0xff] %v8850_v57  ;;  %4567 = vmatprep.mubr.bf16.mxu1 %v6172_v53  ;;  %v6188_v16 = vcombine.low %v1995_v19, %v1998_v33  ;;  %v1823_v17 = vshll.u32 %v1439_v14, 16  ;;  %v1806_v27 = vrot.slane %v1804_v12, 4  ;;  %v6109_v3 = vrot.slane %v1842_v1, 9 }
 0x243   : > { %v1809_v62 = vrot.slane %v1807_v13, 5  ;;  %v2001_v61 = vrot.slane %v8844_v9, 5  ;;  %v6205_v50 = vcombine.low %v2036_v43, %v8836_v45  ;;  %v1815_v56 = vrot.slane %v1813_v52, 5  ;;  %v2647_v19 = vld [vmem:[#allocation2 + $0x20] sm:$0x1] }
 0x244   : > { %v1819_v0 = vrot.slane %v1817_v10, 4  ;;  %v2004_v53 = vrot.slane %v1439_v14, 5  ;;  %v1825_v51 = vrot.slane %v1823_v17, 5  ;;  %v2664_v12 = vshrl.u32 %v8859_v25, 16  ;;  %v2038_v17 = vld [vmem:[#allocation2 + $0x14] sm:$0x1] }
 0x245   : > { %4729 = vmatmul.mubr.bf16.gmra.mrb[72].mxu0 %v6188_v16  ;;  %v1810_v33 = vor.u32 %v1809_v62, %v1806_v27  ;;  %v2002_v39 = vsel %vm8046_vm5, %v6109_v3, %v2001_v61  ;;  %v2003_v57 = vrot.slane %v2001_v61, 4  ;;  %v2667_v13 = vshll.u32 %v8859_v25, 16  ;;  %v2438_v61 = vld [vmem:[#allocation2 + $0xc] sm:$0xe] }
 0x246   : > { %4568 = vmatmul.mubr.bf16.gmra.mrb[72].mxu1 %v6156_v40  ;;  %4736 = vmatprep.mubr.bf16.mxu0 %v6205_v50  ;;  %v1820_v1 = vor.u32 %v1819_v0, %v1815_v56  ;;  %v2673_v43 = vshll.u32 %v8862_v37, 16  ;;  %v2677_v16 = vshrl.u32 %v8862_v37, 16  ;;  %v2683_v10 = vshll.u32 %v2647_v19, 16 }
 0x247   : > { %v1811_v52 = vrot.slane %v1810_v33, 4  ;;  %v2005_v14 = vsel %vm8046_vm5, %v2003_v57, %v2004_v53  ;;  %v6157_v40 = vcombine.low %v8831_v4, %v8844_v9  ;;  %v2666_v62 = vrot.slane %v2664_v12, 4  ;;  %v7500_v9 = vld [vmem:[#allocation2 + $0x10] sm:$0xf] }
 0x248   : > { %v1821_v27 = vrot.slane %v1820_v1, 4  ;;  %v2669_v3 = vrot.slane %v2667_v13, 5  ;;  %v6189_v0 = vcombine.low %v2002_v39, %v2005_v14  ;;  %v2675_v45 = vrot.slane %v2673_v43, 5  ;;  %v8881_v13 = vld [vmem:[#allocation2 + $0x28] sm:$0xf] }
 0x249   : > { %v1816_v50 = vsel %vm8038_vm2, %v1811_v52, %v1815_v56  ;;  %v2679_v33 = vrot.slane %v2677_v16, 4  ;;  %v2685_v49 = vrot.slane %v2683_v10, 5  ;;  %v2074_v19 = vshll.u32 %v2038_v17, 16 }
 0x24a   : > { %v1826_v57 = vsel %vm8038_vm2, %v1821_v27, %v1825_v51  ;;  %v2670_v53 = vor.u32 %v2669_v3, %v2666_v62  ;;  %v6110_v4 = vrot.slane %v2438_v61, 9  ;;  %v2504_v12 = vrot.slane %v7500_v9, 5  ;;  %v2439_v27 = vld [vmem:[#allocation2 + $0x18] sm:$0xe]  ;;  %v2039_v3 = vld [vmem:[#allocation2 + $0x20] sm:$0x1] }
 0x24b   : > { %v6173_v1 = vcombine.low %v1816_v50, %v1826_v57  ;;  %v2680_v44 = vor.u32 %v2679_v33, %v2675_v45  ;;  %v2076_v56 = vrot.slane %v2074_v19, 5  ;;  %v2507_v39 = vrot.slane %v2038_v17, 5 }
 0x24c   : > { %v2671_v5 = vrot.slane %v2670_v53, 4  ;;  %v6238_v43 = vcombine.low %v8859_v25, %v8862_v37  ;;  %v2506_v52 = vrot.slane %v2504_v12, 4  ;;  %v2067_v14 = vsel %vm8038_vm2, %v8217_v60, %v8213_v55  ;;  %v2648_v25 = vld [vmem:[#allocation2 + $0x2c] sm:$0x1] }
 0x24d   : > { %4575 = vmatprep.mubr.bf16.mxu1 %v6173_v1  ;;  %4737 = vmatmul.mubr.bf16.gmra.mrb[76].mxu0 %v6189_v0  ;;  %v2681_v51 = vrot.slane %v2680_v44, 4  ;;  %v2688_v16 = vshrl.u32 %v8879_v31, 16  ;;  %v2505_v10 = vsel %vm8046_vm5, %v6110_v4, %v2504_v12  ;;  %v2077_v17 = vsel %vm8038_vm2, %v8243_v29, %v2076_v56 }
 0x24e   : > { %4576 = vmatmul.mubr.bf16.gmra.mrb[76].mxu1 %v6157_v40  ;;  %v2691_v37 = vshll.u32 %v8879_v31, 16  ;;  %v2697_v44 = vshll.u32 %v8881_v13, 16  ;;  %v2676_v62 = vsel %vm8038_vm2, %v2671_v5, %v2675_v45  ;;  %v2508_v60 = vsel %vm8046_vm5, %v2506_v52, %v2507_v39  ;;  %v7501_v45 = vld [vmem:[#allocation2 + $0x1c] sm:$0xf] }
 0x24f   : > { %v2686_v55 = vsel %vm8038_vm2, %v2681_v51, %v2685_v49  ;;  %v2690_v40 = vrot.slane %v2688_v16, 4  ;;  %v6222_v50 = vcombine.low %v2505_v10, %v2508_v60  ;;  %v6206_v29 = vcombine.low %v2067_v14, %v2077_v17  ;;  %v8908_v51 = vld [vmem:[#allocation2 + $0x30] sm:$0xf] }
 0x250   : > { %v6254_v61 = vcombine.low %v2676_v62, %v2686_v55  ;;  %v2693_v0 = vrot.slane %v2691_v37, 5  ;;  %v2699_v33 = vrot.slane %v2697_v44, 5  ;;  %v2701_v57 = vshrl.u32 %v8881_v13, 16  ;;  %v2649_v62 = vld [vmem:[#allocation2 + $0x38] sm:$0x1] }
 0x251   : > { %v2707_v53 = vshll.u32 %v2648_v25, 16  ;;  %v6111_v19 = vrot.slane %v2439_v27, 9  ;;  %4777 = vmatprep.mubr.bf16.mxu1 %v6222_v50  ;;  %v2511_v1 = vrot.slane %v7501_v45, 5  ;;  %v2514_v49 = vrot.slane %v2039_v3, 5  ;;  %v7454_v25 = vld [vmem:[#allocation8 + $0x208] sm:$0xff]  }
 0x252   : > { %4938 = vmatprep.mubr.bf16.mxu0 %v6254_v61  ;;  %v2694_v5 = vor.u32 %v2693_v0, %v2690_v40  ;;  %v6239_v4 = vcombine.low %v8879_v31, %v8881_v13  ;;  %v2703_v9 = vrot.slane %v2701_v57, 4  ;;  %v2085_v56 = vor.u32 %v8226_v8, %v8224_v47  ;;  %v8914_v27 = vld [vmem:[#allocation2 + $0x34] sm:$0xf]  ;;  %v2440_v50 = vld [vmem:[#allocation2 + $0x24] sm:$0xe] }
 0x253   : > { %v2709_v12 = vrot.slane %v2707_v53, 5  ;;  %v2088_v39 = vshll.u32 %v7501_v45, 16  ;;  %v2512_v14 = vsel %vm8046_vm5, %v6111_v19, %v2511_v1  ;;  %v2513_v16 = vrot.slane %v2511_v1, 4  ;;  %v7457_v53 = vld [vmem:[#allocation8 + $0x210] sm:$0xff]  }
 0x254   : > { %v2695_v52 = vrot.slane %v2694_v5, 4  ;;  %v10164_v10 = vshrl.u32 %v8215_v41, 16  ;;  %v2704_v37 = vor.u32 %v2703_v9, %v2699_v33  ;;  %v2086_v31 = vrot.slane %v2085_v56, 4 }
 0x255   : > { %4939 = vmatmul.mubr.bf16.vlgmr.msra.gmra.mrb[80].mxu0 %v6238_v43  ;;  %v2090_v13 = vrot.slane %v2088_v39, 5  ;;  %v2098_v44 = vshll.u32 %v2039_v3, 16  ;;  %v2515_v8 = vsel %vm8046_vm5, %v2513_v16, %v2514_v49  ;;  %v2712_v55 = vshrl.u32 %v8908_v51, 16  ;;  %v7502_v43 = vld [vmem:[#allocation8 + $0x200] sm:$0xff]   ;;  %v2040_v49 = vld [vmem:[#allocation2 + $0x2c] sm:$0x1] }
 0x256   : > { %v2094_v17 = vrot.slane %v10164_v10, 4  ;;  %4778 = vmatmul.mubr.bf16.vlgmr.msra.gmra.mrb[80].mxu1 %v6206_v29  ;;  %v2700_v47 = vsel %vm8038_vm2, %v2695_v52, %v2699_v33  ;;  %v2715_v41 = vshll.u32 %v8908_v51, 16  ;;  %v2705_v60 = vrot.slane %v2704_v37, 4 }
 0x257   : > { %7137 = vmatpush3.bf16.msra.mxu1 %v7502_v43  ;;  %v6223_v40 = vcombine.low %v2512_v14, %v2515_v8  ;;  %v2091_v3 = vsel %vm8038_vm2, %v2086_v31, %v2090_v13  ;;  %v2100_v29 = vrot.slane %v2098_v44, 5  ;;  %v2714_v0 = vrot.slane %v2712_v55, 4  ;;  %v8932_v8 = vld [vmem:[#allocation2 + $0x3c] sm:$0xf] }
 0x258   : > { %v2095_v61 = vor.u32 %v2094_v17, %v2090_v13  ;;  %v2717_v33 = vrot.slane %v2715_v41, 5  ;;  %v2721_v57 = vshll.u32 %v8914_v27, 16  ;;  %7138 = vmatprep.subr.bf16.mxu1 %v7454_v25  ;;  %v2710_v19 = vsel %vm8038_vm2, %v2705_v60, %v2709_v12  ;;  %v7503_v17 = vld [vmem:[#allocation2 + $0x28] sm:$0xf] }
 0x259   : > { %4785 = vmatprep.mubr.bf16.mxu1 %v6223_v40  ;;  %v2725_v45 = vshrl.u32 %v8914_v27, 16  ;;  %v2731_v1 = vshll.u32 %v2649_v62, 16  ;;  %v6255_v9 = vcombine.low %v2700_v47, %v2710_v19  ;;  %v6112_v52 = vrot.slane %v2440_v50, 9  ;;  %v7460_v47 = vld [vmem:[#allocation8 + $0x218] sm:$0xff]  }
 0x25a   : > { %v2096_v5 = vrot.slane %v2095_v61, 4  ;;  %v2718_v56 = vor.u32 %v2717_v33, %v2714_v0  ;;  %v2723_v39 = vrot.slane %v2721_v57, 5  ;;  %v2518_v37 = vrot.slane %v7503_v17, 5  ;;  %v2441_v0 = vld [vmem:[#allocation2 + $0x30] sm:$0xe] }
 0x25b   : > { %v2727_v16 = vrot.slane %v2725_v45, 4  ;;  %v2733_v10 = vrot.slane %v2731_v1, 5  ;;  %7139 = vmatpush3.bf16.msra.mxu1 %v7454_v25  ;;  %4946 = vmatprep.mubr.bf16.mxu0 %v6255_v9  ;;  %v2521_v13 = vrot.slane %v2040_v49, 5  ;;  %v6240_v44 = vcombine.low %v8908_v51, %v8914_v27  ;;  %v2650_v57 = vld [vmem:[#allocation2 + $0x44] sm:$0x1] }
 0x25c   : > { %v2101_v14 = vsel %vm8038_vm2, %v2096_v5, %v2100_v29  ;;  %v2719_v31 = vrot.slane %v2718_v56, 4  ;;  %7140 = vmatprep.subr.bf16.mxu1 %v7457_v53  ;;  %v2519_v55 = vsel %vm8046_vm5, %v6112_v52, %v2518_v37  ;;  %v2520_v41 = vrot.slane %v2518_v37, 4  ;;  %v2041_v9 = vld [vmem:[#allocation2 + $0x38] sm:$0x1] }
 0x25d   : > { %v6207_v12 = vcombine.low %v2091_v3, %v2101_v14  ;;  %4947 = vmatmul.mubr.bf16.gmra.mrb[84].mxu0 %v6239_v4  ;;  %v2728_v62 = vor.u32 %v2727_v16, %v2723_v39  ;;  %v2109_v25 = vor.u32 %v8283_v48, %v8281_v58  ;;  %v2112_v43 = vshll.u32 %v7503_v17, 16  ;;  %v8942_v3 = vld [vmem:[#allocation2 + $0x40] sm:$0xf] }
 0x25e   : > { %v2724_v60 = vsel %vm8038_vm2, %v2719_v31, %v2723_v39  ;;  %v10165_v51 = vshrl.u32 %v8275_v38, 16  ;;  %v2122_v40 = vshll.u32 %v2040_v49, 16  ;;  %v2522_v61 = vsel %vm8046_vm5, %v2520_v41, %v2521_v13  ;;  %v7463_v38 = vld [vmem:[#allocation8 + $0x220] sm:$0xff]   ;;  %v7504_v31 = vld [vmem:[#allocation2 + $0x34] sm:$0xf] }
 0x25f   : > { %4786 = vmatmul.mubr.bf16.gmra.mrb[84].mxu1 %v6207_v12  ;;  %v2729_v4 = vrot.slane %v2728_v62, 4  ;;  %v2110_v50 = vrot.slane %v2109_v25, 4  ;;  %v2736_v29 = vshrl.u32 %v8932_v8, 16  ;;  %v6224_v58 = vcombine.low %v2519_v55, %v2522_v61  ;;  %v7466_v55 = vld [vmem:[#allocation8 + $0x228] sm:$0xff]  }
 0x260   : > { %v2118_v27 = vrot.slane %v10165_v51, 4  ;;  %7141 = vmatpush3.bf16.msra.mxu1 %v7457_v53  ;;  %v2114_v48 = vrot.slane %v2112_v43, 5  ;;  %v2124_v33 = vrot.slane %v2122_v40, 5  ;;  %v2739_v19 = vshll.u32 %v8932_v8, 16 }
 0x261   : > { %7142 = vmatprep.subr.bf16.mxu1 %v7460_v47  ;;  %v2734_v5 = vsel %vm8038_vm2, %v2729_v4, %v2733_v10  ;;  %v2738_v45 = vrot.slane %v2736_v29, 4  ;;  %v2745_v1 = vshll.u32 %v8942_v3, 16  ;;  %v2749_v49 = vshrl.u32 %v8942_v3, 16  ;;  %4793 = vmatprep.mubr.bf16.mxu1 %v6224_v58  ;;  %v8962_v4 = vld [vmem:[#allocation2 + $0x48] sm:$0xf] }
 0x262   : > { %v6256_v56 = vcombine.low %v2724_v60, %v2734_v5  ;;  %v2115_v53 = vsel %vm8038_vm2, %v2110_v50, %v2114_v48  ;;  %v2119_v39 = vor.u32 %v2118_v27, %v2114_v48  ;;  %v2741_v52 = vrot.slane %v2739_v19, 5 }
 0x263   : > { %v2747_v14 = vrot.slane %v2745_v1, 5  ;;  %v2751_v16 = vrot.slane %v2749_v49, 4  ;;  %v2755_v17 = vshll.u32 %v2650_v57, 16  ;;  %v6113_v37 = vrot.slane %v2441_v0, 9  ;;  %v8964_v0 = vld [vmem:[#allocation2 + $0x4c] sm:$0xf] }
 0x264   : > { %7143 = vmatpush3.bf16.msra.mxu1 %v7460_v47  ;;  %4954 = vmatprep.mubr.bf16.mxu0 %v6256_v56  ;;  %v2120_v10 = vrot.slane %v2119_v39, 4  ;;  %v2742_v12 = vor.u32 %v2741_v52, %v2738_v45  ;;  %v2525_v13 = vrot.slane %v7504_v31, 5  ;;  %v2528_v62 = vrot.slane %v2041_v9, 5  ;;  %v2651_v45 = vld [vmem:[#allocation2 + $0x50] sm:$0x1] }
 0x265   : > { %7144 = vmatprep.subr.bf16.mxu1 %v7463_v38  ;;  %4955 = vmatmul.mubr.bf16.gmra.mrb[88].mxu0 %v6240_v44  ;;  %v2752_v41 = vor.u32 %v2751_v16, %v2747_v14  ;;  %v2757_v25 = vrot.slane %v2755_v17, 5  ;;  %v6241_v60 = vcombine.low %v8932_v8, %v8942_v3  ;;  %v2133_v43 = vor.u32 %v8351_v46, %v8327_v32  ;;  %v10166_v8 = vld [vmem:[#allocation17_spill] sm:$0xff]  ;;  %v2042_v52 = vld [vmem:[#allocation2 + $0x44] sm:$0x1] }
 0x266   : > { %v2125_v47 = vsel %vm8038_vm2, %v2120_v10, %v2124_v33  ;;  %v2743_v51 = vrot.slane %v2742_v12, 4  ;;  %v2526_v27 = vsel %vm8046_vm5, %v6113_v37, %v2525_v13  ;;  %v2527_v40 = vrot.slane %v2525_v13, 4  ;;  %v7469_v33 = vld [vmem:[#allocation8 + $0x230] sm:$0xff]   ;;  %v2442_v1 = vld [vmem:[#allocation2 + $0x3c] sm:$0xe]  ;;  %v7472_v13 = vld [vmem:[#allocation8 + $0x238] sm:$0xff]  }
 0x267   : > { %v6208_v61 = vcombine.low %v2115_v53, %v2125_v47  ;;  %v2753_v44 = vrot.slane %v2752_v41, 4  ;;  %v2134_v50 = vrot.slane %v2133_v43, 4  ;;  %v2136_v29 = vshll.u32 %v7504_v31, 16 }
 0x268   : > { %7145 = vmatpush3.bf16.msra.mxu1 %v7463_v38  ;;  %v2748_v32 = vsel %vm8038_vm2, %v2743_v51, %v2747_v14  ;;  %v2529_v46 = vsel %vm8046_vm5, %v2527_v40, %v2528_v62  ;;  %v10167_v3 = vshrl.u32 %v10166_v8, 16  ;;  %v2146_v48 = vshll.u32 %v2041_v9, 16 }
 0x269   : > { %7146 = vmatprep.subr.bf16.mxu1 %v7466_v55  ;;  %4794 = vmatmul.mubr.bf16.gmra.mrb[88].mxu1 %v6208_v61  ;;  %v2758_v57 = vsel %vm8038_vm2, %v2753_v44, %v2757_v25  ;;  %v6225_v19 = vcombine.low %v2526_v27, %v2529_v46  ;;  %v2138_v5 = vrot.slane %v2136_v29, 5  ;;  %v2760_v38 = vshrl.u32 %v8962_v4, 16  ;;  %v7505_v25 = vld [vmem:[#allocation2 + $0x40] sm:$0xf]  ;;  %v8988_v29 = vld [vmem:[#allocation2 + $0x54] sm:$0xf] }
 0x26a   : > { %v2142_v58 = vrot.slane %v10167_v3, 4  ;;  %v6257_v49 = vcombine.low %v2748_v32, %v2758_v57  ;;  %v2148_v56 = vrot.slane %v2146_v48, 5  ;;  %v2763_v53 = vshll.u32 %v8962_v4, 16 }
 0x26b   : > { %v2769_v39 = vshll.u32 %v8964_v0, 16  ;;  %4801 = vmatprep.mubr.bf16.mxu1 %v6225_v19  ;;  %v2139_v9 = vsel %vm8038_vm2, %v2134_v50, %v2138_v5  ;;  %v2762_v16 = vrot.slane %v2760_v38, 4  ;;  %v2773_v17 = vshrl.u32 %v8964_v0, 16  ;;  %v2043_v38 = vld [vmem:[#allocation2 + $0x50] sm:$0x1] }
 0x26c   : > { %v2143_v14 = vor.u32 %v2142_v58, %v2138_v5  ;;  %7147 = vmatpush3.bf16.msra.mxu1 %v7466_v55  ;;  %4962 = vmatprep.mubr.bf16.mxu0 %v6257_v49  ;;  %v2765_v37 = vrot.slane %v2763_v53, 5  ;;  %v2779_v12 = vshll.u32 %v2651_v45, 16  ;;  %v6114_v31 = vrot.slane %v2442_v1, 9  ;;  %v8990_v58 = vld [vmem:[#allocation2 + $0x58] sm:$0xf] }
 0x26d   : > { %v2771_v10 = vrot.slane %v2769_v39, 5  ;;  %7148 = vmatprep.subr.bf16.mxu1 %v7469_v33  ;;  %4963 = vmatmul.mubr.bf16.gmra.mrb[92].mxu0 %v6241_v60  ;;  %v2775_v41 = vrot.slane %v2773_v17, 4  ;;  %v2532_v43 = vrot.slane %v7505_v25, 5  ;;  %v2535_v47 = vrot.slane %v2042_v52, 5  ;;  %v2652_v5 = vld [vmem:[#allocation2 + $0x5c] sm:$0x1] }
 0x26e   : > { %v2144_v62 = vrot.slane %v2143_v14, 4  ;;  %v2766_v51 = vor.u32 %v2765_v37, %v2762_v16  ;;  %v2781_v27 = vrot.slane %v2779_v12, 5  ;;  %v6242_v40 = vcombine.low %v8962_v4, %v8964_v0  ;;  %v2443_v53 = vld [vmem:[#allocation2 + $0x48] sm:$0xe] }
 0x26f   : > { %v2157_v55 = vor.u32 %v8389_v30, %v8385_v59  ;;  %v2776_v44 = vor.u32 %v2775_v41, %v2771_v10  ;;  %v2533_v60 = vsel %vm8046_vm5, %v6114_v31, %v2532_v43  ;;  %v2534_v50 = vrot.slane %v2532_v43, 4 }
 0x270   : > { %v2149_v61 = vsel %vm8038_vm2, %v2144_v62, %v2148_v56  ;;  %7149 = vmatpush3.bf16.msra.mxu1 %v7469_v33  ;;  %v2767_v46 = vrot.slane %v2766_v51, 4  ;;  %v2160_v3 = vshll.u32 %v7505_v25, 16  ;;  %v10168_v30 = vshrl.u32 %v8382_v2, 16 }
 0x271   : > { %v6209_v32 = vcombine.low %v2139_v9, %v2149_v61  ;;  %v2158_v8 = vrot.slane %v2157_v55, 4  ;;  %7150 = vmatprep.subr.bf16.mxu1 %v7472_v13  ;;  %v2777_v4 = vrot.slane %v2776_v44, 4  ;;  %v2536_v59 = vsel %vm8046_vm5, %v2534_v50, %v2535_v47 }
 0x272   : > { %v2166_v0 = vrot.slane %v10168_v30, 4  ;;  %v2170_v48 = vshll.u32 %v2042_v52, 16  ;;  %v2772_v57 = vsel %vm8038_vm2, %v2767_v46, %v2771_v10  ;;  %v6226_v33 = vcombine.low %v2533_v60, %v2536_v59  ;;  %v9022_v59 = vld [vmem:[#allocation2 + $0x60] sm:$0xf]  ;;  %v9024_v30 = vld [vmem:[#allocation2 + $0x64] sm:$0xf] }
 0x273   : > { %4802 = vmatmul.mubr.bf16.gmra.mrb[92].mxu1 %v6209_v32  ;;  %v2162_v19 = vrot.slane %v2160_v3, 5  ;;  %v2784_v45 = vshrl.u32 %v8988_v29, 16  ;;  %v2782_v1 = vsel %vm8038_vm2, %v2777_v4, %v2781_v27  ;;  %v2787_v56 = vshll.u32 %v8988_v29, 16 }
 0x274   : > { %v2172_v49 = vrot.slane %v2170_v48, 5  ;;  %v2793_v2 = vshll.u32 %v8990_v58, 16  ;;  %7151 = vmatpush3.bf16.msra.mxu1 %v7472_v13  ;;  %v6258_v39 = vcombine.low %v2772_v57, %v2782_v1  ;;  %4809 = vmatprep.mubr.bf16.mxu1 %v6226_v33  ;;  %v2797_v10 = vshrl.u32 %v8990_v58, 16  ;;  %v7506_v13 = vld [vmem:[#allocation2 + $0x4c] sm:$0xf] }
 0x275   : > { %v2163_v52 = vsel %vm8038_vm2, %v2158_v8, %v2162_v19  ;;  %v2167_v9 = vor.u32 %v2166_v0, %v2162_v19  ;;  %v2786_v14 = vrot.slane %v2784_v45, 4  ;;  %v2789_v17 = vrot.slane %v2787_v56, 5  ;;  %v10169_v0 = vld [vmem:[#allocation18_spill] sm:$0xff]  ;;  %v2653_v45 = vld [vmem:[#allocation2 + $0x68] sm:$0x1] }
 0x276   : > { %v9005_v16 = vpop.f32.mrb[16].mxu0  ;;  %v2795_v37 = vrot.slane %v2793_v2, 5  ;;  %v2803_v12 = vshll.u32 %v2652_v5, 16  ;;  %4970 = vmatprep.mubr.bf16.mxu0 %v6258_v39  ;;  %v6115_v41 = vrot.slane %v2443_v53, 9  ;;  %v2539_v25 = vrot.slane %v7506_v13, 5 }
 0x277   : > { %v9008_v31 = vpop.f32.mrb[17].mxu0  ;;  %v2168_v62 = vrot.slane %v2167_v9, 4  ;;  %v2542_v43 = vrot.slane %v2043_v38, 5  ;;  %4971 = vmatmul.mubr.bf16.gmra.mrb[96].mxu0 %v6242_v40  ;;  %v2790_v51 = vor.u32 %v2789_v17, %v2786_v14  ;;  %v2799_v27 = vrot.slane %v2797_v10, 4  ;;  %v2444_v53 = vld [vmem:[#allocation2 + $0x54] sm:$0xe] }
 0x278   : > { %v9010_v47 = vpop.f32.mrb[18].mxu0  ;;  %v2805_v55 = vrot.slane %v2803_v12, 5  ;;  %v6243_v61 = vcombine.low %v8988_v29, %v8990_v58  ;;  %v2540_v50 = vsel %vm8046_vm5, %v6115_v41, %v2539_v25  ;;  %v2541_v32 = vrot.slane %v2539_v25, 4  ;;  %v2044_v14 = vld [vmem:[#allocation2 + $0x5c] sm:$0x1] }
 0x279   : > { %v9014_v44 = vpop.f32.mrb[19].mxu0  ;;  %v2173_v60 = vsel %vm8038_vm2, %v2168_v62, %v2172_v49  ;;  %v2181_v46 = vor.u32 %v8415_v18, %v8413_v11  ;;  %v2791_v40 = vrot.slane %v2790_v51, 4  ;;  %v2800_v3 = vor.u32 %v2799_v27, %v2795_v37  ;;  %v7507_v27 = vld [vmem:[#allocation2 + $0x58] sm:$0xf] }
 0x27a   : > { %v6210_v8 = vcombine.low %v2163_v52, %v2173_v60  ;;  %v2184_v4 = vshll.u32 %v7506_v13, 16  ;;  %v2543_v29 = vsel %vm8046_vm5, %v2541_v32, %v2542_v43  ;;  %v10170_v48 = vshrl.u32 %v10169_v0, 16 }
 0x27b   : > { %v2182_v58 = vrot.slane %v2181_v46, 4  ;;  %v2194_v33 = vshll.u32 %v2043_v38, 16  ;;  %v2796_v11 = vsel %vm8038_vm2, %v2791_v40, %v2795_v37  ;;  %v2801_v18 = vrot.slane %v2800_v3, 4  ;;  %v10171_v3 = vld [vmem:[#allocation20_spill] sm:$0xff] }
 0x27c   : > { %v2190_v57 = vrot.slane %v10170_v48, 4  ;;  %4810 = vmatmul.mubr.bf16.gmra.mrb[96].mxu1 %v6210_v8  ;;  %v6227_v19 = vcombine.low %v2540_v50, %v2543_v29  ;;  %v2186_v5 = vrot.slane %v2184_v4, 5  ;;  %v2808_v49 = vshrl.u32 %v9022_v59, 16  ;;  %v10172_v4 = vld [vmem:[#allocation21_spill] sm:$0xff] }
 0x27d   : > { %v2196_v1 = vrot.slane %v2194_v33, 5  ;;  %v2811_v56 = vshll.u32 %v9022_v59, 16  ;;  %v2817_v2 = vshll.u32 %v9024_v30, 16  ;;  %v2806_v39 = vsel %vm8038_vm2, %v2801_v18, %v2805_v55  ;;  %v9056_v33 = vld [vmem:[#allocation2 + $0x70] sm:$0xf] }
 0x27e   : > { %4817 = vmatprep.mubr.bf16.mxu1 %v6227_v19  ;;  %v2187_v38 = vsel %vm8038_vm2, %v2182_v58, %v2186_v5  ;;  %v2191_v52 = vor.u32 %v2190_v57, %v2186_v5  ;;  %v2821_v9 = vshrl.u32 %v9024_v30, 16  ;;  %v6259_v17 = vcombine.low %v2796_v11, %v2806_v39  ;;  %v9050_v58 = vld [vmem:[#allocation2 + $0x6c] sm:$0xf] }
 0x27f   : > { %v2810_v37 = vrot.slane %v2808_v49, 4  ;;  %v2813_v10 = vrot.slane %v2811_v56, 5  ;;  %v2819_v12 = vrot.slane %v2817_v2, 5  ;;  %v2827_v13 = vshll.u32 %v2653_v45, 16  ;;  %v10173_v5 = vld [vmem:[#allocation19_spill] sm:$0xff] }
 0x280   : > { %v2192_v62 = vrot.slane %v2191_v52, 4  ;;  %v2823_v41 = vrot.slane %v2821_v9, 4  ;;  %v6116_v25 = vrot.slane %v2444_v53, 9  ;;  %4978 = vmatprep.mubr.bf16.mxu0 %v6259_v17  ;;  %v2546_v55 = vrot.slane %v7507_v27, 5 }
 0x281   : > { %v2814_v51 = vor.u32 %v2813_v10, %v2810_v37  ;;  %v2549_v60 = vrot.slane %v2044_v14, 5  ;;  %v6244_v50 = vcombine.low %v9022_v59, %v9024_v30  ;;  %4979 = vmatmul.mubr.bf16.gmra.mrb[100].mxu0 %v6243_v61  ;;  %v2829_v40 = vrot.slane %v2827_v13, 5  ;;  %v2654_v10 = vld [vmem:[#allocation2 + $0x74] sm:$0x1] }
 0x282   : > { %v9040_v43 = vpop.f32.mrb[20].mxu0  ;;  %v2197_v46 = vsel %vm8038_vm2, %v2192_v62, %v2196_v1  ;;  %v2824_v8 = vor.u32 %v2823_v41, %v2819_v12  ;;  %v2205_v29 = vor.u32 %v10172_v4, %v10171_v3  ;;  %v2547_v59 = vsel %vm8046_vm5, %v6116_v25, %v2546_v55 }
 0x283   : > { %v9044_v32 = vpop.f32.mrb[21].mxu0  ;;  %v6211_v48 = vcombine.low %v2187_v38, %v2197_v46  ;;  %v2815_v57 = vrot.slane %v2814_v51, 4  ;;  %v2548_v30 = vrot.slane %v2546_v55, 4  ;;  %v2208_v19 = vshll.u32 %v7507_v27, 16  ;;  %v2445_v38 = vld [vmem:[#allocation2 + $0x60] sm:$0xe] }
 0x284   : > { %v9052_v0 = vpop.f32.mrb[22].mxu0  ;;  %v2825_v11 = vrot.slane %v2824_v8, 4  ;;  %v2206_v18 = vrot.slane %v2205_v29, 4  ;;  %v10174_v45 = vshrl.u32 %v10173_v5, 16  ;;  %v2218_v53 = vshll.u32 %v2044_v14, 16 }
 0x285   : > { %v9058_v61 = vpop.f32.mrb[23].mxu0  ;;  %4818 = vmatmul.mubr.bf16.gmra.mrb[100].mxu1 %v6211_v48  ;;  %v2820_v56 = vsel %vm8038_vm2, %v2815_v57, %v2819_v12  ;;  %v2550_v2 = vsel %vm8046_vm5, %v2548_v30, %v2549_v60  ;;  %v2832_v39 = vshrl.u32 %v9050_v58, 16  ;;  %v2210_v37 = vrot.slane %v2208_v19, 5  ;;  %v2045_v51 = vld [vmem:[#allocation2 + $0x68] sm:$0x1] }
 0x286   : > { %v2214_v1 = vrot.slane %v10174_v45, 4  ;;  %v9062_v49 = vpop.f32.mrb[20].mxu1  ;;  %v2830_v9 = vsel %vm8038_vm2, %v2825_v11, %v2829_v40  ;;  %v6228_v17 = vcombine.low %v2547_v59, %v2550_v2  ;;  %v2835_v62 = vshll.u32 %v9050_v58, 16  ;;  %v7508_v29 = vld [vmem:[#allocation2 + $0x64] sm:$0xf] }
 0x287   : > { %v9069_v52 = vpop.f32.mrb[21].mxu1  ;;  %v6260_v12 = vcombine.low %v2820_v56, %v2830_v9  ;;  %v2220_v13 = vrot.slane %v2218_v53, 5  ;;  %v2834_v25 = vrot.slane %v2832_v39, 4  ;;  %v2841_v14 = vshll.u32 %v9056_v33, 16  ;;  %v10175_v53 = vld [vmem:[#allocation23_spill] sm:$0xff] }
 0x288   : > { %v9074_v41 = vpop.f32.mrb[22].mxu1  ;;  %4825 = vmatprep.mubr.bf16.mxu1 %v6228_v17  ;;  %v2211_v55 = vsel %vm8038_vm2, %v2206_v18, %v2210_v37  ;;  %v2215_v60 = vor.u32 %v2214_v1, %v2210_v37  ;;  %v2837_v46 = vrot.slane %v2835_v62, 5  ;;  %v2845_v8 = vshrl.u32 %v9056_v33, 16  ;;  %v9090_v39 = vld [vmem:[#allocation2 + $0x78] sm:$0xf] }
 0x289   : > { %v9077_v27 = vpop.f32.mrb[23].mxu1  ;;  %4986 = vmatprep.mubr.bf16.mxu0 %v6260_v12  ;;  %v2843_v40 = vrot.slane %v2841_v14, 5  ;;  %v2851_v3 = vshll.u32 %v2654_v10, 16  ;;  %v6117_v4 = vrot.slane %v2445_v38, 9  ;;  %v2553_v48 = vrot.slane %v7508_v29, 5 }
 0x28a   : > { %4987 = vmatmul.mubr.bf16.gmra.mrb[104].mxu0 %v6244_v50  ;;  %v2216_v57 = vrot.slane %v2215_v60, 4  ;;  %v2838_v59 = vor.u32 %v2837_v46, %v2834_v25  ;;  %v2847_v30 = vrot.slane %v2845_v8, 4  ;;  %v2556_v11 = vrot.slane %v2045_v51, 5  ;;  %v9092_v38 = vld [vmem:[#allocation2 + $0x7c] sm:$0xf] }
 0x28b   : > { %v2853_v19 = vrot.slane %v2851_v3, 5  ;;  %v2554_v5 = vsel %vm8046_vm5, %v6117_v4, %v2553_v48  ;;  %v2555_v18 = vrot.slane %v2553_v48, 4  ;;  %v6245_v45 = vcombine.low %v9050_v58, %v9056_v33  ;;  %v10176_v58 = vld [vmem:[#allocation22_spill] sm:$0xff] }
 0x28c   : > { %v2221_v1 = vsel %vm8038_vm2, %v2216_v57, %v2220_v13  ;;  %v2839_v56 = vrot.slane %v2838_v59, 4  ;;  %v2848_v2 = vor.u32 %v2847_v30, %v2843_v40  ;;  %v2229_v50 = vor.u32 %v8574_v15, %v10175_v53  ;;  %v2655_v12 = vld [vmem:[#allocation2 + $0x80] sm:$0x1]  ;;  %v2446_v30 = vld [vmem:[#allocation2 + $0x6c] sm:$0xe] }
 0x28d   : > { %v6212_v17 = vcombine.low %v2211_v55, %v2221_v1  ;;  %v2557_v37 = vsel %vm8046_vm5, %v2555_v18, %v2556_v11  ;;  %v2232_v10 = vshll.u32 %v7508_v29, 16  ;;  %v10177_v33 = vshrl.u32 %v10176_v58, 16 }
 0x28e   : > { %v9094_v9 = vpop.f32.mrb[24].mxu1  ;;  %v2844_v15 = vsel %vm8038_vm2, %v2839_v56, %v2843_v40  ;;  %v2849_v25 = vrot.slane %v2848_v2, 4  ;;  %v6229_v14 = vcombine.low %v2554_v5, %v2557_v37  ;;  %v2230_v60 = vrot.slane %v2229_v50, 4  ;;  %v2046_v56 = vld [vmem:[#allocation2 + $0x74] sm:$0x1] }
 0x28f   : > { %v2238_v62 = vrot.slane %v10177_v33, 4  ;;  %v9100_v13 = vpop.f32.mrb[25].mxu1  ;;  %4826 = vmatmul.mubr.bf16.gmra.mrb[104].mxu1 %v6212_v17  ;;  %v2234_v55 = vrot.slane %v2232_v10, 5  ;;  %v2242_v8 = vshll.u32 %v2045_v51, 16  ;;  %v2856_v3 = vshrl.u32 %v9090_v39, 16 }
 0x290   : > { %v9104_v46 = vpop.f32.mrb[26].mxu1  ;;  %v2859_v4 = vshll.u32 %v9090_v39, 16  ;;  %v2854_v48 = vsel %vm8038_vm2, %v2849_v25, %v2853_v19  ;;  %4833 = vmatprep.mubr.bf16.mxu1 %v6229_v14  ;;  %v2865_v40 = vshll.u32 %v9092_v38, 16  ;;  %v2869_v57 = vshrl.u32 %v9092_v38, 16  ;;  %v9114_v11 = vpop.f32.mrb[24].mxu0 }
 0x291   : > { %v9108_v29 = vpop.f32.mrb[27].mxu1  ;;  %v2875_v59 = vshll.u32 %v2655_v12, 16  ;;  %v6261_v5 = vcombine.low %v2844_v15, %v2854_v48  ;;  %v2235_v51 = vsel %vm8038_vm2, %v2230_v60, %v2234_v55  ;;  %v2239_v18 = vor.u32 %v2238_v62, %v2234_v55  ;;  %v9118_v2 = vpop.f32.mrb[25].mxu0  ;;  %v7509_v12 = vld [vmem:[#allocation2 + $0x70] sm:$0xf] }
 0x292   : > { %v2244_v1 = vrot.slane %v2242_v8, 5  ;;  %v2858_v53 = vrot.slane %v2856_v3, 4  ;;  %v2861_v19 = vrot.slane %v2859_v4, 5  ;;  %v2867_v50 = vrot.slane %v2865_v40, 5  ;;  %v9120_v37 = vpop.f32.mrb[26].mxu0 }
 0x293   : > { %v2871_v17 = vrot.slane %v2869_v57, 4  ;;  %4994 = vmatprep.mubr.bf16.mxu0 %v6261_v5  ;;  %v2240_v10 = vrot.slane %v2239_v18, 4  ;;  %v2877_v58 = vrot.slane %v2875_v59, 5  ;;  %v6118_v33 = vrot.slane %v2446_v30, 9  ;;  %v9122_v25 = vpop.f32.mrb[27].mxu0 }
 0x294   : > { %v2560_v15 = vrot.slane %v7509_v12, 5  ;;  %4995 = vmatmul.mubr.bf16.gmra.mrb[108].mxu0 %v6245_v45  ;;  %v2862_v62 = vor.u32 %v2861_v19, %v2858_v53  ;;  %v2563_v60 = vrot.slane %v2046_v56, 5  ;;  %v6246_v55 = vcombine.low %v9090_v39, %v9092_v38  ;;  %v9132_v30 = vld [vmem:[#allocation2 + $0x84] sm:$0xf]  ;;  %v9138_v53 = vld [vmem:[#allocation2 + $0x88] sm:$0xf] }
 0x295   : > { %v2872_v14 = vor.u32 %v2871_v17, %v2867_v50  ;;  %v2245_v8 = vsel %vm8038_vm2, %v2240_v10, %v2244_v1  ;;  %v2253_v48 = vor.u32 %v8594_v24, %v8576_v7  ;;  %v2256_v45 = vshll.u32 %v7509_v12, 16  ;;  %v2656_v17 = vld [vmem:[#allocation2 + $0x8c] sm:$0x1]  ;;  %v2447_v10 = vld [vmem:[#allocation2 + $0x78] sm:$0xe] }
 0x296   : > { %v2561_v3 = vsel %vm8046_vm5, %v6118_v33, %v2560_v15  ;;  %v2562_v4 = vrot.slane %v2560_v15, 4  ;;  %v6213_v40 = vcombine.low %v2235_v51, %v2245_v8  ;;  %v2863_v57 = vrot.slane %v2862_v62, 4 }
 0x297   : > { %v2873_v59 = vrot.slane %v2872_v14, 4  ;;  %v2254_v39 = vrot.slane %v2253_v48, 4  ;;  %v10178_v38 = vshrl.u32 %v8570_v21, 16  ;;  %v2266_v1 = vshll.u32 %v2046_v56, 16 }
 0x298   : > { %v2564_v5 = vsel %vm8046_vm5, %v2562_v4, %v2563_v60  ;;  %4834 = vmatmul.mubr.bf16.gmra.mrb[108].mxu1 %v6213_v40  ;;  %v2868_v7 = vsel %vm8038_vm2, %v2863_v57, %v2867_v50  ;;  %v2258_v19 = vrot.slane %v2256_v45, 5  ;;  %v2880_v15 = vshrl.u32 %v9132_v30, 16  ;;  %v7510_v45 = vld [vmem:[#allocation2 + $0x7c] sm:$0xf] }
 0x299   : > { %v2262_v18 = vrot.slane %v10178_v38, 4  ;;  %v2878_v24 = vsel %vm8038_vm2, %v2873_v59, %v2877_v58  ;;  %v6230_v51 = vcombine.low %v2561_v3, %v2564_v5  ;;  %v2268_v12 = vrot.slane %v2266_v1, 5  ;;  %v2047_v58 = vld [vmem:[#allocation2 + $0x80] sm:$0x1] }
 0x29a   : > { %v6262_v33 = vcombine.low %v2868_v7, %v2878_v24  ;;  %v2883_v21 = vshll.u32 %v9132_v30, 16  ;;  %v2259_v56 = vsel %vm8038_vm2, %v2254_v39, %v2258_v19  ;;  %v2889_v50 = vshll.u32 %v9138_v53, 16 }
 0x29b   : > { %4841 = vmatprep.mubr.bf16.mxu1 %v6230_v51  ;;  %v2263_v62 = vor.u32 %v2262_v18, %v2258_v19  ;;  %v2893_v14 = vshrl.u32 %v9138_v53, 16  ;;  %v2882_v60 = vrot.slane %v2880_v15, 4  ;;  %v2899_v3 = vshll.u32 %v2656_v17, 16 }
 0x29c   : > { %5002 = vmatprep.mubr.bf16.mxu0 %v6262_v33  ;;  %v2885_v8 = vrot.slane %v2883_v21, 5  ;;  %v6119_v4 = vrot.slane %v2447_v10, 9  ;;  %v9150_v48 = vpop.f32.mrb[28].mxu0  ;;  %v2891_v57 = vrot.slane %v2889_v50, 5  ;;  %v2567_v5 = vrot.slane %v7510_v45, 5  ;;  %v9152_v39 = vpop.f32.mrb[28].mxu1 }
 0x29d   : > { %5003 = vmatmul.mubr.bf16.gmra.mrb[112].mxu0 %v6246_v55  ;;  %v2264_v40 = vrot.slane %v2263_v62, 4  ;;  %v2895_v59 = vrot.slane %v2893_v14, 4  ;;  %v9154_v38 = vpop.f32.mrb[29].mxu0  ;;  %v2901_v1 = vrot.slane %v2899_v3, 5  ;;  %v2570_v7 = vrot.slane %v2047_v58, 5  ;;  %v9158_v51 = vpop.f32.mrb[29].mxu1 }
 0x29e   : > { %v2886_v18 = vor.u32 %v2885_v8, %v2882_v60  ;;  %v6247_v24 = vcombine.low %v9132_v30, %v9138_v53  ;;  %v9160_v19 = vpop.f32.mrb[30].mxu0  ;;  %v2568_v10 = vsel %vm8046_vm5, %v6119_v4, %v2567_v5  ;;  %v2569_v33 = vrot.slane %v2567_v5, 4  ;;  %v9166_v15 = vpop.f32.mrb[30].mxu1  ;;  %v9172_v14 = vld [vmem:[#allocation2 + $0x90] sm:$0xf] }
 0x29f   : > { %v2269_v55 = vsel %vm8038_vm2, %v2264_v40, %v2268_v12  ;;  %v2896_v17 = vor.u32 %v2895_v59, %v2891_v57  ;;  %10179 = vst [vmem:[#allocation17_spill] sm:$0xff] %v9166_v15  ;;  %v9168_v21 = vpop.f32.mrb[31].mxu0  ;;  %v2277_v30 = vor.u32 %v8670_v26, %v8622_v35  ;;  %v2280_v53 = vshll.u32 %v7510_v45, 16  ;;  %v9174_v60 = vpop.f32.mrb[31].mxu1  ;;  %v10181_v3 = vld [vmem:[#allocation24_spill] sm:$0xff] }
 0x2a0   : > { %v6214_v62 = vcombine.low %v2259_v56, %v2269_v55  ;;  %v2887_v50 = vrot.slane %v2886_v18, 4  ;;  %10180 = vst [vmem:[#allocation18_spill] sm:$0xff] %v9174_v60  ;;  %v2571_v8 = vsel %vm8046_vm5, %v2569_v33, %v2570_v7  ;;  %v10182_v4 = vshrl.u32 %v10181_v3, 16  ;;  %v9180_v5 = vld [vmem:[#allocation2 + $0x94] sm:$0xf] }
 0x2a1   : > { %v2897_v12 = vrot.slane %v2896_v17, 4  ;;  %v2290_v59 = vshll.u32 %v2047_v58, 16  ;;  %v6231_v35 = vcombine.low %v2568_v10, %v2571_v8  ;;  %v2278_v26 = vrot.slane %v2277_v30, 4  ;;  %v2657_v18 = vld [vmem:[#allocation2 + $0x98] sm:$0x1] }
 0x2a2   : > { %v2286_v40 = vrot.slane %v10182_v4, 4  ;;  %4842 = vmatmul.mubr.bf16.gmra.mrb[112].mxu1 %v6214_v62  ;;  %v2892_v56 = vsel %vm8038_vm2, %v2887_v50, %v2891_v57  ;;  %v2282_v45 = vrot.slane %v2280_v53, 5  ;;  %v2904_v7 = vshrl.u32 %v9172_v14, 16  ;;  %v2448_v3 = vld [vmem:[#allocation2 + $0x84] sm:$0xe] }
 0x2a3   : > { %v2902_v55 = vsel %vm8038_vm2, %v2897_v12, %v2901_v1  ;;  %v2292_v17 = vrot.slane %v2290_v59, 5  ;;  %v2907_v33 = vshll.u32 %v9172_v14, 16  ;;  %4849 = vmatprep.mubr.bf16.mxu1 %v6231_v35  ;;  %v2913_v57 = vshll.u32 %v9180_v5, 16  ;;  %v2048_v10 = vld [vmem:[#allocation2 + $0x8c] sm:$0x1] }
 0x2a4   : > { %v6263_v58 = vcombine.low %v2892_v56, %v2902_v55  ;;  %v2283_v62 = vsel %vm8038_vm2, %v2278_v26, %v2282_v45  ;;  %v2287_v4 = vor.u32 %v2286_v40, %v2282_v45  ;;  %v2906_v50 = vrot.slane %v2904_v7, 4  ;;  %v7511_v60 = vld [vmem:[#allocation2 + $0x88] sm:$0xf] }
 0x2a5   : > { %v2909_v30 = vrot.slane %v2907_v33, 5  ;;  %v2917_v53 = vshrl.u32 %v9180_v5, 16  ;;  %v2923_v1 = vshll.u32 %v2657_v18, 16  ;;  %v2915_v8 = vrot.slane %v2913_v57, 5  ;;  %v9198_v33 = vld [vmem:[#allocation2 + $0x9c] sm:$0xf] }
 0x2a6   : > { %5010 = vmatprep.mubr.bf16.mxu0 %v6263_v58  ;;  %v2288_v12 = vrot.slane %v2287_v4, 4  ;;  %v6120_v59 = vrot.slane %v2448_v3, 9  ;;  %v2574_v15 = vrot.slane %v7511_v60, 5  ;;  %v2577_v26 = vrot.slane %v2048_v10, 5  ;;  %v9200_v3 = vld [vmem:[#allocation2 + $0xa0] sm:$0xf] }
 0x2a7   : > { %5011 = vmatmul.mubr.bf16.gmra.mrb[116].mxu0 %v6247_v24  ;;  %v2910_v56 = vor.u32 %v2909_v30, %v2906_v50  ;;  %v2919_v35 = vrot.slane %v2917_v53, 4  ;;  %v2925_v55 = vrot.slane %v2923_v1, 5  ;;  %v6248_v18 = vcombine.low %v9172_v14, %v9180_v5 }
 0x2a8   : > { %v2293_v40 = vsel %vm8038_vm2, %v2288_v12, %v2292_v17  ;;  %v2575_v45 = vsel %vm8046_vm5, %v6120_v59, %v2574_v15  ;;  %v2576_v7 = vrot.slane %v2574_v15, 4  ;;  %v9202_v58 = vpop.f32.mrb[32].mxu1  ;;  %v2301_v50 = vor.u32 %v8692_v34, %v8673_v54  ;;  %v2658_v17 = vld [vmem:[#allocation2 + $0xa4] sm:$0x1]  ;;  %v9206_v30 = vpop.f32.mrb[32].mxu0 }
 0x2a9   : > { %10183 = vst [vmem:[#allocation20_spill] sm:$0xff] %v9202_v58  ;;  %v6215_v24 = vcombine.low %v2283_v62, %v2293_v40  ;;  %v2911_v4 = vrot.slane %v2910_v56, 4  ;;  %v2920_v57 = vor.u32 %v2919_v35, %v2915_v8  ;;  %v9208_v53 = vpop.f32.mrb[33].mxu1  ;;  %v2304_v14 = vshll.u32 %v7511_v60, 16  ;;  %v9214_v59 = vpop.f32.mrb[33].mxu0 }
 0x2aa   : > { %10184 = vst [vmem:[#allocation21_spill] sm:$0xff] %v9208_v53  ;;  %v2578_v15 = vsel %vm8046_vm5, %v2576_v7, %v2577_v26  ;;  %v10185_v5 = vshrl.u32 %v8666_v42, 16  ;;  %v2314_v12 = vshll.u32 %v2048_v10, 16  ;;  %10186 = vst [vmem:[#allocation19_spill] sm:$0xff] %v9214_v59  ;;  %v9216_v62 = vpop.f32.mrb[34].mxu1  ;;  %v2302_v35 = vrot.slane %v2301_v50, 4 }
 0x2ab   : > { %10187 = vst [vmem:[#allocation23_spill] sm:$0xff] %v9216_v62  ;;  %4850 = vmatmul.mubr.bf16.gmra.mrb[116].mxu1 %v6215_v24  ;;  %v2916_v54 = vsel %vm8038_vm2, %v2911_v4, %v2915_v8  ;;  %v2921_v34 = vrot.slane %v2920_v57, 4  ;;  %v6232_v56 = vcombine.low %v2575_v45, %v2578_v15  ;;  %v9220_v40 = vpop.f32.mrb[34].mxu0  ;;  %v9222_v53 = vpop.f32.mrb[35].mxu1  ;;  %v2306_v60 = vrot.slane %v2304_v14, 5 }
 0x2ac   : > { %v2310_v1 = vrot.slane %v10185_v5, 4  ;;  %10188 = vst [vmem:[#allocation22_spill] sm:$0xff] %v9220_v40  ;;  %10189 = vst [vmem:[#allocation24_spill] sm:$0xff] %v9222_v53  ;;  %v2316_v26 = vrot.slane %v2314_v12, 5  ;;  %v2928_v42 = vshrl.u32 %v9198_v33, 16  ;;  %v2931_v10 = vshll.u32 %v9198_v33, 16 }
 0x2ad   : > { %v9226_v7 = vpop.f32.mrb[35].mxu0  ;;  %v2926_v24 = vsel %vm8038_vm2, %v2921_v34, %v2925_v55  ;;  %4857 = vmatprep.mubr.bf16.mxu1 %v6232_v56  ;;  %v2937_v8 = vshll.u32 %v9200_v3, 16  ;;  %v2941_v45 = vshrl.u32 %v9200_v3, 16  ;;  %v2947_v4 = vshll.u32 %v2658_v17, 16  ;;  %v2449_v57 = vld [vmem:[#allocation2 + $0x90] sm:$0xe] }
 0x2ae   : > { %10190 = vst [vmem:[#allocation39_spill] sm:$0xff] %v9226_v7  ;;  %v6264_v50 = vcombine.low %v2916_v54, %v2926_v24  ;;  %v2307_v15 = vsel %vm8038_vm2, %v2302_v35, %v2306_v60  ;;  %v2311_v14 = vor.u32 %v2310_v1, %v2306_v60  ;;  %v2930_v5 = vrot.slane %v2928_v42, 4  ;;  %v2049_v12 = vld [vmem:[#allocation2 + $0x98] sm:$0x1]  ;;  %v7512_v58 = vld [vmem:[#allocation2 + $0x94] sm:$0xf] }
 0x2af   : > { %v2933_v53 = vrot.slane %v2931_v10, 5  ;;  %v2939_v62 = vrot.slane %v2937_v8, 5  ;;  %v2943_v7 = vrot.slane %v2941_v45, 4  ;;  %v2949_v40 = vrot.slane %v2947_v4, 5 }
 0x2b0   : > { %5018 = vmatprep.mubr.bf16.mxu0 %v6264_v50  ;;  %v2312_v55 = vrot.slane %v2311_v14, 4  ;;  %v6610_v34 = vadd.f32 %v8806_v28, %v8783_v23  ;;  %v6121_v56 = vrot.slane %v2449_v57, 9  ;;  %v2581_v17 = vrot.slane %v7512_v58, 5 }
 0x2b1   : > { %5019 = vmatmul.mubr.bf16.gmra.mrb[120].mxu0 %v6248_v18  ;;  %v2934_v54 = vor.u32 %v2933_v53, %v2930_v5  ;;  %v2944_v24 = vor.u32 %v2943_v7, %v2939_v62  ;;  %v2584_v59 = vrot.slane %v2049_v12, 5  ;;  %v6613_v1 = vadd.f32 %v8816_v36, %v8811_v63  ;;  %v10192_v7 = vld [vmem:[#allocation27_spill] sm:$0xff]  ;;  %v10196_v5 = vld [vmem:[#allocation25_spill] sm:$0xff] }
 0x2b2   : > { %v2317_v35 = vsel %vm8038_vm2, %v2312_v55, %v2316_v26  ;;  %v2582_v60 = vsel %vm8046_vm5, %v6121_v56, %v2581_v17  ;;  %v2583_v42 = vrot.slane %v2581_v17, 4  ;;  %v6722_v23 = vadd.f32 %v9008_v31, %v9005_v16  ;;  %v9256_v16 = vld [vmem:[#allocation2 + $0xa8] sm:$0xf]  ;;  %v9258_v31 = vld [vmem:[#allocation2 + $0xac] sm:$0xf] }
 0x2b3   : > { %v6216_v28 = vcombine.low %v2307_v15, %v2317_v35  ;;  %v2935_v10 = vrot.slane %v2934_v54, 4  ;;  %v2945_v8 = vrot.slane %v2944_v24, 4  ;;  %v6725_v18 = vadd.f32 %v9014_v44, %v9010_v47  ;;  %v9246_v53 = vpop.f32.mrb[36].mxu0  ;;  %10193 = vst [vmem:[#allocation27_spill] sm:$0xff] %v9258_v31  ;;  %v9274_v56 = vld [vmem:[#allocation2 + $0xa4] sm:$0x1] }
 0x2b4   : > { %v2585_v63 = vsel %vm8046_vm5, %v2583_v42, %v2584_v59  ;;  %v9250_v36 = vadd.f32 %v6722_v23, %v6610_v34  ;;  %v6249_v26 = vcombine.low %v9198_v33, %v9200_v3  ;;  %v2325_v45 = vor.u32 %v10192_v7, %v8722_v22  ;;  %v9260_v4 = vpop.f32.mrb[37].mxu0  ;;  %v9268_v33 = vld [vmem:[#allocation2 + $0xb0] sm:$0x1]  ;;  %v2450_v3 = vld [vmem:[#allocation2 + $0x9c] sm:$0xe] }
 0x2b5   : > { %4858 = vmatmul.mubr.bf16.gmra.mrb[120].mxu1 %v6216_v28  ;;  %v2940_v47 = vsel %vm8038_vm2, %v2935_v10, %v2939_v62  ;;  %v2950_v44 = vsel %vm8038_vm2, %v2945_v8, %v2949_v40  ;;  %v6233_v59 = vcombine.low %v2582_v60, %v2585_v63  ;;  %v9266_v57 = vadd.f32 %v6725_v18, %v6613_v1  ;;  %v9270_v22 = vpop.f32.mrb[38].mxu0  ;;  %v9276_v62 = vpop.f32.mrb[36].mxu1  ;;  %v7474_v7 = vld [vmem:[#allocation9] sm:$0xff]  }
 0x2b6   : > { %10191 = vst [vmem:[#allocation40_spill] sm:$0xff] %v9250_v36  ;;  %10195 = vst [vmem:[#allocation42_spill] sm:$0xff] %v9268_v33  ;;  %v6265_v50 = vcombine.low %v2940_v47, %v2950_v44  ;;  %v2326_v15 = vrot.slane %v2325_v45, 4  ;;  %v2328_v14 = vshll.u32 %v7512_v58, 16  ;;  %v10197_v55 = vshrl.u32 %v10196_v5, 16  ;;  %v9278_v17 = vpop.f32.mrb[39].mxu0  ;;  %7184 = vmatprep.subr.bf16.mxu0 %v7474_v7 }
 0x2b7   : > { %10194 = vst [vmem:[#allocation41_spill] sm:$0xff] %v9266_v57  ;;  %4865 = vmatprep.mubr.bf16.mxu1 %v6233_v59  ;;  %v2338_v40 = vshll.u32 %v2049_v12, 16  ;;  %v2952_v54 = vshrl.u32 %v9256_v16, 16  ;;  %v2955_v24 = vshll.u32 %v9256_v16, 16  ;;  %v2961_v1 = vshll.u32 %v9258_v31, 16  ;;  %v9283_v35 = vpop.f32.mrb[37].mxu1  ;;  %7185 = vmatpush3.bf16.msra.mxu0 %v7474_v7 }
 0x2b8   : > { %v2334_v34 = vrot.slane %v10197_v55, 4  ;;  %5026 = vmatprep.mubr.bf16.mxu0 %v6265_v50  ;;  %v2330_v58 = vrot.slane %v2328_v14, 5  ;;  %v2965_v60 = vshrl.u32 %v9258_v31, 16  ;;  %v2971_v42 = vshll.u32 %v9268_v33, 16  ;;  %v9287_v28 = vpop.f32.mrb[38].mxu1  ;;  %v10202_v7 = vld [vmem:[#allocation30_spill] sm:$0xff] }
 0x2b9   : > { %v6122_v23 = vrot.slane %v2450_v3, 9  ;;  %5027 = vmatmul.mubr.bf16.gmra.mrb[124].mxu0 %v6249_v26  ;;  %v2340_v10 = vrot.slane %v2338_v40, 5  ;;  %v2954_v12 = vrot.slane %v2952_v54, 4  ;;  %v2957_v8 = vrot.slane %v2955_v24, 5  ;;  %v9289_v63 = vpop.f32.mrb[39].mxu1  ;;  %v7476_v33 = vld [vmem:[#allocation9 + $0x10] sm:$0xff]  }
 0x2ba   : > { %v2963_v18 = vrot.slane %v2961_v1, 5  ;;  %v2331_v45 = vsel %vm8038_vm2, %v2326_v15, %v2330_v58  ;;  %v2335_v47 = vor.u32 %v2334_v34, %v2330_v58  ;;  %v2967_v44 = vrot.slane %v2965_v60, 4  ;;  %v7513_v14 = vld [vmem:[#allocation2 + $0xa0] sm:$0xf] }
 0x2bb   : > { %v2973_v59 = vrot.slane %v2971_v42, 5  ;;  %v2958_v50 = vor.u32 %v2957_v8, %v2954_v12  ;;  %v2588_v5 = vrot.slane %v7513_v14, 5  ;;  %v2591_v3 = vrot.slane %v9274_v56, 5  ;;  %v10201_v8 = vld [vmem:[#allocation28_spill] sm:$0xff] }
 0x2bc   : > { %v6728_v26 = vadd.f32 %v9044_v32, %v9040_v43  ;;  %v2336_v55 = vrot.slane %v2335_v47, 4  ;;  %v2968_v40 = vor.u32 %v2967_v44, %v2963_v18  ;;  %v6616_v54 = vadd.f32 %v9069_v52, %v9062_v49  ;;  %v9310_v52 = vld [vmem:[#allocation2 + $0xb4] sm:$0xf]  ;;  %v9328_v44 = vld [vmem:[#allocation2 + $0xbc] sm:$0x1] }
 0x2bd   : > { %v6731_v15 = vadd.f32 %v9058_v61, %v9052_v0  ;;  %v2959_v34 = vrot.slane %v2958_v50, 4  ;;  %v2589_v24 = vsel %vm8046_vm5, %v6122_v23, %v2588_v5  ;;  %v2590_v1 = vrot.slane %v2588_v5, 4  ;;  %v9320_v23 = vld [vmem:[#allocation2 + $0xb8] sm:$0xf]  ;;  %10203 = vst [vmem:[#allocation28_spill] sm:$0xff] %v9328_v44  ;;  %v10204_v5 = vld [vmem:[#allocation26_spill] sm:$0xff] }
 0x2be   : > { %v6619_v58 = vadd.f32 %v9077_v27, %v9074_v41  ;;  %v2341_v43 = vsel %vm8038_vm2, %v2336_v55, %v2340_v10  ;;  %v2969_v32 = vrot.slane %v2968_v40, 4  ;;  %v9306_v60 = vadd.f32 %v6728_v26, %v6616_v54  ;;  %v9312_v0 = vpop.f32.mrb[40].mxu1  ;;  %10200 = vst [vmem:[#allocation44_spill] sm:$0xff] %v9320_v23  ;;  %v9336_v54 = vld [vmem:[#allocation2 + $0xb0] sm:$0x1] }
 0x2bf   : > { %v6250_v49 = vcombine.low %v9256_v16, %v9258_v31  ;;  %v6217_v61 = vcombine.low %v2331_v45, %v2341_v43  ;;  %v2964_v42 = vsel %vm8038_vm2, %v2959_v34, %v2963_v18  ;;  %v2592_v41 = vsel %vm8046_vm5, %v2590_v1, %v2591_v3  ;;  %v9322_v10 = vpop.f32.mrb[41].mxu1 }
 0x2c0   : > { %10198 = vst [vmem:[#allocation25_spill] sm:$0xff] %v9306_v60  ;;  %v9318_v27 = vadd.f32 %v6731_v15, %v6619_v58  ;;  %v2974_v16 = vsel %vm8038_vm2, %v2969_v32, %v2973_v59  ;;  %v6234_v12 = vcombine.low %v2589_v24, %v2592_v41  ;;  %v2349_v47 = vor.u32 %v10202_v7, %v10201_v8  ;;  %v9330_v18 = vpop.f32.mrb[42].mxu1  ;;  %v2451_v59 = vld [vmem:[#allocation2 + $0xa8] sm:$0xe] }
 0x2c1   : > { %v2352_v45 = vshll.u32 %v7513_v14, 16  ;;  %4866 = vmatmul.mubr.bf16.gmra.mrb[124].mxu1 %v6217_v61  ;;  %v6266_v50 = vcombine.low %v2964_v42, %v2974_v16  ;;  %v10205_v3 = vshrl.u32 %v10204_v5, 16  ;;  %v2362_v55 = vshll.u32 %v9274_v56, 16  ;;  %v9338_v15 = vpop.f32.mrb[43].mxu1  ;;  %v7514_v5 = vld [vmem:[#allocation2 + $0xac] sm:$0xf] }
 0x2c2   : > { %10199 = vst [vmem:[#allocation43_spill] sm:$0xff] %v9318_v27  ;;  %v2976_v40 = vshrl.u32 %v9310_v52, 16  ;;  %4873 = vmatprep.mubr.bf16.mxu1 %v6234_v12  ;;  %v2350_v14 = vrot.slane %v2349_v47, 4  ;;  %v2979_v24 = vshll.u32 %v9310_v52, 16  ;;  %v2985_v1 = vshll.u32 %v9320_v23, 16  ;;  %v9342_v58 = vpop.f32.mrb[40].mxu0 }
 0x2c3   : > { %v2358_v26 = vrot.slane %v10205_v3, 4  ;;  %v2354_v34 = vrot.slane %v2352_v45, 5  ;;  %5034 = vmatprep.mubr.bf16.mxu0 %v6266_v50  ;;  %v2364_v43 = vrot.slane %v2362_v55, 5  ;;  %v2989_v56 = vshrl.u32 %v9320_v23, 16  ;;  %v9346_v42 = vpop.f32.mrb[41].mxu0 }
 0x2c4   : > { %v2978_v32 = vrot.slane %v2976_v40, 4  ;;  %v2995_v61 = vshll.u32 %v9328_v44, 16  ;;  %5035 = vmatmul.mubr.bf16.gmra.mrb[128].mxu0 %v6250_v49  ;;  %v2981_v12 = vrot.slane %v2979_v24, 5  ;;  %v2987_v8 = vrot.slane %v2985_v1, 5  ;;  %v9350_v7 = vpop.f32.mrb[42].mxu0 }
 0x2c5   : > { %v2355_v41 = vsel %vm8038_vm2, %v2350_v14, %v2354_v34  ;;  %v2359_v16 = vor.u32 %v2358_v26, %v2354_v34  ;;  %v2991_v47 = vrot.slane %v2989_v56, 4  ;;  %v6123_v50 = vrot.slane %v2451_v59, 9  ;;  %v9352_v55 = vpop.f32.mrb[43].mxu0 }
 0x2c6   : > { %v2997_v45 = vrot.slane %v2995_v61, 5  ;;  %v2595_v3 = vrot.slane %v7514_v5, 5  ;;  %v2982_v27 = vor.u32 %v2981_v12, %v2978_v32  ;;  %v2598_v60 = vrot.slane %v9336_v54, 5  ;;  %v9371_v12 = vld [vmem:[#allocation2 + $0xc0] sm:$0xf] }
 0x2c7   : > { %v2360_v40 = vrot.slane %v2359_v16, 4  ;;  %v6734_v49 = vadd.f32 %v9118_v2, %v9114_v11  ;;  %v2992_v14 = vor.u32 %v2991_v47, %v2987_v8  ;;  %v6622_v24 = vadd.f32 %v9100_v13, %v9094_v9  ;;  %v10211_v47 = vld [vmem:[#allocation29_spill] sm:$0xff] }
 0x2c8   : > { %v2596_v26 = vsel %vm8046_vm5, %v6123_v50, %v2595_v3  ;;  %v2597_v34 = vrot.slane %v2595_v3, 4  ;;  %v2983_v1 = vrot.slane %v2982_v27, 4  ;;  %v6737_v32 = vadd.f32 %v9122_v25, %v9120_v37  ;;  %v9379_v25 = vld [vmem:[#allocation2 + $0xc4] sm:$0xf] }
 0x2c9   : > { %v2365_v59 = vsel %vm8038_vm2, %v2360_v40, %v2364_v43  ;;  %v6625_v56 = vadd.f32 %v9108_v29, %v9104_v46  ;;  %v2993_v11 = vrot.slane %v2992_v14, 4  ;;  %v9369_v16 = vadd.f32 %v6734_v49, %v6622_v24  ;;  %10208 = vst [vmem:[#allocation45_spill] sm:$0xff] %v9379_v25  ;;  %v10209_v29 = vld [vmem:[#allocation31_spill] sm:$0xff] }
 0x2ca   : > { %v6218_v61 = vcombine.low %v2355_v41, %v2365_v59  ;;  %v2599_v2 = vsel %vm8046_vm5, %v2597_v34, %v2598_v60  ;;  %v2988_v9 = vsel %vm8038_vm2, %v2983_v1, %v2987_v8  ;;  %v6251_v37 = vcombine.low %v9310_v52, %v9320_v23  ;;  %v10210_v60 = vld [vmem:[#allocation32_spill] sm:$0xff]  ;;  %v9387_v8 = vld [vmem:[#allocation2 + $0xc8] sm:$0x1] }
 0x2cb   : > { %10206 = vst [vmem:[#allocation30_spill] sm:$0xff] %v9369_v16  ;;  %v6235_v13 = vcombine.low %v2596_v26, %v2599_v2  ;;  %v9375_v27 = vadd.f32 %v6737_v32, %v6625_v56  ;;  %v2998_v46 = vsel %vm8038_vm2, %v2993_v11, %v2997_v45  ;;  %v2373_v43 = vor.u32 %v10210_v60, %v10209_v29  ;;  %v9392_v26 = vld [vmem:[#allocation2 + $0xbc] sm:$0x1]  ;;  %v2452_v45 = vld [vmem:[#allocation2 + $0xb4] sm:$0xe] }
 0x2cc   : > { %4874 = vmatmul.mubr.bf16.gmra.mrb[128].mxu1 %v6218_v61  ;;  %v2376_v41 = vshll.u32 %v7514_v5, 16  ;;  %v10212_v50 = vshrl.u32 %v10211_v47, 16  ;;  %10213 = vst [vmem:[#allocation31_spill] sm:$0xff] %v9387_v8  ;;  %v6267_v40 = vcombine.low %v2988_v9, %v2998_v46  ;;  %v2386_v49 = vshll.u32 %v9336_v54, 16  ;;  %v9394_v34 = vpop.f32.mrb[44].mxu0  ;;  %v9398_v32 = vpop.f32.mrb[44].mxu1 }
 0x2cd   : > { %10207 = vst [vmem:[#allocation26_spill] sm:$0xff] %v9375_v27  ;;  %4881 = vmatprep.mubr.bf16.mxu1 %v6235_v13  ;;  %v3000_v52 = vshrl.u32 %v9371_v12, 16  ;;  %v3003_v14 = vshll.u32 %v9371_v12, 16  ;;  %v2374_v24 = vrot.slane %v2373_v43, 4  ;;  %v3009_v59 = vshll.u32 %v9379_v25, 16  ;;  %v9400_v56 = vpop.f32.mrb[45].mxu0 }
 0x2ce   : > { %v2382_v3 = vrot.slane %v10212_v50, 4  ;;  %v2378_v5 = vrot.slane %v2376_v41, 5  ;;  %v3013_v1 = vshrl.u32 %v9379_v25, 16  ;;  %5042 = vmatprep.mubr.bf16.mxu0 %v6267_v40  ;;  %v2388_v54 = vrot.slane %v2386_v49, 5  ;;  %v9403_v9 = vpop.f32.mrb[45].mxu1  ;;  %v9405_v13 = vpop.f32.mrb[46].mxu0 }
 0x2cf   : > { %v3002_v61 = vrot.slane %v3000_v52, 4  ;;  %v3005_v11 = vrot.slane %v3003_v14, 5  ;;  %v3019_v2 = vshll.u32 %v9387_v8, 16  ;;  %5043 = vmatmul.mubr.bf16.gmra.mrb[132].mxu0 %v6251_v37  ;;  %v3011_v60 = vrot.slane %v3009_v59, 5  ;;  %v9409_v41 = vpop.f32.mrb[46].mxu1  ;;  %v9411_v47 = vpop.f32.mrb[47].mxu0 }
 0x2d0   : > { %v2379_v46 = vsel %vm8038_vm2, %v2374_v24, %v2378_v5  ;;  %v2383_v29 = vor.u32 %v2382_v3, %v2378_v5  ;;  %v3015_v43 = vrot.slane %v3013_v1, 4  ;;  %v7475_v50 = vld [vmem:[#allocation9 + $0x8] sm:$0xff]   ;;  %v6124_v52 = vrot.slane %v2452_v45, 9  ;;  %v7515_v14 = vld [vmem:[#allocation2 + $0xb8] sm:$0xf]  ;;  %v9413_v16 = vpop.f32.mrb[47].mxu1 }
 0x2d1   : > { %v3006_v40 = vor.u32 %v3005_v11, %v3002_v61  ;;  %v3021_v49 = vrot.slane %v3019_v2, 5  ;;  %v2602_v27 = vrot.slane %v7515_v14, 5  ;;  %v2605_v36 = vrot.slane %v9392_v26, 5  ;;  %7186 = vmatprep.subr.bf16.mxu0 %v7475_v50  ;;  %v10214_v2 = vld [vmem:[#allocation17_spill] sm:$0xff] }
 0x2d2   : > { %v2384_v57 = vrot.slane %v2383_v29, 4  ;;  %v3016_v37 = vor.u32 %v3015_v43, %v3011_v60  ;;  %v6740_v3 = vadd.f32 %v9154_v38, %v9150_v48  ;;  %v6628_v45 = vadd.f32 %v9158_v51, %v9152_v39  ;;  %7187 = vmatpush3.bf16.msra.mxu0 %v7475_v50  ;;  %v10215_v29 = vld [vmem:[#allocation18_spill] sm:$0xff]  ;;  %v2053_v39 = vld [vmem:[#allocation2 + $0xc8] sm:$0x1] }
 0x2d3   : > { %v3007_v24 = vrot.slane %v3006_v40, 4  ;;  %v2603_v5 = vsel %vm8046_vm5, %v6124_v52, %v2602_v27  ;;  %v2604_v59 = vrot.slane %v2602_v27, 4  ;;  %v6743_v11 = vadd.f32 %v9168_v21, %v9160_v19  ;;  %v2453_v51 = vld [vmem:[#allocation2 + $0xc0] sm:$0xe]  ;;  %7188 = vmatprep.subr.bf16.mxu0 %v7476_v33 }
 0x2d4   : > { %v2389_v1 = vsel %vm8038_vm2, %v2384_v57, %v2388_v54  ;;  %v3017_v61 = vrot.slane %v3016_v37, 4  ;;  %v6631_v48 = vadd.f32 %v10215_v29, %v10214_v2  ;;  %v9432_v40 = vadd.f32 %v6740_v3, %v6628_v45  ;;  %v10223_v29 = vld [vmem:[#allocation20_spill] sm:$0xff] }
 0x2d5   : > { %v6219_v38 = vcombine.low %v2379_v46, %v2389_v1  ;;  %v3012_v43 = vsel %vm8038_vm2, %v3007_v24, %v3011_v60  ;;  %v2606_v27 = vsel %vm8046_vm5, %v2604_v59, %v2605_v36  ;;  %v6252_v19 = vcombine.low %v9371_v12, %v9379_v25  ;;  %v10218_v46 = vld [vmem:[#allocation34_spill] sm:$0xff]  ;;  %v10219_v60 = vld [vmem:[#allocation35_spill] sm:$0xff]  ;;  %v10220_v36 = vld [vmem:[#allocation33_spill] sm:$0xff] }
 0x2d6   : > { %10216 = vst [vmem:[#allocation32_spill] sm:$0xff] %v9432_v40  ;;  %v3022_v57 = vsel %vm8038_vm2, %v3017_v61, %v3021_v49  ;;  %v6236_v54 = vcombine.low %v2603_v5, %v2606_v27  ;;  %v9436_v50 = vadd.f32 %v6743_v11, %v6631_v48  ;;  %v2397_v52 = vor.u32 %v10219_v60, %v10218_v46  ;;  %v7516_v49 = vld [vmem:[#allocation2 + $0xc4] sm:$0xf]  ;;  %v10222_v12 = vld [vmem:[#allocation19_spill] sm:$0xff]  ;;  %v10224_v48 = vld [vmem:[#allocation21_spill] sm:$0xff] }
 0x2d7   : > { %4882 = vmatmul.mubr.bf16.gmra.mrb[132].mxu1 %v6219_v38  ;;  %v6268_v21 = vcombine.low %v3012_v43, %v3022_v57  ;;  %v2400_v37 = vshll.u32 %v7515_v14, 16  ;;  %v10221_v3 = vshrl.u32 %v10220_v36, 16  ;;  %v2410_v59 = vshll.u32 %v9392_v26, 16  ;;  %v9449_v14 = vld [vmem:[#allocation2 + $0x2c] sm:$0x1]  ;;  %7189 = vmatpush3.bf16.msra.mxu0 %v7476_v33 }
 0x2d8   : > { %10217 = vst [vmem:[#allocation29_spill] sm:$0xff] %v9436_v50  ;;  %4889 = vmatprep.mubr.bf16.mxu1 %v6236_v54  ;;  %v6125_v45 = vrot.slane %v2453_v51, 9  ;;  %v2609_v5 = vrot.slane %v7516_v49, 5  ;;  %v2612_v1 = vrot.slane %v2053_v39, 5  ;;  %v2398_v61 = vrot.slane %v2397_v52, 4  ;;  %v10225_v51 = vld [vmem:[#allocation22_spill] sm:$0xff] }
 0x2d9   : > { %v2406_v24 = vrot.slane %v10221_v3, 4  ;;  %5050 = vmatprep.mubr.bf16.mxu0 %v6268_v21  ;;  %v2402_v11 = vrot.slane %v2400_v37, 5  ;;  %v6746_v2 = vadd.f32 %v10222_v12, %v9206_v30  ;;  %v6634_v38 = vadd.f32 %v10224_v48, %v10223_v29  ;;  %v10226_v57 = vld [vmem:[#allocation39_spill] sm:$0xff]  ;;  %v9454_v46 = vpop.f32.mrb[48].mxu1  ;;  %v10229_v37 = vld [vmem:[#allocation24_spill] sm:$0xff]  ;;  %v10231_v29 = vld [vmem:[#allocation38_spill] sm:$0xff] }
 0x2da   : > { %5051 = vmatmul.mubr.bf16.gmra.mrb[136].mxu0 %v6252_v19  ;;  %v2412_v27 = vrot.slane %v2410_v59, 5  ;;  %v2611_v26 = vrot.slane %v2609_v5, 4  ;;  %v6749_v54 = vadd.f32 %v10226_v57, %v10225_v51  ;;  %v2610_v60 = vsel %vm8046_vm5, %v6125_v45, %v2609_v5  ;;  %v10228_v52 = vld [vmem:[#allocation23_spill] sm:$0xff]  ;;  %v9464_v12 = vpop.f32.mrb[49].mxu1  ;;  %v10230_v59 = vld [vmem:[#allocation37_spill] sm:$0xff]  ;;  %v9474_v5 = vpop.f32.mrb[48].mxu0 }
 0x2db   : > { %v2407_v21 = vor.u32 %v2406_v24, %v2402_v11  ;;  %v9458_v30 = vadd.f32 %v6746_v2, %v6634_v38  ;;  %v6637_v36 = vadd.f32 %v10229_v37, %v10228_v52  ;;  %v9462_v3 = vld [vmem:[#allocation2 + $0xcc] sm:$0xf]  ;;  %v2421_v48 = vor.u32 %v10231_v29, %v10230_v59  ;;  %v10232_v24 = vld [vmem:[#allocation36_spill] sm:$0xff]  ;;  %v9476_v2 = vpop.f32.mrb[50].mxu1  ;;  %v9484_v59 = vpop.f32.mrb[49].mxu0 }
 0x2dc   : > { %v2613_v19 = vsel %vm8046_vm5, %v2611_v26, %v2612_v1  ;;  %v2424_v51 = vshll.u32 %v7516_v49, 16  ;;  %v10233_v57 = vshrl.u32 %v10232_v24, 16  ;;  %v9472_v45 = vld [vmem:[#allocation2 + $0xd0] sm:$0xf]  ;;  %v2403_v38 = vsel %vm8038_vm2, %v2398_v61, %v2402_v11  ;;  %v9482_v26 = vld [vmem:[#allocation2 + $0xd4] sm:$0x1] }
 0x2dd   : > { %10227 = vst [vmem:[#allocation17_spill] sm:$0xff] %v9458_v30  ;;  %v2408_v52 = vrot.slane %v2407_v21, 4  ;;  %v9480_v37 = vadd.f32 %v6749_v54, %v6637_v36  ;;  %v2434_v1 = vshll.u32 %v2053_v39, 16  ;;  %v9486_v49 = vpop.f32.mrb[51].mxu1  ;;  %v2422_v29 = vrot.slane %v2421_v48, 4  ;;  %v9490_v50 = vpop.f32.mrb[50].mxu0 }
 0x2de   : > { %v2430_v43 = vrot.slane %v10233_v57, 4  ;;  %v2426_v24 = vrot.slane %v2424_v51, 5  ;;  %v3024_v57 = vshrl.u32 %v9462_v3, 16  ;;  %v3027_v30 = vshll.u32 %v9462_v3, 16  ;;  %v3047_v21 = vld [vmem:[#allocation2 + $0x18] sm:$0xe] }
 0x2df   : > { %10234 = vst [vmem:[#allocation18_spill] sm:$0xff] %v9480_v37  ;;  %v2413_v61 = vsel %vm8038_vm2, %v2408_v52, %v2412_v27  ;;  %v6237_v11 = vcombine.low %v2610_v60, %v2613_v19  ;;  %v3033_v39 = vshll.u32 %v9472_v45, 16  ;;  %v3037_v54 = vshrl.u32 %v9472_v45, 16  ;;  %v9496_v36 = vpop.f32.mrb[51].mxu0  ;;  %v7518_v52 = vld [vmem:[#allocation2 + $0x1c] sm:$0xf] }
 0x2e0   : > { %v6220_v37 = vcombine.low %v2403_v38, %v2413_v61  ;;  %v2431_v48 = vor.u32 %v2430_v43, %v2426_v24  ;;  %v2436_v51 = vrot.slane %v2434_v1, 5  ;;  %v3026_v40 = vrot.slane %v3024_v57, 4  ;;  %v7519_v57 = vld [vmem:[#allocation2 + $0x20] sm:$0x1] }
 0x2e1   : > { %v3029_v31 = vrot.slane %v3027_v30, 5  ;;  %v3035_v8 = vrot.slane %v3033_v39, 5  ;;  %v3039_v25 = vrot.slane %v3037_v54, 4  ;;  %v3043_v44 = vshll.u32 %v9482_v26, 16 }
 0x2e2   : > { %4890 = vmatmul.mubr.bf16.gmra.mrb[136].mxu1 %v6220_v37  ;;  %v2427_v27 = vsel %vm8038_vm2, %v2422_v29, %v2426_v24  ;;  %v2432_v60 = vrot.slane %v2431_v48, 4  ;;  %v6126_v19 = vrot.slane %v3047_v21, 9  ;;  %v3113_v23 = vrot.slane %v7518_v52, 5  ;;  %v3048_v24 = vld [vmem:[#allocation2 + $0x24] sm:$0xe] }
 0x2e3   : > { %4897 = vmatprep.mubr.bf16.mxu1 %v6237_v11  ;;  %v3030_v38 = vor.u32 %v3029_v31, %v3026_v40  ;;  %v3040_v43 = vor.u32 %v3039_v25, %v3035_v8  ;;  %v3045_v1 = vrot.slane %v3043_v44, 5  ;;  %v3116_v61 = vrot.slane %v7519_v57, 5 }
 0x2e4   : > { %v2437_v30 = vsel %vm8038_vm2, %v2432_v60, %v2436_v51  ;;  %v3115_v39 = vrot.slane %v3113_v23, 4  ;;  %v6253_v37 = vcombine.low %v9462_v3, %v9472_v45  ;;  %v6752_v29 = vadd.f32 %v9260_v4, %v9246_v53  ;;  %v3049_v53 = vld [vmem:[#allocation2 + $0x30] sm:$0xe] }
 0x2e5   : > { %v3031_v54 = vrot.slane %v3030_v38, 4  ;;  %v3041_v21 = vrot.slane %v3040_v43, 4  ;;  %v3114_v31 = vsel %vm8046_vm5, %v6126_v19, %v3113_v23  ;;  %v6640_v44 = vadd.f32 %v9283_v35, %v9276_v62  ;;  %v7522_v43 = vld [vmem:[#allocation2 + $0x38] sm:$0x1] }
 0x2e6   : > { %v6221_v33 = vcombine.low %v2427_v27, %v2437_v30  ;;  %v3117_v25 = vsel %vm8046_vm5, %v3115_v39, %v3116_v61  ;;  %v6755_v40 = vadd.f32 %v9278_v17, %v9270_v22  ;;  %v6643_v3 = vadd.f32 %v9289_v63, %v9287_v28  ;;  %v7520_v27 = vld [vmem:[#allocation2 + $0x28] sm:$0xf]  ;;  %v9525_v22 = vpop.f32.mrb[52].mxu0  ;;  %v7521_v28 = vld [vmem:[#allocation2 + $0x34] sm:$0xf] }
 0x2e7   : > { %v3036_v4 = vsel %vm8038_vm2, %v3031_v54, %v3035_v8  ;;  %v3046_v23 = vsel %vm8038_vm2, %v3041_v21, %v3045_v1  ;;  %v9521_v11 = vadd.f32 %v6752_v29, %v6640_v44  ;;  %v6127_v62 = vrot.slane %v3048_v24, 9  ;;  %v9531_v19 = vpop.f32.mrb[52].mxu1  ;;  %v9533_v52 = vpop.f32.mrb[53].mxu0  ;;  %v3051_v21 = vld [vmem:[#allocation2 + $0x48] sm:$0xe] }
 0x2e8   : > { %v6269_v35 = vcombine.low %v3036_v4, %v3046_v23  ;;  %v6270_v48 = vcombine.low %v3114_v31, %v3117_v25  ;;  %v9523_v51 = vadd.f32 %v6755_v40, %v6643_v3  ;;  %v3120_v60 = vrot.slane %v7520_v27, 5  ;;  %v9539_v30 = vpop.f32.mrb[53].mxu1  ;;  %v7524_v31 = vld [vmem:[#allocation2 + $0x4c] sm:$0xf] }
 0x2e9   : > { %v6128_v17 = vrot.slane %v3049_v53, 9  ;;  %v3127_v63 = vrot.slane %v7521_v28, 5  ;;  %v6758_v8 = vadd.f32 %v9346_v42, %v9342_v58  ;;  %v6646_v6 = vadd.f32 %v9322_v10, %v9312_v0  ;;  %v9541_v58 = vpop.f32.mrb[54].mxu0  ;;  %v3050_v42 = vld [vmem:[#allocation2 + $0x3c] sm:$0xe]  ;;  %v9545_v39 = vpop.f32.mrb[54].mxu1 }
 0x2ea   : > { %4898 = vmatmul.mubr.bf16.gmra.mrb[140].mxu1 %v6221_v33  ;;  %5058 = vmatprep.mubr.bf16.mxu0 %v6269_v35  ;;  %v3122_v38 = vrot.slane %v3120_v60, 4  ;;  %v3130_v1 = vrot.slane %v7522_v43, 5  ;;  %v6761_v57 = vadd.f32 %v9352_v55, %v9350_v7  ;;  %v6649_v61 = vadd.f32 %v9338_v15, %v9330_v18  ;;  %v9547_v29 = vpop.f32.mrb[55].mxu0  ;;  %v7523_v7 = vld [vmem:[#allocation2 + $0x40] sm:$0xf]  ;;  %v9551_v54 = vpop.f32.mrb[55].mxu1 }
 0x2eb   : > { %7152 = vmatprep.mubr.bf16.mxu1 %v6270_v48  ;;  %5059 = vmatmul.mubr.bf16.gmra.mrb[140].mxu0 %v6253_v37  ;;  %v3129_v0 = vrot.slane %v3127_v63, 4  ;;  %v9543_v10 = vadd.f32 %v6758_v8, %v6646_v6  ;;  %v3134_v55 = vrot.slane %v7523_v7, 5  ;;  %v3121_v18 = vsel %vm8046_vm5, %v6127_v62, %v3120_v60  ;;  %v7525_v53 = vld [vmem:[#allocation2 + $0x44] sm:$0x1]  ;;  %v7526_v28 = vld [vmem:[#allocation2 + $0x50] sm:$0x1] }
 0x2ec   : > { %v9549_v24 = vadd.f32 %v6761_v57, %v6649_v61  ;;  %v10235_v15 = vrot.slane %v9449_v14, 5  ;;  %v3141_v44 = vrot.slane %v7524_v31, 5  ;;  %v3128_v33 = vsel %vm8046_vm5, %v6128_v17, %v3127_v63  ;;  %v7528_v7 = vld [vmem:[#allocation2 + $0x64] sm:$0xf] }
 0x2ed   : > { %v3131_v25 = vsel %vm8046_vm5, %v3129_v0, %v3130_v1  ;;  %v6129_v40 = vrot.slane %v3050_v42, 9  ;;  %v3136_v3 = vrot.slane %v3134_v55, 4  ;;  %v3137_v4 = vrot.slane %v7525_v53, 5  ;;  %v3053_v42 = vld [vmem:[#allocation2 + $0x60] sm:$0xe] }
 0x2ee   : > { %v3124_v37 = vsel %vm8046_vm5, %v3122_v38, %v10235_v15  ;;  %v6764_v23 = vadd.f32 %v9400_v56, %v9394_v34  ;;  %v6652_v14 = vadd.f32 %v9403_v9, %v9398_v32  ;;  %v6130_v35 = vrot.slane %v3051_v21, 9  ;;  %v3052_v34 = vld [vmem:[#allocation2 + $0x54] sm:$0xe]  ;;  %v7527_v56 = vld [vmem:[#allocation2 + $0x58] sm:$0xf] }
 0x2ef   : > { %v6271_v62 = vcombine.low %v3121_v18, %v3124_v37  ;;  %v6767_v48 = vadd.f32 %v9411_v47, %v9405_v13  ;;  %v6655_v27 = vadd.f32 %v9413_v16, %v9409_v41  ;;  %v6272_v60 = vcombine.low %v3128_v33, %v3131_v25  ;;  %v7477_v16 = vld [vmem:[#allocation9 + $0x18] sm:$0xff]   ;;  %v3054_v18 = vld [vmem:[#allocation2 + $0x6c] sm:$0xe]  ;;  %v3055_v25 = vld [vmem:[#allocation2 + $0x78] sm:$0xe] }
 0x2f0   : > { %v3143_v17 = vrot.slane %v3141_v44, 4  ;;  %v3144_v63 = vrot.slane %v7526_v28, 5  ;;  %v9571_v8 = vadd.f32 %v6764_v23, %v6652_v14  ;;  %v3148_v32 = vrot.slane %v7527_v56, 5  ;;  %7190 = vmatprep.subr.bf16.mxu0 %v7477_v16  ;;  %v7532_v23 = vld [vmem:[#allocation2 + $0x68] sm:$0x1] }
 0x2f1   : > { %v9573_v6 = vadd.f32 %v6767_v48, %v6655_v27  ;;  %v3135_v9 = vsel %vm8046_vm5, %v6129_v40, %v3134_v55  ;;  %v3138_v13 = vsel %vm8046_vm5, %v3136_v3, %v3137_v4  ;;  %v6770_v41 = vadd.f32 %v9484_v59, %v9474_v5  ;;  %7191 = vmatpush3.bf16.msra.mxu0 %v7477_v16  ;;  %v7531_v40 = vld [vmem:[#allocation2 + $0x7c] sm:$0xf] }
 0x2f2   : > { %7153 = vmatmul.mubr.bf16.vlgmr.msra.gmra.mrb[144].mxu1 %v6271_v62  ;;  %v6658_v47 = vadd.f32 %v9464_v12, %v9454_v46  ;;  %v6773_v38 = vadd.f32 %v9496_v36, %v9490_v50  ;;  %v6661_v43 = vadd.f32 %v9486_v49, %v9476_v2  ;;  %v6668_v1 = vpop.f32.mrb[56].mxu1  ;;  %v3142_v57 = vsel %vm8046_vm5, %v6130_v35, %v3141_v44  ;;  %v7529_v12 = vld [vmem:[#allocation2 + $0x5c] sm:$0x1]  ;;  %v7530_v44 = vld [vmem:[#allocation2 + $0x70] sm:$0xf] }
 0x2f3   : > { %7156 = vmatprep.mubr.bf16.mxu1 %v6272_v60  ;;  %v3145_v61 = vsel %vm8046_vm5, %v3143_v17, %v3144_v63  ;;  %v6131_v0 = vrot.slane %v3052_v34, 9  ;;  %v3155_v5 = vrot.slane %v7528_v7, 5  ;;  %v6669_v59 = vpop.f32.mrb[57].mxu1  ;;  %v3150_v46 = vrot.slane %v3148_v32, 4 }
 0x2f4   : > { %v3151_v55 = vrot.slane %v7529_v12, 5  ;;  %v9591_v50 = vadd.f32 %v6770_v41, %v6658_v47  ;;  %v9593_v36 = vadd.f32 %v6773_v38, %v6661_v43  ;;  %v6671_v2 = vpop.f32.mrb[58].mxu1  ;;  %v6273_v49 = vcombine.low %v3135_v9, %v3138_v13  ;;  %v6780_v15 = vpop.f32.mrb[56].mxu0 }
 0x2f5   : > { %v6672_v37 = vpop.f32.mrb[59].mxu1  ;;  %v6274_v21 = vcombine.low %v3142_v57, %v3145_v61  ;;  %v6132_v31 = vrot.slane %v3053_v42, 9  ;;  %v3162_v33 = vrot.slane %v7530_v44, 5  ;;  %v3169_v3 = vrot.slane %v7531_v40, 5  ;;  %v6781_v53 = vpop.f32.mrb[57].mxu0  ;;  %v10236_v44 = vld [vmem:[#allocation44_spill] sm:$0xff] }
 0x2f6   : > { %v3157_v4 = vrot.slane %v3155_v5, 4  ;;  %v3158_v14 = vrot.slane %v7532_v23, 5  ;;  %v6776_v62 = vadd.f32 %v9533_v52, %v9525_v22  ;;  %v6664_v35 = vadd.f32 %v9539_v30, %v9531_v19  ;;  %v6783_v48 = vpop.f32.mrb[58].mxu0  ;;  %v7533_v52 = vld [vmem:[#allocation2 + $0x74] sm:$0x1] }
 0x2f7   : > { %v3149_v27 = vsel %vm8046_vm5, %v6131_v0, %v3148_v32  ;;  %v3152_v60 = vsel %vm8046_vm5, %v3150_v46, %v3151_v55  ;;  %v6779_v17 = vadd.f32 %v9547_v29, %v9541_v58  ;;  %v6667_v28 = vadd.f32 %v9551_v54, %v9545_v39  ;;  %v6784_v63 = vpop.f32.mrb[59].mxu0  ;;  %v7534_v32 = vld [vmem:[#allocation2 + $0x80] sm:$0x1]  ;;  %v9621_v61 = vld [vmem:[#allocation2 + $0x84] sm:$0xe]  ;;  %v10237_v23 = vld [vmem:[#allocation28_spill] sm:$0xff] }
 0x2f8   : > { %v6133_v22 = vrot.slane %v3054_v18, 9  ;;  %v3165_v34 = vrot.slane %v7533_v52, 5  ;;  %v6134_v19 = vrot.slane %v3055_v25, 9  ;;  %v9607_v30 = vadd.f32 %v6776_v62, %v6664_v35  ;;  %v7535_v46 = vld [vmem:[#allocation2 + $0x88] sm:$0xf]  ;;  %v10238_v35 = vld [vmem:[#allocation45_spill] sm:$0xff] }
 0x2f9   : > { %v3164_v56 = vrot.slane %v3162_v33, 4  ;;  %v3171_v9 = vrot.slane %v3169_v3, 4  ;;  %v3172_v13 = vrot.slane %v7534_v32, 5  ;;  %v9609_v16 = vadd.f32 %v6779_v17, %v6667_v28  ;;  %v3061_v55 = vld [vmem:[#allocation2 + $0xc0] sm:$0xe]  ;;  %v7478_v52 = vld [vmem:[#allocation9 + $0x20] sm:$0xff]  }
 0x2fa   : > { %7157 = vmatmul.mubr.bf16.gmra.mrb[148].mxu1 %v6273_v49  ;;  %v3156_v58 = vsel %vm8046_vm5, %v6132_v31, %v3155_v5  ;;  %v3159_v39 = vsel %vm8046_vm5, %v3157_v4, %v3158_v14  ;;  %v6782_v29 = vadd.f32 %v6781_v53, %v6780_v15  ;;  %v6670_v54 = vadd.f32 %v6669_v59, %v6668_v1  ;;  %v3060_v5 = vld [vmem:[#allocation2 + $0xb4] sm:$0xe]  ;;  %v9632_v49 = vld [vmem:[#allocation2 + $0x90] sm:$0xe]  ;;  %v3062_v25 = vld [vmem:[#allocation2 + $0xcc] sm:$0xe] }
 0x2fb   : > { %7160 = vmatprep.mubr.bf16.mxu1 %v6274_v21  ;;  %v6785_v41 = vadd.f32 %v6784_v63, %v6783_v48  ;;  %v6673_v47 = vadd.f32 %v6672_v37, %v6671_v2  ;;  %v6275_v38 = vcombine.low %v3149_v27, %v3152_v60  ;;  %v3163_v43 = vsel %vm8046_vm5, %v6133_v22, %v3162_v33  ;;  %v7536_v40 = vld [vmem:[#allocation2 + $0x8c] sm:$0x1] }
 0x2fc   : > { %v9619_v57 = vsel %vm8046_vm5, %v6134_v19, %v3169_v3  ;;  %v3166_v0 = vsel %vm8046_vm5, %v3164_v56, %v3165_v34  ;;  %v3173_v42 = vsel %vm8046_vm5, %v3171_v9, %v3172_v13  ;;  %v9627_v7 = vadd.f32 %v6782_v29, %v6670_v54  ;;  %v7537_v34 = vld [vmem:[#allocation2 + $0x94] sm:$0xf]  ;;  %7192 = vmatprep.subr.bf16.mxu0 %v7478_v52 }
 0x2fd   : > { %v9629_v1 = vadd.f32 %v6785_v41, %v6673_v47  ;;  %v6276_v59 = vcombine.low %v3156_v58, %v3159_v39  ;;  %v3176_v12 = vrot.slane %v7535_v46, 5  ;;  %v6135_v2 = vrot.slane %v9621_v61, 9  ;;  %7193 = vmatpush3.bf16.msra.mxu0 %v7478_v52 }
 0x2fe   : > { %v6277_v18 = vcombine.low %v3163_v43, %v3166_v0  ;;  %v6278_v15 = vcombine.low %v9619_v57, %v3173_v42  ;;  %v6139_v31 = vrot.slane %v3060_v5, 9  ;;  %v3204_v33 = vrot.slane %v10236_v44, 5  ;;  %v7538_v0 = vld [vmem:[#allocation2 + $0x98] sm:$0x1] }
 0x2ff   : > { %v3179_v3 = vrot.slane %v7536_v40, 5  ;;  %v3207_v14 = vrot.slane %v10237_v23, 5  ;;  %v6140_v62 = vrot.slane %v3061_v55, 9  ;;  %v3211_v48 = vrot.slane %v10238_v35, 5 }
 0x300   : > { %v6786_v37 = vpop.f32.mrb[60].mxu0  ;;  %v3178_v27 = vrot.slane %v3176_v12, 4  ;;  %v6136_v60 = vrot.slane %v9632_v49, 9  ;;  %v3183_v19 = vrot.slane %v7537_v34, 5  ;;  %v9641_v32 = vsel %vm8046_vm5, %v6139_v31, %v3204_v33 }
 0x301   : > { %v6674_v21 = vpop.f32.mrb[60].mxu1  ;;  %v6787_v53 = vpop.f32.mrb[61].mxu0  ;;  %v3206_v13 = vrot.slane %v3204_v33, 4  ;;  %v9645_v58 = vsel %vm8046_vm5, %v6140_v62, %v3211_v48  ;;  %v3213_v41 = vrot.slane %v3211_v48, 4  ;;  %v6141_v57 = vrot.slane %v3062_v25, 9 }
 0x302   : > { %7161 = vmatmul.mubr.bf16.gmra.mrb[152].mxu1 %v6275_v38  ;;  %v6675_v4 = vpop.f32.mrb[61].mxu1  ;;  %v6788_v17 = vadd.f32 %v6787_v53, %v6786_v37  ;;  %v6789_v63 = vpop.f32.mrb[62].mxu0  ;;  %v10239_v38 = vld [vmem:[#allocation31_spill] sm:$0xff]  ;;  %v3218_v61 = vrot.slane %v9472_v45, 5  ;;  %v3186_v42 = vrot.slane %v7538_v0, 5  ;;  %v3221_v46 = vrot.slane %v9482_v26, 5 }
 0x303   : > { %7164 = vmatprep.mubr.bf16.mxu1 %v6276_v59  ;;  %v6676_v28 = vadd.f32 %v6675_v4, %v6674_v21  ;;  %v6677_v22 = vpop.f32.mrb[62].mxu1  ;;  %v6790_v56 = vpop.f32.mrb[63].mxu0  ;;  %v9651_v47 = vsel %vm8046_vm5, %v3206_v13, %v3207_v14  ;;  %v3214_v43 = vrot.slane %v10239_v38, 5  ;;  %v3185_v55 = vrot.slane %v3183_v19, 4  ;;  %v3058_v53 = vld [vmem:[#allocation2 + $0x9c] sm:$0xe] }
 0x304   : > { %v6678_v9 = vpop.f32.mrb[63].mxu1  ;;  %v6791_v29 = vadd.f32 %v6790_v56, %v6789_v63  ;;  %v6283_v59 = vcombine.low %v9641_v32, %v9651_v47  ;;  %v9666_v37 = vsel %vm8046_vm5, %v6141_v57, %v3218_v61  ;;  %v3220_v45 = vrot.slane %v3218_v61, 4  ;;  %v7539_v4 = vld [vmem:[#allocation2 + $0xa0] sm:$0xf]  ;;  %v3059_v63 = vld [vmem:[#allocation2 + $0xa8] sm:$0xe] }
 0x305   : > { %v9647_v39 = vadd.f32 %v6788_v17, %v6676_v28  ;;  %v6679_v54 = vadd.f32 %v6678_v9, %v6677_v22  ;;  %v9662_v49 = vsel %vm8046_vm5, %v3213_v41, %v3214_v43  ;;  %v3177_v26 = vsel %vm8046_vm5, %v6135_v2, %v3176_v12  ;;  %v10241_v43 = vld [vmem:[#allocation42_spill] sm:$0xff] }
 0x306   : > { %v6284_v21 = vcombine.low %v9645_v58, %v9662_v49  ;;  %v9676_v40 = vsel %vm8046_vm5, %v3220_v45, %v3221_v46  ;;  %v3184_v12 = vsel %vm8046_vm5, %v6136_v60, %v3183_v19  ;;  %v3187_v2 = vsel %vm8046_vm5, %v3185_v55, %v3186_v42 }
 0x307   : > { %v9655_v5 = vadd.f32 %v6791_v29, %v6679_v54  ;;  %v6285_v48 = vcombine.low %v9666_v37, %v9676_v40  ;;  %v6137_v9 = vrot.slane %v3058_v53, 9  ;;  %v6280_v13 = vcombine.low %v3184_v12, %v3187_v2  ;;  %v7540_v54 = vld [vmem:[#allocation2 + $0xa4] sm:$0x1] }
 0x308   : > { %v6792_v31 = vpop.f32.mrb[64].mxu0  ;;  %v3193_v41 = vrot.slane %v7540_v54, 5  ;;  %v6138_v60 = vrot.slane %v3059_v63, 9  ;;  %v3200_v57 = vrot.slane %v10241_v43, 5 }
 0x309   : > { %v6680_v44 = vpop.f32.mrb[64].mxu1  ;;  %v6793_v33 = vpop.f32.mrb[65].mxu0 }
 0x30a   : > { %7165 = vmatmul.mubr.bf16.gmra.mrb[156].mxu1 %v6277_v18  ;;  %v3180_v18 = vsel %vm8046_vm5, %v3178_v27, %v3179_v3  ;;  %v6681_v25 = vpop.f32.mrb[65].mxu1  ;;  %v6794_v23 = vadd.f32 %v6793_v33, %v6792_v31  ;;  %v6795_v62 = vpop.f32.mrb[66].mxu0  ;;  %v10240_v3 = vld [vmem:[#allocation27_spill] sm:$0xff] }
 0x30b   : > { %7168 = vmatprep.mubr.bf16.mxu1 %v6278_v15  ;;  %v3190_v15 = vrot.slane %v7539_v4, 5  ;;  %v6682_v14 = vadd.f32 %v6681_v25, %v6680_v44  ;;  %v6683_v35 = vpop.f32.mrb[66].mxu1  ;;  %v3197_v27 = vrot.slane %v10240_v3, 5  ;;  %v6796_v17 = vpop.f32.mrb[67].mxu0  ;;  %v6279_v56 = vcombine.low %v3177_v26, %v3180_v18  ;;  %v7479_v3 = vld [vmem:[#allocation9 + $0x28] sm:$0xff]  }
 0x30c   : > { %v6684_v28 = vpop.f32.mrb[67].mxu1  ;;  %v6797_v52 = vadd.f32 %v6796_v17, %v6795_v62  ;;  %7194 = vmatprep.subr.bf16.mxu0 %v7479_v3 }
 0x30d   : > { %v9685_v22 = vadd.f32 %v6794_v23, %v6682_v14  ;;  %v6685_v34 = vadd.f32 %v6684_v28, %v6683_v35  ;;  %v3192_v29 = vrot.slane %v3190_v15, 4  ;;  %v3199_v19 = vrot.slane %v3197_v27, 4  ;;  %7195 = vmatpush3.bf16.msra.mxu0 %v7479_v3  ;;  %v10243_v3 = vld [vmem:[#allocation41_spill] sm:$0xff] }
 0x30e   : > { %v3191_v46 = vsel %vm8046_vm5, %v6137_v9, %v3190_v15  ;;  %v3198_v26 = vsel %vm8046_vm5, %v6138_v60, %v3197_v27 }
 0x30f   : > { %v9687_v38 = vadd.f32 %v6797_v52, %v6685_v34  ;;  %v3194_v55 = vsel %vm8046_vm5, %v3192_v29, %v3193_v41  ;;  %v3201_v18 = vsel %vm8046_vm5, %v3199_v19, %v3200_v57 }
 0x310   : > { %v6798_v61 = vpop.f32.mrb[68].mxu0  ;;  %v6281_v14 = vcombine.low %v3191_v46, %v3194_v55  ;;  %v6282_v35 = vcombine.low %v3198_v26, %v3201_v18 }
 0x311   : > { %v6686_v0 = vpop.f32.mrb[68].mxu1  ;;  %v6799_v42 = vpop.f32.mrb[69].mxu0 }
 0x312   : > { %7169 = vmatmul.mubr.bf16.gmra.mrb[160].mxu1 %v6279_v56  ;;  %v6800_v45 = vadd.f32 %v6799_v42, %v6798_v61  ;;  %v6687_v31 = vpop.f32.mrb[69].mxu1  ;;  %v6801_v44 = vpop.f32.mrb[70].mxu0 }
 0x313   : > { %7172 = vmatprep.mubr.bf16.mxu1 %v6280_v13  ;;  %v6688_v33 = vadd.f32 %v6687_v31, %v6686_v0  ;;  %v6689_v25 = vpop.f32.mrb[70].mxu1  ;;  %v6802_v53 = vpop.f32.mrb[71].mxu0 }
 0x314   : > { %v6803_v4 = vadd.f32 %v6802_v53, %v6801_v44  ;;  %v6690_v23 = vpop.f32.mrb[71].mxu1 }
 0x315   : > { %v9698_v62 = vadd.f32 %v6800_v45, %v6688_v33  ;;  %v6691_v15 = vadd.f32 %v6690_v23, %v6689_v25 }
 0x317   : > { %v9700_v12 = vadd.f32 %v6803_v4, %v6691_v15 }
 0x318   : > { %v6804_v2 = vpop.f32.mrb[72].mxu0 }
 0x319   : > { %v6692_v27 = vpop.f32.mrb[72].mxu1  ;;  %v6805_v17 = vpop.f32.mrb[73].mxu0 }
 0x31a   : > { %7173 = vmatmul.mubr.bf16.gmra.mrb[164].mxu1 %v6281_v14  ;;  %v6806_v20 = vadd.f32 %v6805_v17, %v6804_v2  ;;  %v6693_v28 = vpop.f32.mrb[73].mxu1  ;;  %v6807_v63 = vpop.f32.mrb[74].mxu0  ;;  %v10242_v14 = vld [vmem:[#allocation40_spill] sm:$0xff]  ;;  %v7480_v2 = vld [vmem:[#allocation9 + $0x30] sm:$0xff]  }
 0x31b   : > { %7176 = vmatprep.mubr.bf16.mxu1 %v6282_v35  ;;  %v6694_v52 = vadd.f32 %v6693_v28, %v6692_v27  ;;  %v6695_v34 = vpop.f32.mrb[74].mxu1  ;;  %v6808_v56 = vpop.f32.mrb[75].mxu0  ;;  %7196 = vmatprep.subr.bf16.mxu0 %v7480_v2 }
 0x31c   : > { %v6809_v9 = vadd.f32 %v6808_v56, %v6807_v63  ;;  %v6696_v13 = vpop.f32.mrb[75].mxu1  ;;  %7197 = vmatpush3.bf16.msra.mxu0 %v7480_v2 }
 0x31d   : > { %v9702_v29 = vadd.f32 %v6806_v20, %v6694_v52  ;;  %v6697_v54 = vadd.f32 %v6696_v13, %v6695_v34  ;;  %v10244_v13 = vld [vmem:[#allocation25_spill] sm:$0xff] }
 0x31f   : > { %v9707_v41 = vadd.f32 %v6809_v9, %v6697_v54 }
 0x320   : > { %v6810_v60 = vpop.f32.mrb[76].mxu0 }
 0x321   : > { %v6698_v19 = vpop.f32.mrb[76].mxu1  ;;  %v6811_v43 = vpop.f32.mrb[77].mxu0 }
 0x322   : > { %7177 = vmatmul.mubr.bf16.gmra.mrb[168].mxu1 %v6283_v59  ;;  %v6812_v57 = vadd.f32 %v6811_v43, %v6810_v60  ;;  %v6699_v61 = vpop.f32.mrb[77].mxu1  ;;  %v6813_v0 = vpop.f32.mrb[78].mxu0 }
 0x323   : > { %7180 = vmatprep.mubr.bf16.mxu1 %v6284_v21  ;;  %v6700_v42 = vadd.f32 %v6699_v61, %v6698_v19  ;;  %v6701_v46 = vpop.f32.mrb[78].mxu1  ;;  %v6814_v55 = vpop.f32.mrb[79].mxu0  ;;  %v10245_v19 = vld [vmem:[#allocation43_spill] sm:$0xff] }
 0x324   : > { %v6815_v45 = vadd.f32 %v6814_v55, %v6813_v0  ;;  %v6702_v31 = vpop.f32.mrb[79].mxu1 }
 0x325   : > { %v9712_v44 = vadd.f32 %v6812_v57, %v6700_v42  ;;  %v6703_v32 = vadd.f32 %v6702_v31, %v6701_v46 }
 0x327   : > { %v9717_v58 = vadd.f32 %v6815_v45, %v6703_v32 }
 0x328   : > { %v6944_v47 = vpop.f32.mrb[80].mxu0 }
 0x329   : > { %v6832_v59 = vpop.f32.mrb[80].mxu1  ;;  %v6945_v49 = vpop.f32.mrb[81].mxu0 }
 0x32a   : > { %7181 = vmatmul.mubr.bf16.gmra.mrb[172].mxu1 %v6285_v48  ;;  %v6946_v21 = vadd.f32 %v6945_v49, %v6944_v47  ;;  %v6833_v26 = vpop.f32.mrb[81].mxu1  ;;  %v6947_v18 = vpop.f32.mrb[82].mxu0  ;;  %v10246_v49 = vld [vmem:[#allocation30_spill] sm:$0xff] }
 0x32b   : > { %v6834_v33 = vadd.f32 %v6833_v26, %v6832_v59  ;;  %v6835_v25 = vpop.f32.mrb[82].mxu1  ;;  %v6948_v53 = vpop.f32.mrb[83].mxu0 }
 0x32c   : > { %v6949_v4 = vadd.f32 %v6948_v53, %v6947_v18  ;;  %v6836_v23 = vpop.f32.mrb[83].mxu1 }
 0x32d   : > { %v4780_v15 = vadd.f32 %v6834_v33, %v10242_v14  ;;  %v6837_v35 = vadd.f32 %v6836_v23, %v6835_v25  ;;  %v7481_v25 = vld [vmem:[#allocation9 + $0x38] sm:$0xff]   ;;  %v10247_v14 = vld [vmem:[#allocation26_spill] sm:$0xff] }
 0x32e   : > { %7198 = vmatprep.subr.bf16.mxu0 %v7481_v25 }
 0x32f   : > { %v4783_v37 = vadd.f32 %v6837_v35, %v10243_v3  ;;  %7199 = vmatpush3.bf16.msra.mxu0 %v7481_v25 }
 0x330   : > { %v6950_v40 = vpop.f32.mrb[84].mxu0 }
 0x331   : > { %v6951_v27 = vpop.f32.mrb[85].mxu0 }
 0x332   : > { %v6838_v48 = vpop.f32.mrb[84].mxu1  ;;  %v6952_v17 = vadd.f32 %v6951_v27, %v6950_v40  ;;  %v6953_v28 = vpop.f32.mrb[86].mxu0 }
 0x333   : > { %v6839_v20 = vpop.f32.mrb[85].mxu1  ;;  %v6954_v34 = vpop.f32.mrb[87].mxu0 }
 0x334   : > { %v6840_v63 = vadd.f32 %v6839_v20, %v6838_v48  ;;  %v6841_v52 = vpop.f32.mrb[86].mxu1  ;;  %v6955_v56 = vadd.f32 %v6954_v34, %v6953_v28  ;;  %v10248_v34 = vld [vmem:[#allocation32_spill] sm:$0xff] }
 0x335   : > { %v6842_v9 = vpop.f32.mrb[87].mxu1 }
 0x336   : > { %v4788_v54 = vadd.f32 %v6840_v63, %v10244_v13  ;;  %v6843_v60 = vadd.f32 %v6842_v9, %v6841_v52 }
 0x338   : > { %v4791_v43 = vadd.f32 %v6843_v60, %v10245_v19  ;;  %v6956_v57 = vpop.f32.mrb[88].mxu0  ;;  %v9724_v53 = vadd.f32 %v6952_v17, %v4788_v54  ;;  %v9728_v60 = vadd.f32 %v6946_v21, %v4780_v15  ;;  %v10249_v19 = vld [vmem:[#allocation29_spill] sm:$0xff] }
 0x339   : > { %v6957_v61 = vpop.f32.mrb[89].mxu0 }
 0x33a   : > { %v6958_v0 = vadd.f32 %v6957_v61, %v6956_v57  ;;  %v6959_v42 = vpop.f32.mrb[90].mxu0  ;;  %v9730_v54 = vadd.f32 %v6955_v56, %v4791_v43  ;;  %v10250_v56 = vld [vmem:[#allocation17_spill] sm:$0xff] }
 0x33b   : > { %v6960_v46 = vpop.f32.mrb[91].mxu0 }
 0x33c   : > { %v6844_v55 = vpop.f32.mrb[88].mxu1  ;;  %v6961_v45 = vadd.f32 %v6960_v46, %v6959_v42 }
 0x33d   : > { %v6845_v31 = vpop.f32.mrb[89].mxu1 }
 0x33e   : > { %v6846_v32 = vadd.f32 %v6845_v31, %v6844_v55  ;;  %v6847_v47 = vpop.f32.mrb[90].mxu1  ;;  %v9733_v31 = vadd.f32 %v6949_v4, %v4783_v37 }
 0x33f   : > { %v6848_v59 = vpop.f32.mrb[91].mxu1 }
 0x340   : > { %v4796_v26 = vadd.f32 %v6846_v32, %v10246_v49  ;;  %v6849_v18 = vadd.f32 %v6848_v59, %v6847_v47  ;;  %v6962_v33 = vpop.f32.mrb[92].mxu0 }
 0x341   : > { %v6963_v23 = vpop.f32.mrb[93].mxu0 }
 0x342   : > { %v4799_v35 = vadd.f32 %v6849_v18, %v10247_v14  ;;  %v6964_v2 = vadd.f32 %v6963_v23, %v6962_v33  ;;  %v6965_v3 = vpop.f32.mrb[94].mxu0  ;;  %v9737_v15 = vadd.f32 %v6958_v0, %v4796_v26 }
 0x343   : > { %v6966_v40 = vpop.f32.mrb[95].mxu0 }
 0x344   : > { %v6967_v48 = vadd.f32 %v6966_v40, %v6965_v3  ;;  %v9742_v14 = vadd.f32 %v6961_v45, %v4799_v35  ;;  %v10251_v3 = vld [vmem:[#allocation18_spill] sm:$0xff] }
 0x346   : > { %v6850_v27 = vpop.f32.mrb[92].mxu1 }
 0x347   : > { %v6851_v20 = vpop.f32.mrb[93].mxu1 }
 0x348   : > { %v6852_v28 = vadd.f32 %v6851_v20, %v6850_v27  ;;  %v6853_v63 = vpop.f32.mrb[94].mxu1 }
 0x349   : > { %v6854_v52 = vpop.f32.mrb[95].mxu1 }
 0x34a   : > { %v4804_v9 = vadd.f32 %v6852_v28, %v10248_v34  ;;  %v6855_v13 = vadd.f32 %v6854_v52, %v6853_v63  ;;  %v6968_v17 = vpop.f32.mrb[96].mxu0 }
 0x34b   : > { %v6969_v61 = vpop.f32.mrb[97].mxu0 }
 0x34c   : > { %v4807_v57 = vadd.f32 %v6855_v13, %v10249_v19  ;;  %v6970_v42 = vadd.f32 %v6969_v61, %v6968_v17  ;;  %v6971_v46 = vpop.f32.mrb[98].mxu0  ;;  %v9735_v32 = vadd.f32 %v6964_v2, %v4804_v9 }
 0x34d   : > { %v6972_v55 = vpop.f32.mrb[99].mxu0 }
 0x34e   : > { %v6973_v59 = vadd.f32 %v6972_v55, %v6971_v46  ;;  %v9740_v23 = vadd.f32 %v6967_v48, %v4807_v57 }
 0x34f   : > { %v6856_v47 = vpop.f32.mrb[96].mxu1 }
 0x350   : > { %v6857_v49 = vpop.f32.mrb[97].mxu1 }
 0x351   : > { %v6858_v18 = vadd.f32 %v6857_v49, %v6856_v47  ;;  %v6859_v33 = vpop.f32.mrb[98].mxu1 }
 0x352   : > { %v6860_v21 = vpop.f32.mrb[99].mxu1 }
 0x353   : > { %v4812_v43 = vadd.f32 %v6858_v18, %v10250_v56  ;;  %v6861_v25 = vadd.f32 %v6860_v21, %v6859_v33 }
 0x354   : > { %v6974_v37 = vpop.f32.mrb[100].mxu0 }
 0x355   : > { %v4815_v4 = vadd.f32 %v6861_v25, %v10251_v3  ;;  %v6975_v2 = vpop.f32.mrb[101].mxu0  ;;  %v9745_v26 = vadd.f32 %v6970_v42, %v4812_v43 }
 0x356   : > { %v6976_v40 = vadd.f32 %v6975_v2, %v6974_v37  ;;  %v6977_v27 = vpop.f32.mrb[102].mxu0 }
 0x357   : > { %v6978_v28 = vpop.f32.mrb[103].mxu0  ;;  %v9748_v45 = vadd.f32 %v6973_v59, %v4815_v4 }
 0x358   : > { %v6862_v20 = vpop.f32.mrb[100].mxu1  ;;  %v6979_v52 = vadd.f32 %v6978_v28, %v6977_v27 }
 0x359   : > { %v6863_v63 = vpop.f32.mrb[101].mxu1 }
 0x35a   : > { %v6864_v34 = vadd.f32 %v6863_v63, %v6862_v20  ;;  %v6865_v0 = vpop.f32.mrb[102].mxu1 }
 0x35b   : > { %v6866_v9 = vpop.f32.mrb[103].mxu1 }
 0x35c   : > { %v4820_v48 = vadd.f32 %v6864_v34, %v9521_v11  ;;  %v6867_v13 = vadd.f32 %v6866_v9, %v6865_v0 }
 0x35d   : > { %v6980_v35 = vpop.f32.mrb[104].mxu0 }
 0x35e   : > { %v4823_v17 = vadd.f32 %v6867_v13, %v9523_v51  ;;  %v6981_v19 = vpop.f32.mrb[105].mxu0  ;;  %v9751_v57 = vadd.f32 %v6976_v40, %v4820_v48 }
 0x35f   : > { %v6982_v61 = vadd.f32 %v6981_v19, %v6980_v35  ;;  %v6983_v46 = vpop.f32.mrb[106].mxu0 }
 0x360   : > { %v6984_v55 = vpop.f32.mrb[107].mxu0  ;;  %v9753_v47 = vadd.f32 %v6979_v52, %v4823_v17 }
 0x361   : > { %v6985_v49 = vadd.f32 %v6984_v55, %v6983_v46 }
 0x362   : > { %v6868_v42 = vpop.f32.mrb[104].mxu1 }
 0x363   : > { %v6869_v18 = vpop.f32.mrb[105].mxu1 }
 0x364   : > { %v6870_v33 = vadd.f32 %v6869_v18, %v6868_v42  ;;  %v6871_v21 = vpop.f32.mrb[106].mxu1 }
 0x365   : > { %v6872_v11 = vpop.f32.mrb[107].mxu1 }
 0x366   : > { %v4828_v59 = vadd.f32 %v6870_v33, %v9543_v10  ;;  %v6873_v56 = vadd.f32 %v6872_v11, %v6871_v21 }
 0x367   : > { %v6986_v43 = vpop.f32.mrb[108].mxu0 }
 0x368   : > { %v4831_v51 = vadd.f32 %v6873_v56, %v9549_v24  ;;  %v6987_v25 = vpop.f32.mrb[109].mxu0  ;;  %v9757_v3 = vadd.f32 %v6982_v61, %v4828_v59 }
 0x369   : > { %v6988_v4 = vadd.f32 %v6987_v25, %v6986_v43  ;;  %v6989_v37 = vpop.f32.mrb[110].mxu0 }
 0x36a   : > { %v6990_v2 = vpop.f32.mrb[111].mxu0  ;;  %v9759_v40 = vadd.f32 %v6985_v49, %v4831_v51 }
 0x36b   : > { %v6874_v27 = vpop.f32.mrb[108].mxu1  ;;  %v6991_v20 = vadd.f32 %v6990_v2, %v6989_v37 }
 0x36c   : > { %v6875_v28 = vpop.f32.mrb[109].mxu1 }
 0x36d   : > { %v6876_v63 = vadd.f32 %v6875_v28, %v6874_v27  ;;  %v6877_v52 = vpop.f32.mrb[110].mxu1 }
 0x36e   : > { %v6878_v34 = vpop.f32.mrb[111].mxu1 }
 0x36f   : > { %v4836_v10 = vadd.f32 %v6876_v63, %v9571_v8  ;;  %v6879_v0 = vadd.f32 %v6878_v34, %v6877_v52 }
 0x370   : > { %v6992_v9 = vpop.f32.mrb[112].mxu0 }
 0x371   : > { %v6993_v48 = vpop.f32.mrb[113].mxu0  ;;  %v4839_v24 = vadd.f32 %v6879_v0, %v9573_v6  ;;  %v9763_v17 = vadd.f32 %v6988_v4, %v4836_v10 }
 0x372   : > { %v6994_v13 = vadd.f32 %v6993_v48, %v6992_v9  ;;  %v6995_v35 = vpop.f32.mrb[114].mxu0 }
 0x373   : > { %v6996_v19 = vpop.f32.mrb[115].mxu0  ;;  %v9765_v46 = vadd.f32 %v6991_v20, %v4839_v24 }
 0x374   : > { %v6997_v61 = vadd.f32 %v6996_v19, %v6995_v35 }
 0x375   : > { %v6880_v55 = vpop.f32.mrb[112].mxu1 }
 0x376   : > { %v6881_v49 = vpop.f32.mrb[113].mxu1 }
 0x377   : > { %v6882_v42 = vadd.f32 %v6881_v49, %v6880_v55  ;;  %v6883_v18 = vpop.f32.mrb[114].mxu1 }
 0x378   : > { %v6884_v33 = vpop.f32.mrb[115].mxu1 }
 0x379   : > { %v4844_v8 = vadd.f32 %v6882_v42, %v9591_v50  ;;  %v6885_v21 = vadd.f32 %v6884_v33, %v6883_v18 }
 0x37a   : > { %v6998_v11 = vpop.f32.mrb[116].mxu0 }
 0x37b   : > { %v4847_v59 = vadd.f32 %v6885_v21, %v9593_v36  ;;  %v6999_v6 = vpop.f32.mrb[117].mxu0  ;;  %v9769_v56 = vadd.f32 %v6994_v13, %v4844_v8 }
 0x37c   : > { %v7000_v43 = vadd.f32 %v6999_v6, %v6998_v11  ;;  %v7001_v51 = vpop.f32.mrb[118].mxu0 }
 0x37d   : > { %v7002_v25 = vpop.f32.mrb[119].mxu0  ;;  %v9771_v4 = vadd.f32 %v6997_v61, %v4847_v59 }
 0x37e   : > { %v6886_v37 = vpop.f32.mrb[116].mxu1  ;;  %v7003_v2 = vadd.f32 %v7002_v25, %v7001_v51 }
 0x37f   : > { %v6887_v27 = vpop.f32.mrb[117].mxu1 }
 0x380   : > { %v6888_v20 = vadd.f32 %v6887_v27, %v6886_v37  ;;  %v6889_v28 = vpop.f32.mrb[118].mxu1 }
 0x381   : > { %v6890_v63 = vpop.f32.mrb[119].mxu1 }
 0x382   : > { %v4852_v50 = vadd.f32 %v6888_v20, %v9607_v30  ;;  %v6891_v52 = vadd.f32 %v6890_v63, %v6889_v28 }
 0x384   : > { %v4855_v34 = vadd.f32 %v6891_v52, %v9609_v16  ;;  %v7004_v36 = vpop.f32.mrb[120].mxu0  ;;  %v9775_v10 = vadd.f32 %v7000_v43, %v4852_v50 }
 0x385   : > { %v7005_v0 = vpop.f32.mrb[121].mxu0 }
 0x386   : > { %v7006_v9 = vadd.f32 %v7005_v0, %v7004_v36  ;;  %v7007_v48 = vpop.f32.mrb[122].mxu0  ;;  %v9777_v24 = vadd.f32 %v7003_v2, %v4855_v34 }
 0x387   : > { %v7008_v13 = vpop.f32.mrb[123].mxu0 }
 0x388   : > { %v6892_v35 = vpop.f32.mrb[120].mxu1  ;;  %v7009_v19 = vadd.f32 %v7008_v13, %v7007_v48 }
 0x389   : > { %v6893_v61 = vpop.f32.mrb[121].mxu1 }
 0x38a   : > { %v6894_v55 = vadd.f32 %v6893_v61, %v6892_v35  ;;  %v6895_v49 = vpop.f32.mrb[122].mxu1 }
 0x38b   : > { %v6896_v42 = vpop.f32.mrb[123].mxu1 }
 0x38c   : > { %v4860_v30 = vadd.f32 %v6894_v55, %v9627_v7  ;;  %v6897_v18 = vadd.f32 %v6896_v42, %v6895_v49  ;;  %v7010_v33 = vpop.f32.mrb[124].mxu0 }
 0x38d   : > { %v7011_v16 = vpop.f32.mrb[125].mxu0 }
 0x38e   : > { %v4863_v8 = vadd.f32 %v6897_v18, %v9629_v1  ;;  %v7012_v21 = vadd.f32 %v7011_v16, %v7010_v33  ;;  %v7013_v11 = vpop.f32.mrb[126].mxu0  ;;  %v9781_v59 = vadd.f32 %v7006_v9, %v4860_v30 }
 0x38f   : > { %v7014_v6 = vpop.f32.mrb[127].mxu0 }
 0x390   : > { %v7015_v43 = vadd.f32 %v7014_v6, %v7013_v11  ;;  %v9783_v51 = vadd.f32 %v7009_v19, %v4863_v8 }
 0x394   : > { %v6898_v25 = vpop.f32.mrb[124].mxu1 }
 0x395   : > { %v6899_v37 = vpop.f32.mrb[125].mxu1 }
 0x396   : > { %v6900_v2 = vadd.f32 %v6899_v37, %v6898_v25  ;;  %v6901_v27 = vpop.f32.mrb[126].mxu1 }
 0x397   : > { %v6902_v20 = vpop.f32.mrb[127].mxu1  ;;  %v7016_v28 = vpop.f32.mrb[128].mxu0 }
 0x398   : > { %v4868_v7 = vadd.f32 %v6900_v2, %v9647_v39  ;;  %v6903_v63 = vadd.f32 %v6902_v20, %v6901_v27  ;;  %v7017_v50 = vpop.f32.mrb[129].mxu0 }
 0x399   : > { %v7018_v52 = vadd.f32 %v7017_v50, %v7016_v28  ;;  %v7019_v1 = vpop.f32.mrb[130].mxu0 }
 0x39a   : > { %v4871_v34 = vadd.f32 %v6903_v63, %v9655_v5  ;;  %v7020_v36 = vpop.f32.mrb[131].mxu0  ;;  %v9787_v0 = vadd.f32 %v7012_v21, %v4868_v7 }
 0x39b   : > { %v7021_v9 = vadd.f32 %v7020_v36, %v7019_v1 }
 0x39c   : > { %v9789_v48 = vadd.f32 %v7015_v43, %v4871_v34 }
 0x39f   : > { %v6904_v13 = vpop.f32.mrb[128].mxu1 }
 0x3a0   : > { %v6905_v35 = vpop.f32.mrb[129].mxu1 }
 0x3a1   : > { %v6906_v19 = vadd.f32 %v6905_v35, %v6904_v13  ;;  %v6907_v61 = vpop.f32.mrb[130].mxu1 }
 0x3a2   : > { %v6908_v55 = vpop.f32.mrb[131].mxu1  ;;  %v7022_v42 = vpop.f32.mrb[132].mxu0 }
 0x3a3   : > { %v4876_v49 = vadd.f32 %v6906_v19, %v9685_v22  ;;  %v6909_v39 = vadd.f32 %v6908_v55, %v6907_v61  ;;  %v7023_v30 = vpop.f32.mrb[133].mxu0 }
 0x3a4   : > { %v7024_v33 = vadd.f32 %v7023_v30, %v7022_v42  ;;  %v7025_v5 = vpop.f32.mrb[134].mxu0 }
 0x3a5   : > { %v4879_v18 = vadd.f32 %v6909_v39, %v9687_v38  ;;  %v9793_v16 = vadd.f32 %v7018_v52, %v4876_v49  ;;  %v7026_v8 = vpop.f32.mrb[135].mxu0 }
 0x3a6   : > { %v7027_v21 = vadd.f32 %v7026_v8, %v7025_v5 }
 0x3a7   : > { %v9795_v11 = vadd.f32 %v7021_v9, %v4879_v18 }
 0x3aa   : > { %v6910_v6 = vpop.f32.mrb[132].mxu1 }
 0x3ab   : > { %v6911_v43 = vpop.f32.mrb[133].mxu1 }
 0x3ac   : > { %v6912_v25 = vadd.f32 %v6911_v43, %v6910_v6  ;;  %v6913_v37 = vpop.f32.mrb[134].mxu1 }
 0x3ad   : > { %v6914_v2 = vpop.f32.mrb[135].mxu1  ;;  %v7028_v27 = vpop.f32.mrb[136].mxu0 }
 0x3ae   : > { %v4884_v22 = vadd.f32 %v6912_v25, %v9698_v62  ;;  %v6915_v20 = vadd.f32 %v6914_v2, %v6913_v37  ;;  %v7029_v28 = vpop.f32.mrb[137].mxu0 }
 0x3af   : > { %v7030_v7 = vadd.f32 %v7029_v28, %v7028_v27  ;;  %v7031_v38 = vpop.f32.mrb[138].mxu0 }
 0x3b0   : > { %v4887_v63 = vadd.f32 %v6915_v20, %v9700_v12  ;;  %v7032_v50 = vpop.f32.mrb[139].mxu0  ;;  %v9799_v52 = vadd.f32 %v7024_v33, %v4884_v22  ;;  %v9816_v22 = vld [vmem:[%s10086_s4] ss:$0 sm:$0xff] }
 0x3b1   : > { %v7033_v1 = vadd.f32 %v7032_v50, %v7031_v38 }
 0x3b2   : > { %v9801_v34 = vadd.f32 %v7027_v21, %v4887_v63 }
 0x3b5   : > { %v6916_v36 = vpop.f32.mrb[136].mxu1 }
 0x3b6   : > { %v6917_v9 = vpop.f32.mrb[137].mxu1 }
 0x3b7   : > { %v6918_v13 = vadd.f32 %v6917_v9, %v6916_v36  ;;  %v6919_v35 = vpop.f32.mrb[138].mxu1 }
 0x3b8   : > { %v6920_v19 = vpop.f32.mrb[139].mxu1 }
 0x3b9   : > { %v4892_v61 = vadd.f32 %v6918_v13, %v9702_v29  ;;  %v6921_v62 = vadd.f32 %v6920_v19, %v6919_v35 }
 0x3bb   : > { %v4895_v55 = vadd.f32 %v6921_v62, %v9707_v41  ;;  %v9805_v49 = vadd.f32 %v7030_v7, %v4892_v61 }
 0x3bd   : > { %v6922_v39 = vpop.f32.mrb[140].mxu1  ;;  %v9807_v12 = vadd.f32 %v7033_v1, %v4895_v55 }
 0x3be   : > { %v6923_v42 = vpop.f32.mrb[141].mxu1  ;;  %v7034_v30 = vpop.f32.mrb[140].mxu0 }
 0x3bf   : > { %v6924_v18 = vadd.f32 %v6923_v42, %v6922_v39  ;;  %v6925_v33 = vpop.f32.mrb[142].mxu1  ;;  %v7035_v5 = vpop.f32.mrb[141].mxu0 }
 0x3c0   : > { %v6926_v8 = vpop.f32.mrb[143].mxu1  ;;  %v7036_v21 = vadd.f32 %v7035_v5, %v7034_v30  ;;  %v7037_v6 = vpop.f32.mrb[142].mxu0 }
 0x3c1   : > { %v4900_v43 = vadd.f32 %v6924_v18, %v9712_v44  ;;  %v6927_v25 = vadd.f32 %v6926_v8, %v6925_v33  ;;  %v7038_v29 = vpop.f32.mrb[143].mxu0  ;;  %v9824_v44 = vld [vmem:[%s10086_s4 + $0x1] ss:$0 sm:$0xff] }
 0x3c2   : > { %v7039_v37 = vadd.f32 %v7038_v29, %v7037_v6 }
 0x3c3   : > { %v4903_v41 = vadd.f32 %v6927_v25, %v9717_v58  ;;  %v9811_v2 = vadd.f32 %v7036_v21, %v4900_v43 }
 0x3c5   : > { %v7154_v27 = vpop.f32.mrb[144].mxu1  ;;  %v9818_v20 = vadd.f32 %v7039_v37, %v4903_v41 }
 0x3c6   : > { %v5110_v28 = vadd.f32 %v7154_v27, %v9724_v53  ;;  %v5101_v7 = vpop.f32.mrb[145].mxu1 }
 0x3c7   : > { %v5102_v58 = vadd.f32 %v5101_v7, %v9728_v60  ;;  %v7155_v38 = vpop.f32.mrb[146].mxu1 }
 0x3c8   : > { %v5236_v63 = vmul.f32 %v9816_v22, %v5110_v28  ;;  %v5113_v50 = vadd.f32 %v7155_v38, %v9730_v54  ;;  %v5104_v1 = vpop.f32.mrb[147].mxu1 }
 0x3c9   : > { %v5234_v36 = vmul.f32 %v9816_v22, %v5102_v58  ;;  %v5105_v9 = vadd.f32 %v5104_v1, %v9733_v31 }
 0x3ca   : > { %v5272_v53 = vadd.f32 %v9824_v44, %v5236_v63  ;;  %v5237_v13 = vmul.f32 %v9816_v22, %v5113_v50 }
 0x3cb   : > { %v5270_v35 = vadd.f32 %v9824_v44, %v5234_v36  ;;  %v5235_v19 = vmul.f32 %v9816_v22, %v5105_v9 }
 0x3cc   : > { %v5273_v60 = vadd.f32 %v9824_v44, %v5237_v13  ;;  %v5304_v55 = vmax.f32 %v5272_v53, 0.0 }
 0x3cd   : > { %v5271_v61 = vadd.f32 %v9824_v44, %v5235_v19  ;;  %v7158_v62 = vpop.f32.mrb[148].mxu1  ;;  %v5302_v30 = vmax.f32 %v5270_v35, 0.0 }
 0x3ce   : > { %v5305_v54 = vmax.f32 %v5273_v60, 0.0  ;;  %v5126_v39 = vadd.f32 %v7158_v62, %v9735_v32  ;;  %v5117_v42 = vpop.f32.mrb[149].mxu1 }
 0x3cf   : > { %v5303_v31 = vmax.f32 %v5271_v61, 0.0  ;;  %v5118_v18 = vadd.f32 %v5117_v42, %v9737_v15  ;;  %v7159_v33 = vpop.f32.mrb[150].mxu1 }
 0x3d0   : > { %v5335_v5 = vpack.c.bf16 %v5305_v54, %v5304_v55  ;;  %v5240_v8 = vmul.f32 %v9816_v22, %v5126_v39  ;;  %v5129_v21 = vadd.f32 %v7159_v33, %v9740_v23  ;;  %v5120_v6 = vpop.f32.mrb[151].mxu1 }
 0x3d1   : > { %v5238_v43 = vmul.f32 %v9816_v22, %v5118_v18  ;;  %v5121_v25 = vadd.f32 %v5120_v6, %v9742_v14  ;;  %v5334_v29 = vpack.c.bf16 %v5303_v31, %v5302_v30 }
 0x3d2   : > { %v5276_v37 = vadd.f32 %v9824_v44, %v5240_v8  ;;  %v5241_v32 = vmul.f32 %v9816_v22, %v5129_v21 }
 0x3d3   : > { %v5274_v41 = vadd.f32 %v9824_v44, %v5238_v43  ;;  %v5239_v15 = vmul.f32 %v9816_v22, %v5121_v25  ;;  %7200 = vmatprep.mubr.bf16.mxu0 %v5334_v29 }
 0x3d4   : > { %v5277_v27 = vadd.f32 %v9824_v44, %v5241_v32  ;;  %7201 = vmatmul.mubr.bf16.vlgmr.msra.gmra.mrb[144].mxu0 %v5335_v5  ;;  %v5308_v7 = vmax.f32 %v5276_v37, 0.0 }
 0x3d5   : > { %v5275_v23 = vadd.f32 %v9824_v44, %v5239_v15  ;;  %v7162_v28 = vpop.f32.mrb[152].mxu1  ;;  %v5306_v63 = vmax.f32 %v5274_v41, 0.0 }
 0x3d6   : > { %v5309_v58 = vmax.f32 %v5277_v27, 0.0  ;;  %v5142_v14 = vadd.f32 %v7162_v28, %v9751_v57  ;;  %v5133_v38 = vpop.f32.mrb[153].mxu1 }
 0x3d7   : > { %v5307_v50 = vmax.f32 %v5275_v23, 0.0  ;;  %v5134_v1 = vadd.f32 %v5133_v38, %v9745_v26  ;;  %v7163_v36 = vpop.f32.mrb[154].mxu1 }
 0x3d8   : > { %v5244_v9 = vmul.f32 %v9816_v22, %v5142_v14  ;;  %v5145_v53 = vadd.f32 %v7163_v36, %v9753_v47  ;;  %v5136_v13 = vpop.f32.mrb[155].mxu1  ;;  %v5337_v35 = vpack.c.bf16 %v5309_v58, %v5308_v7 }
 0x3d9   : > { %v5242_v19 = vmul.f32 %v9816_v22, %v5134_v1  ;;  %v5137_v60 = vadd.f32 %v5136_v13, %v9748_v45  ;;  %v5336_v61 = vpack.c.bf16 %v5307_v50, %v5306_v63 }
 0x3da   : > { %v5280_v62 = vadd.f32 %v9824_v44, %v5244_v9  ;;  %v5245_v57 = vmul.f32 %v9816_v22, %v5145_v53 }
 0x3db   : > { %v5278_v55 = vadd.f32 %v9824_v44, %v5242_v19  ;;  %v5243_v26 = vmul.f32 %v9816_v22, %v5137_v60  ;;  %7204 = vmatprep.mubr.bf16.mxu0 %v5336_v61 }
 0x3dc   : > { %v5281_v54 = vadd.f32 %v9824_v44, %v5245_v57  ;;  %7205 = vmatmul.mubr.bf16.gmra.mrb[148].mxu0 %v5337_v35  ;;  %v5312_v42 = vmax.f32 %v5280_v62, 0.0 }
 0x3dd   : > { %v5279_v47 = vadd.f32 %v9824_v44, %v5243_v26  ;;  %v7166_v39 = vpop.f32.mrb[156].mxu1  ;;  %v5310_v18 = vmax.f32 %v5278_v55, 0.0 }
 0x3de   : > { %v5313_v30 = vmax.f32 %v5281_v54, 0.0  ;;  %v5158_v45 = vadd.f32 %v7166_v39, %v9763_v17  ;;  %v5149_v31 = vpop.f32.mrb[157].mxu1 }
 0x3df   : > { %v5311_v33 = vmax.f32 %v5279_v47, 0.0  ;;  %v5150_v5 = vadd.f32 %v5149_v31, %v9757_v3  ;;  %v7167_v8 = vpop.f32.mrb[158].mxu1 }
 0x3e0   : > { %v5248_v21 = vmul.f32 %v9816_v22, %v5158_v45  ;;  %v5161_v6 = vadd.f32 %v7167_v8, %v9765_v46  ;;  %v5152_v43 = vpop.f32.mrb[159].mxu1  ;;  %v5339_v25 = vpack.c.bf16 %v5313_v30, %v5312_v42 }
 0x3e1   : > { %v5246_v29 = vmul.f32 %v9816_v22, %v5150_v5  ;;  %v5153_v37 = vadd.f32 %v5152_v43, %v9759_v40  ;;  %v5338_v32 = vpack.c.bf16 %v5311_v33, %v5310_v18 }
 0x3e2   : > { %v5284_v41 = vadd.f32 %v9824_v44, %v5248_v21  ;;  %v5249_v17 = vmul.f32 %v9816_v22, %v5161_v6 }
 0x3e3   : > { %v5282_v15 = vadd.f32 %v9824_v44, %v5246_v29  ;;  %v5247_v3 = vmul.f32 %v9816_v22, %v5153_v37  ;;  %7208 = vmatprep.mubr.bf16.mxu0 %v5338_v32 }
 0x3e4   : > { %v5285_v27 = vadd.f32 %v9824_v44, %v5249_v17  ;;  %7209 = vmatmul.mubr.bf16.gmra.mrb[152].mxu0 %v5339_v25  ;;  %v5316_v28 = vmax.f32 %v5284_v41, 0.0 }
 0x3e5   : > { %v5283_v46 = vadd.f32 %v9824_v44, %v5247_v3  ;;  %v7170_v23 = vpop.f32.mrb[160].mxu1  ;;  %v5314_v14 = vmax.f32 %v5282_v15, 0.0 }
 0x3e6   : > { %v5317_v7 = vmax.f32 %v5285_v27, 0.0  ;;  %v5174_v40 = vadd.f32 %v7170_v23, %v9775_v10  ;;  %v5165_v58 = vpop.f32.mrb[161].mxu1 }
 0x3e7   : > { %v5315_v38 = vmax.f32 %v5283_v46, 0.0  ;;  %v5166_v63 = vadd.f32 %v5165_v58, %v9769_v56  ;;  %v7171_v50 = vpop.f32.mrb[162].mxu1 }
 0x3e8   : > { %v5252_v1 = vmul.f32 %v9816_v22, %v5174_v40  ;;  %v5177_v36 = vadd.f32 %v7171_v50, %v9777_v24  ;;  %v5168_v9 = vpop.f32.mrb[163].mxu1  ;;  %v5341_v53 = vpack.c.bf16 %v5317_v7, %v5316_v28 }
 0x3e9   : > { %v5250_v13 = vmul.f32 %v9816_v22, %v5166_v63  ;;  %v5169_v35 = vadd.f32 %v5168_v9, %v9771_v4  ;;  %v5340_v19 = vpack.c.bf16 %v5315_v38, %v5314_v14 }
 0x3ea   : > { %v5288_v60 = vadd.f32 %v9824_v44, %v5252_v1  ;;  %v5253_v10 = vmul.f32 %v9816_v22, %v5177_v36 }
 0x3eb   : > { %v5286_v61 = vadd.f32 %v9824_v44, %v5250_v13  ;;  %v5251_v56 = vmul.f32 %v9816_v22, %v5169_v35  ;;  %7212 = vmatprep.mubr.bf16.mxu0 %v5340_v19 }
 0x3ec   : > { %v5289_v62 = vadd.f32 %v9824_v44, %v5253_v10  ;;  %7213 = vmatmul.mubr.bf16.gmra.mrb[156].mxu0 %v5341_v53  ;;  %v5320_v55 = vmax.f32 %v5288_v60, 0.0 }
 0x3ed   : > { %v5287_v24 = vadd.f32 %v9824_v44, %v5251_v56  ;;  %v7174_v57 = vpop.f32.mrb[164].mxu1  ;;  %v5318_v47 = vmax.f32 %v5286_v61, 0.0 }
 0x3ee   : > { %v5321_v26 = vmax.f32 %v5289_v62, 0.0  ;;  %v5190_v4 = vadd.f32 %v7174_v57, %v9787_v0  ;;  %v5181_v54 = vpop.f32.mrb[165].mxu1 }
 0x3ef   : > { %v5319_v39 = vmax.f32 %v5287_v24, 0.0  ;;  %v5182_v42 = vadd.f32 %v5181_v54, %v9781_v59  ;;  %v7175_v30 = vpop.f32.mrb[166].mxu1 }
 0x3f0   : > { %v5256_v45 = vmul.f32 %v9816_v22, %v5190_v4  ;;  %v5193_v31 = vadd.f32 %v7175_v30, %v9789_v48  ;;  %v5184_v18 = vpop.f32.mrb[167].mxu1  ;;  %v5343_v33 = vpack.c.bf16 %v5321_v26, %v5320_v55 }
 0x3f1   : > { %v5254_v5 = vmul.f32 %v9816_v22, %v5182_v42  ;;  %v5185_v8 = vadd.f32 %v5184_v18, %v9783_v51  ;;  %v5342_v21 = vpack.c.bf16 %v5319_v39, %v5318_v47  ;;  %v9929_v18 = vld [vmem:[%s10088_s6 + $0x1] ss:$0 sm:$0xff] }
 0x3f2   : > { %v5292_v6 = vadd.f32 %v9824_v44, %v5256_v45  ;;  %v5257_v0 = vmul.f32 %v9816_v22, %v5193_v31 }
 0x3f3   : > { %v5290_v43 = vadd.f32 %v9824_v44, %v5254_v5  ;;  %v5255_v59 = vmul.f32 %v9816_v22, %v5185_v8  ;;  %7216 = vmatprep.mubr.bf16.mxu0 %v5342_v21  ;;  %v7542_v21 = vld [vmem:[%s8008_s8] sm:$0xff]  }
 0x3f4   : > { %v5293_v25 = vadd.f32 %v9824_v44, %v5257_v0  ;;  %7217 = vmatmul.mubr.bf16.gmra.mrb[160].mxu0 %v5343_v33  ;;  %v5324_v37 = vmax.f32 %v5292_v6, 0.0  ;;  %v5649_v6 = vunpack.c.l.bf16 %v7542_v21 }
 0x3f5   : > { %v5291_v48 = vadd.f32 %v9824_v44, %v5255_v59  ;;  %v7178_v29 = vpop.f32.mrb[168].mxu1  ;;  %v5322_v17 = vmax.f32 %v5290_v43, 0.0 }
 0x3f6   : > { %v5325_v32 = vmax.f32 %v5293_v25, 0.0  ;;  %v5206_v51 = vadd.f32 %v7178_v29, %v9799_v52  ;;  %v5197_v41 = vpop.f32.mrb[169].mxu1 }
 0x3f7   : > { %v5323_v15 = vmax.f32 %v5291_v48, 0.0  ;;  %v5198_v3 = vadd.f32 %v5197_v41, %v9793_v16  ;;  %v7179_v27 = vpop.f32.mrb[170].mxu1 }
 0x3f8   : > { %v5260_v46 = vmul.f32 %v9816_v22, %v5206_v51  ;;  %v5209_v23 = vadd.f32 %v7179_v27, %v9801_v34  ;;  %v5200_v28 = vpop.f32.mrb[171].mxu1  ;;  %v5345_v7 = vpack.c.bf16 %v5325_v32, %v5324_v37  ;;  %v5650_v37 = vunpack.c.h.bf16 %v7542_v21 }
 0x3f9   : > { %v5258_v40 = vmul.f32 %v9816_v22, %v5198_v3  ;;  %v5201_v58 = vadd.f32 %v5200_v28, %v9795_v11  ;;  %v5344_v14 = vpack.c.bf16 %v5323_v15, %v5322_v17  ;;  %v7543_v28 = vld [vmem:[%s8008_s8 + $0x18] sm:$0xff]  }
 0x3fa   : > { %v5296_v38 = vadd.f32 %v9824_v44, %v5260_v46  ;;  %v5261_v52 = vmul.f32 %v9816_v22, %v5209_v23 }
 0x3fb   : > { %v5294_v63 = vadd.f32 %v9824_v44, %v5258_v40  ;;  %v5259_v16 = vmul.f32 %v9816_v22, %v5201_v58  ;;  %7220 = vmatprep.mubr.bf16.mxu0 %v5344_v14 }
 0x3fc   : > { %v5297_v50 = vadd.f32 %v9824_v44, %v5261_v52  ;;  %7221 = vmatmul.mubr.bf16.gmra.mrb[164].mxu0 %v5345_v7  ;;  %v5328_v36 = vmax.f32 %v5296_v38, 0.0  ;;  %v5655_v7 = vunpack.c.l.bf16 %v7543_v28  ;;  %v7544_v52 = vld [vmem:[%s8008_s8 + $0x10] sm:$0xff]  }
 0x3fd   : > { %v5295_v34 = vadd.f32 %v9824_v44, %v5259_v16  ;;  %v7182_v1 = vpop.f32.mrb[172].mxu1  ;;  %v5326_v13 = vmax.f32 %v5294_v63, 0.0  ;;  %v5653_v63 = vunpack.c.l.bf16 %v7544_v52 }
 0x3fe   : > { %v5329_v9 = vmax.f32 %v5297_v50, 0.0  ;;  %v5222_v11 = vadd.f32 %v7182_v1, %v9811_v2  ;;  %v5213_v53 = vpop.f32.mrb[173].mxu1 }
 0x3ff   : > { %v5327_v35 = vmax.f32 %v5295_v34, 0.0  ;;  %v5214_v19 = vadd.f32 %v5213_v53, %v9805_v49  ;;  %v7183_v60 = vpop.f32.mrb[174].mxu1 }
 0x400   : > { %v5264_v10 = vmul.f32 %v9816_v22, %v5222_v11  ;;  %v5225_v61 = vadd.f32 %v7183_v60, %v9818_v20  ;;  %v5216_v56 = vpop.f32.mrb[175].mxu1  ;;  %v5347_v62 = vpack.c.bf16 %v5329_v9, %v5328_v36  ;;  %v5656_v36 = vunpack.c.h.bf16 %v7543_v28  ;;  %v7548_v28 = vld [vmem:[%s8008_s8 + $0x30] sm:$0xff]  }
 0x401   : > { %v5262_v24 = vmul.f32 %v9816_v22, %v5214_v19  ;;  %v5217_v57 = vadd.f32 %v5216_v56, %v9807_v12  ;;  %v5346_v55 = vpack.c.bf16 %v5327_v35, %v5326_v13  ;;  %v5654_v35 = vunpack.c.h.bf16 %v7544_v52 }
 0x402   : > { %v5300_v26 = vadd.f32 %v9824_v44, %v5264_v10  ;;  %v5265_v2 = vmul.f32 %v9816_v22, %v5225_v61 }
 0x403   : > { %v5298_v4 = vadd.f32 %v9824_v44, %v5262_v24  ;;  %v5263_v49 = vmul.f32 %v9816_v22, %v5217_v57  ;;  %7224 = vmatprep.mubr.bf16.mxu0 %v5346_v55  ;;  %v9924_v22 = vld [vmem:[%s10088_s6] ss:$0 sm:$0xff] }
 0x404   : > { %v5301_v54 = vadd.f32 %v9824_v44, %v5265_v2  ;;  %7225 = vmatmul.mubr.bf16.gmra.mrb[168].mxu0 %v5347_v62  ;;  %v5332_v47 = vmax.f32 %v5300_v26, 0.0  ;;  %v7545_v2 = vld [vmem:[%s8008_s8 + $0x28] sm:$0xff]  }
 0x405   : > { %v5299_v20 = vadd.f32 %v9824_v44, %v5263_v49  ;;  %v5330_v12 = vmax.f32 %v5298_v4, 0.0  ;;  %v7541_v44 = vld [vmem:[%s8008_s8 + $0x8] sm:$0xff]   ;;  %v5659_v4 = vunpack.c.l.bf16 %v7545_v2 }
 0x406   : > { %v5333_v39 = vmax.f32 %v5301_v54, 0.0  ;;  %v5651_v33 = vunpack.c.l.bf16 %v7541_v44  ;;  %v5652_v59 = vunpack.c.h.bf16 %v7541_v44  ;;  %v5660_v44 = vunpack.c.h.bf16 %v7545_v2  ;;  %v7550_v2 = vld [vmem:[%s8008_s8 + $0x40] sm:$0xff]  }
 0x407   : > { %v5331_v42 = vmax.f32 %v5299_v20, 0.0 }
 0x408   : > { %v5349_v30 = vpack.c.bf16 %v5333_v39, %v5332_v47  ;;  %v7546_v39 = vld [vmem:[%s8008_s8 + $0x20] sm:$0xff]  }
 0x409   : > { %v5348_v45 = vpack.c.bf16 %v5331_v42, %v5330_v12  ;;  %v5657_v12 = vunpack.c.l.bf16 %v7546_v39 }
 0x40b   : > { %7228 = vmatprep.mubr.bf16.mxu0 %v5348_v45 }
 0x40c   : > { %7229 = vmatmul.mubr.bf16.gmra.mrb[172].mxu0 %v5349_v30 }
 0x4a7   : > { %v7202_v31 = vpop.f32.mrb[144].mxu0 }
 0x4a8   : > { %v5582_v5 = vmul.f32 %v7202_v31, %v9924_v22  ;;  %v5448_v8 = vpop.f32.mrb[145].mxu0 }
 0x4a9   : > { %v5580_v0 = vmul.f32 %v9924_v22, %v5448_v8  ;;  %v7203_v43 = vpop.f32.mrb[146].mxu0 }
 0x4aa   : > { %v5619_v25 = vadd.f32 %v9929_v18, %v5582_v5  ;;  %v5583_v48 = vmul.f32 %v7203_v43, %v9924_v22  ;;  %v5451_v29 = vpop.f32.mrb[147].mxu0 }
 0x4ab   : > { %v5617_v32 = vadd.f32 %v9929_v18, %v5580_v0  ;;  %v5581_v51 = vmul.f32 %v9924_v22, %v5451_v29 }
 0x4ac   : > { %v5683_v41 = vadd.f32 %v5651_v33, %v5619_v25  ;;  %v5620_v17 = vadd.f32 %v9929_v18, %v5583_v48 }
 0x4ad   : > { %v5681_v15 = vadd.f32 %v5649_v6, %v5617_v32  ;;  %v5618_v3 = vadd.f32 %v9929_v18, %v5581_v51  ;;  %v5658_v6 = vunpack.c.h.bf16 %v7546_v39 }
 0x4ae   : > { %v5684_v27 = vadd.f32 %v5652_v59, %v5620_v17  ;;  %v5715_v40 = vmax.f32 %v5683_v41, 0.0  ;;  %v7547_v17 = vld [vmem:[%s8008_s8 + $0x38] sm:$0xff]  }
 0x4af   : > { %v5682_v46 = vadd.f32 %v5650_v37, %v5618_v3  ;;  %v7206_v23 = vpop.f32.mrb[148].mxu0  ;;  %v5713_v16 = vmax.f32 %v5681_v15, 0.0  ;;  %v5663_v15 = vunpack.c.l.bf16 %v7547_v17  ;;  %v5664_v52 = vunpack.c.h.bf16 %v7547_v17  ;;  %v7552_v17 = vld [vmem:[%s8008_s8 + $0x50] sm:$0xff]  }
 0x4b0   : > { %v5716_v58 = vmax.f32 %v5684_v27, 0.0  ;;  %v5586_v14 = vmul.f32 %v7206_v23, %v9924_v22  ;;  %v5464_v38 = vpop.f32.mrb[149].mxu0 }
 0x4b1   : > { %v5714_v50 = vmax.f32 %v5682_v46, 0.0  ;;  %v5584_v34 = vmul.f32 %v9924_v22, %v5464_v38  ;;  %v7207_v1 = vpop.f32.mrb[150].mxu0 }
 0x4b2   : > { %v6481_v9 = vpack.c.bf16 %v5716_v58, %v5715_v40  ;;  %v5623_v11 = vadd.f32 %v9929_v18, %v5586_v14  ;;  %v5587_v53 = vmul.f32 %v7207_v1, %v9924_v22  ;;  %v5467_v13 = vpop.f32.mrb[151].mxu0  ;;  %v5662_v1 = vunpack.c.h.bf16 %v7548_v28 }
 0x4b3   : > { %v6476_v19 = vpack.c.bf16 %v5714_v50, %v5713_v16  ;;  %v5621_v60 = vadd.f32 %v9929_v18, %v5584_v34  ;;  %v5585_v10 = vmul.f32 %v9924_v22, %v5467_v13 }
 0x4b4   : > { %6553 = vst [vmem:[%s9951_s10 + $0x8] sm:$0xff] %v6481_v9   ;;  %v5687_v61 = vadd.f32 %v5655_v7, %v5623_v11  ;;  %v5624_v56 = vadd.f32 %v9929_v18, %v5587_v53  ;;  %v5661_v7 = vunpack.c.l.bf16 %v7548_v28 }
 0x4b5   : > { %6477 = vst [vmem:[%s9951_s10] sm:$0xff] %v6476_v19   ;;  %v5685_v62 = vadd.f32 %v5653_v63, %v5621_v60  ;;  %v5622_v24 = vadd.f32 %v9929_v18, %v5585_v10 }
 0x4b6   : > { %v5688_v57 = vadd.f32 %v5656_v36, %v5624_v56  ;;  %v5719_v49 = vmax.f32 %v5687_v61, 0.0  ;;  %v7549_v56 = vld [vmem:[%s8008_s8 + $0x48] sm:$0xff]  }
 0x4b7   : > { %v5686_v55 = vadd.f32 %v5654_v35, %v5622_v24  ;;  %v7210_v26 = vpop.f32.mrb[152].mxu0  ;;  %v5717_v42 = vmax.f32 %v5685_v62, 0.0  ;;  %v5667_v62 = vunpack.c.l.bf16 %v7549_v56  ;;  %v5668_v39 = vunpack.c.h.bf16 %v7549_v56  ;;  %v7554_v56 = vld [vmem:[%s8008_s8 + $0x60] sm:$0xff]  }
 0x4b8   : > { %v5720_v54 = vmax.f32 %v5688_v57, 0.0  ;;  %v5590_v20 = vmul.f32 %v7210_v26, %v9924_v22  ;;  %v5480_v47 = vpop.f32.mrb[153].mxu0 }
 0x4b9   : > { %v5718_v30 = vmax.f32 %v5686_v55, 0.0  ;;  %v5588_v45 = vmul.f32 %v9924_v22, %v5480_v47  ;;  %v7211_v31 = vpop.f32.mrb[154].mxu0 }
 0x4ba   : > { %v6491_v33 = vpack.c.bf16 %v5720_v54, %v5719_v49  ;;  %v5627_v5 = vadd.f32 %v9929_v18, %v5590_v20  ;;  %v5591_v8 = vmul.f32 %v7211_v31, %v9924_v22  ;;  %v5483_v21 = vpop.f32.mrb[155].mxu0  ;;  %v5666_v31 = vunpack.c.h.bf16 %v7550_v2 }
 0x4bb   : > { %v6486_v0 = vpack.c.bf16 %v5718_v30, %v5717_v42  ;;  %v5625_v43 = vadd.f32 %v9929_v18, %v5588_v45  ;;  %v5589_v59 = vmul.f32 %v9924_v22, %v5483_v21 }
 0x4bc   : > { %6555 = vst [vmem:[%s9951_s10 + $0x18] sm:$0xff] %v6491_v33   ;;  %v5691_v25 = vadd.f32 %v5659_v4, %v5627_v5  ;;  %v5628_v48 = vadd.f32 %v9929_v18, %v5591_v8  ;;  %v5665_v4 = vunpack.c.l.bf16 %v7550_v2 }
 0x4bd   : > { %6554 = vst [vmem:[%s9951_s10 + $0x10] sm:$0xff] %v6486_v0   ;;  %v5689_v29 = vadd.f32 %v5657_v12, %v5625_v43  ;;  %v5626_v37 = vadd.f32 %v9929_v18, %v5589_v59 }
 0x4be   : > { %v5692_v32 = vadd.f32 %v5660_v44, %v5628_v48  ;;  %v5723_v3 = vmax.f32 %v5691_v25, 0.0  ;;  %v7551_v48 = vld [vmem:[%s8008_s8 + $0x58] sm:$0xff]  }
 0x4bf   : > { %v5690_v51 = vadd.f32 %v5658_v6, %v5626_v37  ;;  %v7214_v41 = vpop.f32.mrb[156].mxu0  ;;  %v5721_v40 = vmax.f32 %v5689_v29, 0.0  ;;  %v5671_v29 = vunpack.c.l.bf16 %v7551_v48  ;;  %v5672_v28 = vunpack.c.h.bf16 %v7551_v48  ;;  %v7556_v48 = vld [vmem:[%s8008_s8 + $0x70] sm:$0xff]  }
 0x4c0   : > { %v5724_v27 = vmax.f32 %v5692_v32, 0.0  ;;  %v5594_v46 = vmul.f32 %v7214_v41, %v9924_v22  ;;  %v5496_v23 = vpop.f32.mrb[157].mxu0 }
 0x4c1   : > { %v5722_v58 = vmax.f32 %v5690_v51, 0.0  ;;  %v5592_v14 = vmul.f32 %v9924_v22, %v5496_v23  ;;  %v7215_v38 = vpop.f32.mrb[158].mxu0 }
 0x4c2   : > { %v6501_v63 = vpack.c.bf16 %v5724_v27, %v5723_v3  ;;  %v5631_v16 = vadd.f32 %v9929_v18, %v5594_v46  ;;  %v5595_v50 = vmul.f32 %v7215_v38, %v9924_v22  ;;  %v5499_v34 = vpop.f32.mrb[159].mxu0  ;;  %v5670_v38 = vunpack.c.h.bf16 %v7552_v17 }
 0x4c3   : > { %v6496_v36 = vpack.c.bf16 %v5722_v58, %v5721_v40  ;;  %v5629_v9 = vadd.f32 %v9929_v18, %v5592_v14  ;;  %v5593_v11 = vmul.f32 %v9924_v22, %v5499_v34 }
 0x4c4   : > { %6557 = vst [vmem:[%s9951_s10 + $0x28] sm:$0xff] %v6501_v63   ;;  %v5695_v53 = vadd.f32 %v5663_v15, %v5631_v16  ;;  %v5632_v13 = vadd.f32 %v9929_v18, %v5595_v50  ;;  %v5669_v15 = vunpack.c.l.bf16 %v7552_v17 }
 0x4c5   : > { %6556 = vst [vmem:[%s9951_s10 + $0x20] sm:$0xff] %v6496_v36   ;;  %v5693_v35 = vadd.f32 %v5661_v7, %v5629_v9  ;;  %v5630_v19 = vadd.f32 %v9929_v18, %v5593_v11 }
 0x4c6   : > { %v5696_v60 = vadd.f32 %v5664_v52, %v5632_v13  ;;  %v5727_v24 = vmax.f32 %v5695_v53, 0.0  ;;  %v7553_v13 = vld [vmem:[%s8008_s8 + $0x68] sm:$0xff]  }
 0x4c7   : > { %v5694_v10 = vadd.f32 %v5662_v1, %v5630_v19  ;;  %v7218_v61 = vpop.f32.mrb[160].mxu0  ;;  %v5725_v49 = vmax.f32 %v5693_v35, 0.0  ;;  %v5675_v35 = vunpack.c.l.bf16 %v7553_v13  ;;  %v5676_v2 = vunpack.c.h.bf16 %v7553_v13 }
 0x4c8   : > { %v5728_v57 = vmax.f32 %v5696_v60, 0.0  ;;  %v5598_v55 = vmul.f32 %v7218_v61, %v9924_v22  ;;  %v5512_v26 = vpop.f32.mrb[161].mxu0 }
 0x4c9   : > { %v5726_v54 = vmax.f32 %v5694_v10, 0.0  ;;  %v5596_v20 = vmul.f32 %v9924_v22, %v5512_v26  ;;  %v7219_v47 = vpop.f32.mrb[162].mxu0 }
 0x4ca   : > { %v6511_v12 = vpack.c.bf16 %v5728_v57, %v5727_v24  ;;  %v5635_v42 = vadd.f32 %v9929_v18, %v5598_v55  ;;  %v5599_v30 = vmul.f32 %v7219_v47, %v9924_v22  ;;  %v5515_v45 = vpop.f32.mrb[163].mxu0  ;;  %v5674_v47 = vunpack.c.h.bf16 %v7554_v56 }
 0x4cb   : > { %v6506_v44 = vpack.c.bf16 %v5726_v54, %v5725_v49  ;;  %v5633_v33 = vadd.f32 %v9929_v18, %v5596_v20  ;;  %v5597_v5 = vmul.f32 %v9924_v22, %v5515_v45 }
 0x4cc   : > { %6559 = vst [vmem:[%s9951_s10 + $0x38] sm:$0xff] %v6511_v12   ;;  %v5699_v8 = vadd.f32 %v5667_v62, %v5635_v42  ;;  %v5636_v21 = vadd.f32 %v9929_v18, %v5599_v30  ;;  %v5673_v62 = vunpack.c.l.bf16 %v7554_v56 }
 0x4cd   : > { %6558 = vst [vmem:[%s9951_s10 + $0x30] sm:$0xff] %v6506_v44   ;;  %v5697_v6 = vadd.f32 %v5665_v4, %v5633_v33  ;;  %v5634_v0 = vadd.f32 %v9929_v18, %v5597_v5 }
 0x4ce   : > { %v5700_v43 = vadd.f32 %v5668_v39, %v5636_v21  ;;  %v5731_v37 = vmax.f32 %v5699_v8, 0.0  ;;  %v7555_v21 = vld [vmem:[%s8008_s8 + $0x78] sm:$0xff]   ;;  %s5919_s8 = sshll.u32 %s9951_s10, 4  ;;  %s10036_s8 = int_to_ptr.vmem [resolvable:$true] %s5919_s8 }
 0x4cf   : > { %v5698_v59 = vadd.f32 %v5666_v31, %v5634_v0  ;;  %v7222_v25 = vpop.f32.mrb[164].mxu0  ;;  %v5729_v3 = vmax.f32 %v5697_v6, 0.0  ;;  %v5679_v6 = vunpack.c.l.bf16 %v7555_v21  ;;  %v5680_v17 = vunpack.c.h.bf16 %v7555_v21  ;;  %s7671_s21 = scalar_lea.vmem %s10036_s8, 2048  ;;  %p7678_p12 = scmp.lt.s32.totalorder %s10036_s8, %s7676_s29 }
 0x4d0   : > { %v5732_v32 = vmax.f32 %v5700_v43, 0.0  ;;  %v5602_v51 = vmul.f32 %v7222_v25, %v9924_v22  ;;  %v5528_v41 = vpop.f32.mrb[165].mxu0  ;;  %p7672_p10 = scmp.ne.s32.totalorder %s10036_s8, %s7671_s21  ;;  %p7679_p1 = scmp.lt.s32.totalorder %s7677_s11, %s7671_s21 }
 0x4d1   : > { %v5730_v27 = vmax.f32 %v5698_v59, 0.0  ;;  %v5600_v46 = vmul.f32 %v9924_v22, %v5528_v41  ;;  %v7223_v23 = vpop.f32.mrb[166].mxu0 }
 0x4d2   : > { %v6521_v7 = vpack.c.bf16 %v5732_v32, %v5731_v37  ;;  %v5639_v40 = vadd.f32 %v9929_v18, %v5602_v51  ;;  %v5603_v58 = vmul.f32 %v7223_v23, %v9924_v22  ;;  %v5531_v14 = vpop.f32.mrb[167].mxu0  ;;  %v5678_v23 = vunpack.c.h.bf16 %v7556_v48  ;;  %p7673_p3 = pnand %p7672_p10, %p7951_p5  ;;  %p7680_p2 = por %p7679_p1, %p7678_p12 }
 0x4d3   : > { %v6516_v52 = vpack.c.bf16 %v5730_v27, %v5729_v3  ;;  %v5637_v63 = vadd.f32 %v9929_v18, %v5600_v46  ;;  %v5601_v16 = vmul.f32 %v9924_v22, %v5531_v14 }
 0x4d4   : > { %6561 = vst [vmem:[%s9951_s10 + $0x48] sm:$0xff] %v6521_v7   ;;  %v5703_v50 = vadd.f32 %v5671_v29, %v5639_v40  ;;  %v5640_v34 = vadd.f32 %v9929_v18, %v5603_v58  ;;  %v5677_v29 = vunpack.c.l.bf16 %v7556_v48  ;;  %p7674_p7 = pneg %p7673_p3 }
 0x4d5   : > { %6560 = vst [vmem:[%s9951_s10 + $0x40] sm:$0xff] %v6516_v52   ;;  %v5701_v1 = vadd.f32 %v5669_v15, %v5637_v63  ;;  %v5638_v36 = vadd.f32 %v9929_v18, %v5601_v16 }
 0x4d6   : > { %v5704_v9 = vadd.f32 %v5672_v28, %v5640_v34  ;;  %v5735_v19 = vmax.f32 %v5703_v50, 0.0  ;;  %p7681_p4 = pnand %p7680_p2, %p7674_p7 }
 0x4d7   : > { %v5702_v11 = vadd.f32 %v5670_v38, %v5638_v36  ;;  %v7226_v53 = vpop.f32.mrb[168].mxu0  ;;  %v5733_v24 = vmax.f32 %v5701_v1, 0.0 }
 0x4d8   : > { %v5736_v60 = vmax.f32 %v5704_v9, 0.0  ;;  %v5606_v10 = vmul.f32 %v7226_v53, %v9924_v22  ;;  %v5544_v61 = vpop.f32.mrb[169].mxu0 }
 0x4d9   : > { %v5734_v57 = vmax.f32 %v5702_v11, 0.0  ;;  %v5604_v55 = vmul.f32 %v9924_v22, %v5544_v61  ;;  %v7227_v26 = vpop.f32.mrb[170].mxu0 }
 0x4da   : > { %v6531_v4 = vpack.c.bf16 %v5736_v60, %v5735_v19  ;;  %v5643_v49 = vadd.f32 %v9929_v18, %v5606_v10  ;;  %v5607_v54 = vmul.f32 %v7227_v26, %v9924_v22  ;;  %v5547_v20 = vpop.f32.mrb[171].mxu0 }
 0x4db   : > { %v6526_v39 = vpack.c.bf16 %v5734_v57, %v5733_v24  ;;  %v5641_v12 = vadd.f32 %v9929_v18, %v5604_v55  ;;  %v5605_v42 = vmul.f32 %v9924_v22, %v5547_v20 }
 0x4dc   : > { %6563 = vst [vmem:[%s9951_s10 + $0x58] sm:$0xff] %v6531_v4   ;;  %v5707_v30 = vadd.f32 %v5675_v35, %v5643_v49  ;;  %v5644_v45 = vadd.f32 %v9929_v18, %v5607_v54 }
 0x4dd   : > { %6562 = vst [vmem:[%s9951_s10 + $0x50] sm:$0xff] %v6526_v39   ;;  %v5705_v31 = vadd.f32 %v5673_v62, %v5641_v12  ;;  %v5642_v44 = vadd.f32 %v9929_v18, %v5605_v42 }
 0x4de   : > { %v5708_v33 = vadd.f32 %v5676_v2, %v5644_v45  ;;  %v5739_v0 = vmax.f32 %v5707_v30, 0.0 }
 0x4df   : > { %v5706_v5 = vadd.f32 %v5674_v47, %v5642_v44  ;;  %v7230_v8 = vpop.f32.mrb[172].mxu0  ;;  %v5737_v37 = vmax.f32 %v5705_v31, 0.0 }
 0x4e0   : > { %v5740_v43 = vmax.f32 %v5708_v33, 0.0  ;;  %v5610_v59 = vmul.f32 %v7230_v8, %v9924_v22  ;;  %v5560_v25 = vpop.f32.mrb[173].mxu0 }
 0x4e1   : > { %v5738_v32 = vmax.f32 %v5706_v5, 0.0  ;;  %v5608_v51 = vmul.f32 %v9924_v22, %v5560_v25  ;;  %v7231_v41 = vpop.f32.mrb[174].mxu0 }
 0x4e2   : > { %v6541_v15 = vpack.c.bf16 %v5740_v43, %v5739_v0  ;;  %v5647_v3 = vadd.f32 %v9929_v18, %v5610_v59  ;;  %v5611_v27 = vmul.f32 %v7231_v41, %v9924_v22  ;;  %v5563_v46 = vpop.f32.mrb[175].mxu0 }
 0x4e3   : > { %v6536_v28 = vpack.c.bf16 %v5738_v32, %v5737_v37  ;;  %v5645_v7 = vadd.f32 %v9929_v18, %v5608_v51  ;;  %v5609_v40 = vmul.f32 %v9924_v22, %v5563_v46 }
 0x4e4   : > { %6565 = vst [vmem:[%s9951_s10 + $0x68] sm:$0xff] %v6541_v15   ;;  %v5711_v58 = vadd.f32 %v5679_v6, %v5647_v3  ;;  %v5648_v14 = vadd.f32 %v9929_v18, %v5611_v27 }
 0x4e5   : > { %6564 = vst [vmem:[%s9951_s10 + $0x60] sm:$0xff] %v6536_v28   ;;  %v5709_v38 = vadd.f32 %v5677_v29, %v5645_v7  ;;  %v5646_v52 = vadd.f32 %v9929_v18, %v5609_v40 }
 0x4e6   : > { %v5712_v63 = vadd.f32 %v5680_v17, %v5648_v14  ;;  %v5743_v50 = vmax.f32 %v5711_v58, 0.0 }
 0x4e7   : > { %v5710_v16 = vadd.f32 %v5678_v23, %v5646_v52  ;;  %v5741_v1 = vmax.f32 %v5709_v38, 0.0 }
 0x4e8   : > { %v5744_v34 = vmax.f32 %v5712_v63, 0.0 }
 0x4e9   : > { %v5742_v22 = vmax.f32 %v5710_v16, 0.0 }
 0x4ea   : > { %v6551_v36 = vpack.c.bf16 %v5744_v34, %v5743_v50 }
 0x4eb   : > { %v6546_v18 = vpack.c.bf16 %v5742_v22, %v5741_v1 }
 0x4ec   : > { %6567 = vst [vmem:[%s9951_s10 + $0x78] sm:$0xff] %v6551_v36  }
 0x4ed   : > { %6566 = vst [vmem:[%s9951_s10 + $0x70] sm:$0xff] %v6546_v18  }
 0x4ee   : > { %7684 = shalt.err (!%p7681_p4)
}
 0x4ef   : > { %s7685_s30 = scalar_lea.hbm %s10034_s20, 2048  ;;  %s7689_s15 = scalar_lea.hbm %s10089_s7, 4096 }
 0x4f0   : > { %p7686_p9 = scmp.ne.s32.totalorder %s10034_s20, %s7685_s30  ;;  %p7690_p8 = scmp.lt.u32.totalorder %s10034_s20, %s10089_s7 }
 0x4f1   : > { %p7691_p13 = scmp.lt.u32.totalorder %s7689_s15, %s7685_s30  ;;  %p7693_p10 = scmp.lt.u32.totalorder %s7685_s30, %s10034_s20 }
 0x4f2   : > { %p7687_p0 = pnand %p7686_p9, %p7951_p5 }
 0x4f3   : > { %p7692_p6 = por %p7691_p13, %p7690_p8 }
 0x4f4   : > { %p7688_p11 = pneg %p7687_p0 }
 0x4f5   : > { %p7694_p3 = por %p7693_p10, %p7692_p6 }
 0x4f7   : > { %p7695_p7 = pnand %p7694_p3, %p7688_p11 }
 0x4f9   : > { %7698 = shalt.err (!%p7695_p7)
}
 0x4fa   : > { %s7755_s14 = smov 64   ;;  %s7756_s12 = smov 4  }
 0x4fb   : > { %7262 = dma.vmem_to_hbm [thread:$0]  (%p7951_p5), %s10036_s8, 2048, %s10034_s20, %s5906_s28, %s7755_s14, %s7755_s14, %s7756_s12  }
 0x4fc PF: > { %s10252_s21 = sld [smem:[#allocation16_spill]]  ;;  %s5934_s16 = sand.u32 1, %s7733_s24  }
 0x4fd   : > { %p10254_p1 = scmp.ge.s32.totalorder %s7745_s27, 2  ;;  %s5935_s29 = scalar_lea.sflag [#allocation5], %s5934_s16 }
 0x502   : > { %p10253_p12 = scmp.ne.s32.totalorder %s10252_s21, 0 }
 0x504   : > { %p7279_p2 = pnand %p10254_p1, %p10253_p12 }
 0x506   : > { %7728 = dma.done.wait (!%p7279_p2), %s5935_s29, 2048  }
 0x507   : > { %7730 = vsyncadd (!%p7279_p2), %s5935_s29, 4294965248  ;;  %p22_p4 = scmp.ge.s32.totalorder %s7937_s22, 4   ;;  %s10255_s24 = smov %s7737_s25 }
 0x508   : > { %s10256_s25 = smov %s7741_s26  ;;  %s10257_s26 = smov %s7947_s18 }
 0x509   : > { %s10258_s27 = smov %s7937_s22  ;;  %24 = sbr.rel (!%p22_p4) target bundleno = 7 (0x7), region = 107 }
 0x510   :  { %5940 = vsyncpa [#allocation4], 1 }
 0x511   :  { %5942 = vsyncpa [#allocation4 + $0x1], 1 }
 0x512   :  { %5943 = vsyncpa [#allocation7], 1 }
 0x513   :  { %5944 = vsyncpa [#allocation10], 1 }
 0x514   :  { %5945 = vsyncpa [#allocation5], 1 }
 0x515   :  { %5947 = vsyncpa [#allocation5 + $0x1], 1 }

</bundles_post_ra>
